<compile_context>
chip_gen: v7x
topology: tpu7x:2x2x1
jax: 0.10.0
libtpu: 0.0.40
codegen_flags: <defaults>
</compile_context>

<pallas_src>
import functools

import jax
import jax.numpy as jnp
from jax.experimental import pallas as pl
from jax.experimental.pallas import tpu as pltpu


LANE = 128                              # feature / hidden / class dims padded to this
NODE_PAD = 256                          # node count padded to a multiple of this
BIG_TILE = 512                          # preferred tile when >= 2 row tiles exist
COL_RESIDENT_BYTES = 24 * 1024 * 1024   # budget for VMEM-resident k-operand
NEG_BIG = -1e30


def _round_up(x, m):
    return ((x + m - 1) // m) * m


def _pad2(a, rows, cols):
    return jnp.pad(a, ((0, rows - a.shape[0]), (0, cols - a.shape[1])))


# ----------------------------- in-kernel helpers ------------------------------

def _layernorm(h, gamma, beta, hidden):
    # Padded hidden lanes of `h` are exactly zero (zero-padded weights/biases/gamma/
    # beta keep them zero through every layer), so full-lane sums equal sums over the
    # `hidden` valid lanes.  Single fused reduction pass: var = E[h^2] - mu^2.
    inv_h = 1.0 / float(hidden)
    mu = jnp.sum(h, axis=-1, keepdims=True) * inv_h
    ms = jnp.sum(h * h, axis=-1, keepdims=True) * inv_h
    var = jnp.maximum(ms - mu * mu, 0.0)
    return (h - mu) * jax.lax.rsqrt(var + 1e-5) * gamma + beta


# ------------------------------- stage 1 kernel -------------------------------
# conv1 (A_hat @ (X @ W1) + b1) -> relu -> residual MLP (fc1, fc2) -> LayerNorm1

def _gcn_stage1_kernel(a_ref, xw1_ref,
                       b1_ref, wfc1_ref, bfc1_ref, wfc2_ref, bfc2_ref,
                       g1_ref, be1_ref,
                       h1_ref, acc_ref, *, hidden, tk, col_resident):
    k = pl.program_id(1)

    if col_resident:
        start = pl.multiple_of(k * tk, tk)
        col = xw1_ref[pl.ds(start, tk), :]          # slice VMEM-resident XW1
    else:
        col = xw1_ref[...]                          # streamed (tk, hp) block

    partial = jnp.dot(a_ref[...], col, preferred_element_type=jnp.float32)

    @pl.when(k == 0)
    def _():
        acc_ref[...] = partial                      # first-k direct write

    @pl.when(k > 0)
    def _():
        acc_ref[...] += partial

    @pl.when(k == pl.num_programs(1) - 1)
    def _():
        b1 = b1_ref[...]
        bfc1 = bfc1_ref[...]
        bfc2 = bfc2_ref[...]
        g1 = g1_ref[...]
        be1 = be1_ref[...]

        # conv1 epilogue in f32
        h = jnp.maximum(acc_ref[...] + b1, 0.0)
        h_clone = h
        # residual MLP: bf16 x bf16 MXU matmuls, f32 accumulation
        h = jnp.maximum(
            jnp.dot(h.astype(jnp.bfloat16), wfc1_ref[...],
                    preferred_element_type=jnp.float32) + bfc1, 0.0)
        h = jnp.maximum(
            jnp.dot(h.astype(jnp.bfloat16), wfc2_ref[...],
                    preferred_element_type=jnp.float32) + bfc2 + h_clone, 0.0)
        h = _layernorm(h, g1, be1, hidden)
        # dropout (eval mode) -> identity
        h1_ref[...] = h.astype(h1_ref.dtype)


# ------------------------------- stage 2 kernel -------------------------------
# conv2 ((A_hat @ H1) @ W2 + b2) -> residual MLP (fc3, fc4, + H1) -> LayerNorm2
# -> fc_final -> log_softmax (padded class lanes carry bias -1e30, so no mask needed).

def _gcn_stage2_kernel(a_ref, hcol_ref, hres_ref,
                       w2_ref, b2_ref, wfc3_ref, bfc3_ref, wfc4_ref, bfc4_ref,
                       g2_ref, be2_ref, wf_ref, bf_ref,
                       out_ref, acc_ref, *, hidden, tk, col_resident):
    k = pl.program_id(1)

    if col_resident:
        start = pl.multiple_of(k * tk, tk)
        col = hcol_ref[pl.ds(start, tk), :]         # slice VMEM-resident H1
    else:
        col = hcol_ref[...]

    partial = jnp.dot(a_ref[...], col, preferred_element_type=jnp.float32)

    @pl.when(k == 0)
    def _():
        acc_ref[...] = partial

    @pl.when(k > 0)
    def _():
        acc_ref[...] += partial

    @pl.when(k == pl.num_programs(1) - 1)
    def _():
        b2 = b2_ref[...]
        bfc3 = bfc3_ref[...]
        bfc4 = bfc4_ref[...]
        g2 = g2_ref[...]
        be2 = be2_ref[...]
        bf = bf_ref[...]

        # conv2: (A_hat @ H1) @ W2 + b2   (bf16 MXU, f32 acc)
        h = jnp.dot(acc_ref[...].astype(jnp.bfloat16), w2_ref[...],
                    preferred_element_type=jnp.float32) + b2
        t = jnp.maximum(
            jnp.dot(h.astype(jnp.bfloat16), wfc3_ref[...],
                    preferred_element_type=jnp.float32) + bfc3, 0.0)
        h = (jnp.dot(t.astype(jnp.bfloat16), wfc4_ref[...],
                     preferred_element_type=jnp.float32) + bfc4
             + hres_ref[...].astype(jnp.float32))            # residual add in f32
        h = _layernorm(h, g2, be2, hidden)

        # final linear + log_softmax: padded class lanes get bias -1e30, so
        # exp() zeroes them out without any iota / select in the kernel.
        logits = jnp.dot(h.astype(jnp.bfloat16), wf_ref[...],
                         preferred_element_type=jnp.float32) + bf
        m = jnp.max(logits, axis=-1, keepdims=True)
        z = logits - m
        lse = jnp.log(jnp.sum(jnp.exp(z), axis=-1, keepdims=True))
        out_ref[...] = (z - lse).astype(out_ref.dtype)


# ------------------------------ JAX wrapper -----------------------------------

def normalized_adjacency(edge_index, num_nodes):
    """Dense D^-1/2 (A + I) D^-1/2 matching PyG GCNConv default normalization."""
    src = edge_index[0]
    dst = edge_index[1]
    a = jnp.zeros((num_nodes, num_nodes), jnp.float32)
    a = a.at[dst, src].add(1.0)                 # message j -> i lands in row i, col j
    a = a + jnp.eye(num_nodes, dtype=jnp.float32)
    deg = jnp.sum(a, axis=1)
    dinv = jnp.where(deg > 0.0, 1.0 / jnp.sqrt(deg), 0.0)
    return dinv[:, None] * a * dinv[None, :]


@functools.partial(jax.jit, static_argnames=("hidden", "num_classes"))
def gcn_forward(x, a_hat, params, hidden, num_classes):
    n, _ = x.shape
    np_ = _round_up(max(n, 8), NODE_PAD)
    hp = _round_up(hidden, LANE)
    cp = _round_up(num_classes, LANE)

    # Tile: prefer 512 when it divides the padded node count and still leaves >= 2
    # row tiles (feeds both v7x TensorCores via the "parallel" axis); else 256.
    if np_ % BIG_TILE == 0 and np_ // BIG_TILE >= 2:
        tm = tk = BIG_TILE
    else:
        tm = tk = NODE_PAD
    grid = (np_ // tm, np_ // tk)

    (w1, b1, wfc1, bfc1, wfc2, bfc2, g1, be1,
     w2, b2, wfc3, bfc3, wfc4, bfc4, g2, be2, wf, bf) = params

    # A_hat @ X @ W1 == A_hat @ (X @ W1): the feature-width matmul is tiny, so run it
    # once in XLA (f32) and stream only its hidden-width result through the kernel.
    xw1 = x @ w1                                              # [n, hidden], f32
    xw1_p = _pad2(xw1, np_, hp).astype(jnp.bfloat16)
    a_p = _pad2(a_hat, np_, np_).astype(jnp.bfloat16)

    def pad_w(w, r, c):        # epilogue matmul weights run bf16 on the MXU
        return _pad2(w, r, c).astype(jnp.bfloat16)

    b1_p = _pad2(b1, 1, hp)
    wfc1_b, bfc1_p = pad_w(wfc1, hp, hp), _pad2(bfc1, 1, hp)
    wfc2_b, bfc2_p = pad_w(wfc2, hp, hp), _pad2(bfc2, 1, hp)
    g1_p, be1_p = _pad2(g1, 1, hp), _pad2(be1, 1, hp)
    w2_b, b2_p = pad_w(w2, hp, hp), _pad2(b2, 1, hp)
    wfc3_b, bfc3_p = pad_w(wfc3, hp, hp), _pad2(bfc3, 1, hp)
    wfc4_b, bfc4_p = pad_w(wfc4, hp, hp), _pad2(bfc4, 1, hp)
    g2_p, be2_p = _pad2(g2, 1, hp), _pad2(be2, 1, hp)
    wf_b = pad_w(wf, hp, cp)
    # padded class lanes get -1e30 so the in-kernel log_softmax needs no mask
    bf_p = jnp.pad(bf, ((0, 0), (0, cp - num_classes)), constant_values=NEG_BIG)

    # -------- specs --------
    col_bytes = np_ * hp * 2                    # bf16 k-column operand (XW1 / H1)
    col_resident = col_bytes <= COL_RESIDENT_BYTES
    if col_resident:
        # DMA'd once, stays VMEM-resident across the whole grid; sliced in-kernel.
        col_spec = pl.BlockSpec((np_, hp), lambda i, k: (0, 0))
    else:
        # fallback for very large N (keeps v7x's 64 MiB VMEM safe)
        col_spec = pl.BlockSpec((tk, hp), lambda i, k: (k, 0))

    a_spec = pl.BlockSpec((tm, tk), lambda i, k: (i, k))

    def const_spec(arr):
        # small weight/bias tensors stay VMEM-resident across the whole grid
        # TODO(synk): pipeline_mode=pl.Buffered(1) would halve their VMEM footprint.
        return pl.BlockSpec(arr.shape, lambda i, k: (0, 0))

    # v5e's scoped VMEM default is only 16 MiB; request what we actually use + slack.
    vmem_limit = (col_bytes if col_resident else 0) + 12 * 1024 * 1024
    cparams = pltpu.CompilerParams(
        dimension_semantics=("parallel", "arbitrary"),
        vmem_limit_bytes=int(vmem_limit))

    # ---------------- stage 1: conv1 + residual MLP + LayerNorm1 ----------------
    h1 = pl.pallas_call(
        functools.partial(_gcn_stage1_kernel, hidden=hidden, tk=tk,
                          col_resident=col_resident),
        out_shape=jax.ShapeDtypeStruct((np_, hp), jnp.bfloat16),
        grid_spec=pltpu.PrefetchScalarGridSpec(
            num_scalar_prefetch=0,
            grid=grid,
            in_specs=[
                a_spec,                                   # A_hat row/col tile
                col_spec,                                 # X @ W1 column operand
                const_spec(b1_p),
                const_spec(wfc1_b), const_spec(bfc1_p),
                const_spec(wfc2_b), const_spec(bfc2_p),
                const_spec(g1_p), const_spec(be1_p),
            ],
            out_specs=pl.BlockSpec((tm, hp), lambda i, k: (i, 0)),
            scratch_shapes=[pltpu.VMEM((tm, hp), jnp.float32)],
        ),
        compiler_params=cparams,
    )(a_p, xw1_p, b1_p, wfc1_b, bfc1_p, wfc2_b, bfc2_p, g1_p, be1_p)

    # ------------- stage 2: conv2 + residual MLP + LayerNorm2 + head ------------
    out_p = pl.pallas_call(
        functools.partial(_gcn_stage2_kernel, hidden=hidden, tk=tk,
                          col_resident=col_resident),
        out_shape=jax.ShapeDtypeStruct((np_, cp), jnp.float32),
        grid_spec=pltpu.PrefetchScalarGridSpec(
            num_scalar_prefetch=0,
            grid=grid,
            in_specs=[
                a_spec,                                   # A_hat row/col tile
                col_spec,                                 # H1 column operand
                pl.BlockSpec((tm, hp), lambda i, k: (i, 0)),   # H1 residual rows
                const_spec(w2_b), const_spec(b2_p),
                const_spec(wfc3_b), const_spec(bfc3_p),
                const_spec(wfc4_b), const_spec(bfc4_p),
                const_spec(g2_p), const_spec(be2_p),
                const_spec(wf_b), const_spec(bf_p),
            ],
            out_specs=pl.BlockSpec((tm, cp), lambda i, k: (i, 0)),
            scratch_shapes=[pltpu.VMEM((tm, hp), jnp.float32)],
        ),
        compiler_params=cparams,
    )(a_p, h1, h1, w2_b, b2_p, wfc3_b, bfc3_p, wfc4_b, bfc4_p,
      g2_p, be2_p, wf_b, bf_p)

    return out_p[:n, :num_classes]


# ------------------------------ reference (f32) --------------------------------

def gcn_reference(x, a_hat, params, num_classes):
    (w1, b1, wfc1, bfc1, wfc2, bfc2, g1, be1,
     w2, b2, wfc3, bfc3, wfc4, bfc4, g2, be2, wf, bf) = params

    def ln(h, g, b):
        mu = jnp.mean(h, axis=-1, keepdims=True)
        var = jnp.mean((h - mu) ** 2, axis=-1, keepdims=True)
        return (h - mu) / jnp.sqrt(var + 1e-5) * g + b

    h = jax.nn.relu(a_hat @ x @ w1 + b1)
    hc = h
    h = jax.nn.relu(h @ wfc1 + bfc1)
    h = jax.nn.relu(h @ wfc2 + bfc2 + hc)
    h = ln(h, g1, be1)
    hc = h
    h = a_hat @ h @ w2 + b2
    h = jax.nn.relu(h @ wfc3 + bfc3)
    h = h @ wfc4 + bfc4 + hc
    h = ln(h, g2, be2)
    logits = h @ wf + bf
    return jax.nn.log_softmax(logits, axis=1)


# ------------------------------ param init -------------------------------------

def init_params(key, num_features, hidden, num_classes):
    """Synthetic parameters. Weights stored as [in, out]; 1-D params as [1, dim]."""
    ks = jax.random.split(key, 14)

    def lin(kw, kb, fan_in, fan_out):
        s = 1.0 / jnp.sqrt(jnp.float32(fan_in))
        w = jax.random.uniform(kw, (fan_in, fan_out), jnp.float32, -s, s)
        b = jax.random.uniform(kb, (1, fan_out), jnp.float32, -s, s)
        return w, b

    w1, b1 = lin(ks[0], ks[1], num_features, hidden)       # conv1
    wfc1, bfc1 = lin(ks[2], ks[3], hidden, hidden)          # fc1
    wfc2, bfc2 = lin(ks[4], ks[5], hidden, hidden)          # fc2
    g1 = jnp.ones((1, hidden), jnp.float32)                 # norm1
    be1 = jnp.zeros((1, hidden), jnp.float32)
    w2, b2 = lin(ks[6], ks[7], hidden, hidden)              # conv2
    wfc3, bfc3 = lin(ks[8], ks[9], hidden, hidden)          # fc3
    wfc4, bfc4 = lin(ks[10], ks[11], hidden, hidden)        # fc4
    g2 = jnp.ones((1, hidden), jnp.float32)                 # norm2
    be2 = jnp.zeros((1, hidden), jnp.float32)
    wf, bf = lin(ks[12], ks[13], hidden, num_classes)       # fc_final

    return (w1, b1, wfc1, bfc1, wfc2, bfc2, g1, be1,
            w2, b2, wfc3, bfc3, wfc4, bfc4, g2, be2, wf, bf)


# --------------------------------- main -----------------------------------------

if __name__ == "__main__":
    NUM_NODES = 16
    NUM_FEATURES = 8
    HIDDEN = 64           # module default hidden_channels
    NUM_CLASSES = 4

    key = jax.random.PRNGKey(0)
    k_x, k_p = jax.random.split(key)

    # deterministic node features
    x = jax.random.normal(k_x, (NUM_NODES, NUM_FEATURES), jnp.float32)

    # deterministic small graph: bidirectional ring + a few chords
    fwd = jnp.stack([jnp.arange(NUM_NODES), (jnp.arange(NUM_NODES) + 1) % NUM_NODES])
    chords = jnp.stack([jnp.arange(0, NUM_NODES, 4),
                        (jnp.arange(0, NUM_NODES, 4) + 7) % NUM_NODES])
    half = jnp.concatenate([fwd, chords], axis=1)
    edge_index = jnp.concatenate([half, half[::-1]], axis=1).astype(jnp.int32)  # [2, E]

    a_hat = normalized_adjacency(edge_index, NUM_NODES)
    params = init_params(k_p, NUM_FEATURES, HIDDEN, NUM_CLASSES)

    out = gcn_forward(x, a_hat, params, HIDDEN, NUM_CLASSES)
    out = jax.block_until_ready(out)

    assert out.shape == (NUM_NODES, NUM_CLASSES)
    # rows of log_softmax must exp-sum to 1
    assert bool(jnp.allclose(jnp.sum(jnp.exp(out), axis=1), 1.0, atol=1e-3))
    # agree with the pure-f32 reference (bf16 aggregation/weights -> loose tolerance)
    ref = gcn_reference(x, a_hat, params, NUM_CLASSES)
    assert float(jnp.max(jnp.abs(out - ref))) < 0.25

    print("KERNEL_OK")
</pallas_src>

<mosaic_0001>
module attributes {stable_mosaic.version = 11 : i64} {
  func.func @_gcn_stage1_kernel(%arg0: i32, %arg1: i32, %arg2: memref<256x256xbf16, #tpu.memory_space<vmem>>, %arg3: memref<256x128xbf16, #tpu.memory_space<vmem>>, %arg4: memref<1x128xf32, #tpu.memory_space<vmem>>, %arg5: memref<128x128xbf16, #tpu.memory_space<vmem>>, %arg6: memref<1x128xf32, #tpu.memory_space<vmem>>, %arg7: memref<128x128xbf16, #tpu.memory_space<vmem>>, %arg8: memref<1x128xf32, #tpu.memory_space<vmem>>, %arg9: memref<1x128xf32, #tpu.memory_space<vmem>>, %arg10: memref<1x128xf32, #tpu.memory_space<vmem>>, %arg11: memref<256x128xbf16, #tpu.memory_space<vmem>>, %arg12: memref<256x128xf32, #tpu.memory_space<vmem>>) attributes {dimension_semantics = [#tpu.dimension_semantics<parallel>, #tpu.dimension_semantics<arbitrary>], iteration_bounds = array<i64: 1, 1>, scalar_prefetch = 0 : i64, scratch_operands = 1 : i64, tpu.core_type = #tpu.core_type<tc>, window_params = [{transform_indices = @transform_0, window_bounds = array<i64: 256, 256>}, {pipeline_mode = #tpu.pipeline_mode<synchronous>, transform_indices = @transform_1, window_bounds = array<i64: 256, 128>}, {pipeline_mode = #tpu.pipeline_mode<synchronous>, transform_indices = @transform_2, window_bounds = array<i64: 1, 128>}, {pipeline_mode = #tpu.pipeline_mode<synchronous>, transform_indices = @transform_3, window_bounds = array<i64: 128, 128>}, {pipeline_mode = #tpu.pipeline_mode<synchronous>, transform_indices = @transform_4, window_bounds = array<i64: 1, 128>}, {pipeline_mode = #tpu.pipeline_mode<synchronous>, transform_indices = @transform_5, window_bounds = array<i64: 128, 128>}, {pipeline_mode = #tpu.pipeline_mode<synchronous>, transform_indices = @transform_6, window_bounds = array<i64: 1, 128>}, {pipeline_mode = #tpu.pipeline_mode<synchronous>, transform_indices = @transform_7, window_bounds = array<i64: 1, 128>}, {pipeline_mode = #tpu.pipeline_mode<synchronous>, transform_indices = @transform_8, window_bounds = array<i64: 1, 128>}, {transform_indices = @transform_9, window_bounds = array<i64: 256, 128>}]} {
    %c256_i32 = arith.constant 256 : i32
    %0 = arith.muli %arg1, %c256_i32 : i32
    %1 = tpu.assume_multiple %0, 256 : i32
    %2 = arith.index_cast %1 : i32 to index
    %c0 = arith.constant 0 : index
    %3 = vector.load %arg3[%2, %c0] : memref<256x128xbf16, #tpu.memory_space<vmem>>, vector<256x128xbf16>
    %c0_0 = arith.constant 0 : index
    %c0_1 = arith.constant 0 : index
    %4 = vector.load %arg2[%c0_0, %c0_1] : memref<256x256xbf16, #tpu.memory_space<vmem>>, vector<256x256xbf16>
    %cst = arith.constant dense<0.000000e+00> : vector<256x128xf32>
    %5 = tpu.matmul %4, %3, %cst {dimension_numbers = #tpu.dot_dimension_numbers<[1], [0], [0], [1], [0, 0, 1, 1], [], []>} : vector<256x256xbf16>, vector<256x128xbf16>, vector<256x128xf32> -> vector<256x128xf32>
    %c0_i32 = arith.constant 0 : i32
    %6 = arith.cmpi eq, %arg1, %c0_i32 : i32
    %7 = arith.extui %6 : i1 to i32
    %c0_i32_2 = arith.constant 0 : i32
    %8 = arith.cmpi ne, %7, %c0_i32_2 : i32
    scf.if %8 {
      %c0_7 = arith.constant 0 : index
      %c0_8 = arith.constant 0 : index
      %15 = vector.load %arg12[%c0_7, %c0_8] : memref<256x128xf32, #tpu.memory_space<vmem>>, vector<256x128xf32>
      tpu.vector_store %arg12[%c0_7, %c0_8], %5 {strides = array<i32>} : memref<256x128xf32, #tpu.memory_space<vmem>>, vector<256x128xf32>,
    } else {
    }
    %c0_i32_3 = arith.constant 0 : i32
    %9 = arith.cmpi sgt, %arg1, %c0_i32_3 : i32
    %10 = arith.extui %9 : i1 to i32
    %c0_i32_4 = arith.constant 0 : i32
    %11 = arith.cmpi ne, %10, %c0_i32_4 : i32
    scf.if %11 {
      %c0_7 = arith.constant 0 : index
      %c0_8 = arith.constant 0 : index
      %15 = vector.load %arg12[%c0_7, %c0_8] : memref<256x128xf32, #tpu.memory_space<vmem>>, vector<256x128xf32>
      %16 = arith.addf %15, %5 : vector<256x128xf32>
      %c0_9 = arith.constant 0 : index
      %c0_10 = arith.constant 0 : index
      %17 = vector.load %arg12[%c0_9, %c0_10] : memref<256x128xf32, #tpu.memory_space<vmem>>, vector<256x128xf32>
      tpu.vector_store %arg12[%c0_9, %c0_10], %16 {strides = array<i32>} : memref<256x128xf32, #tpu.memory_space<vmem>>, vector<256x128xf32>,
    } else {
    }
    %c0_i32_5 = arith.constant 0 : i32
    %12 = arith.cmpi eq, %arg1, %c0_i32_5 : i32
    %13 = arith.extui %12 : i1 to i32
    %c0_i32_6 = arith.constant 0 : i32
    %14 = arith.cmpi ne, %13, %c0_i32_6 : i32
    scf.if %14 {
      %c0_7 = arith.constant 0 : index
      %c0_8 = arith.constant 0 : index
      %15 = vector.load %arg4[%c0_7, %c0_8] : memref<1x128xf32, #tpu.memory_space<vmem>>, vector<1x128xf32>
      %c0_9 = arith.constant 0 : index
      %c0_10 = arith.constant 0 : index
      %16 = vector.load %arg6[%c0_9, %c0_10] : memref<1x128xf32, #tpu.memory_space<vmem>>, vector<1x128xf32>
      %c0_11 = arith.constant 0 : index
      %c0_12 = arith.constant 0 : index
      %17 = vector.load %arg8[%c0_11, %c0_12] : memref<1x128xf32, #tpu.memory_space<vmem>>, vector<1x128xf32>
      %c0_13 = arith.constant 0 : index
      %c0_14 = arith.constant 0 : index
      %18 = vector.load %arg9[%c0_13, %c0_14] : memref<1x128xf32, #tpu.memory_space<vmem>>, vector<1x128xf32>
      %c0_15 = arith.constant 0 : index
      %c0_16 = arith.constant 0 : index
      %19 = vector.load %arg10[%c0_15, %c0_16] : memref<1x128xf32, #tpu.memory_space<vmem>>, vector<1x128xf32>
      %c0_17 = arith.constant 0 : index
      %c0_18 = arith.constant 0 : index
      %20 = vector.load %arg12[%c0_17, %c0_18] : memref<256x128xf32, #tpu.memory_space<vmem>>, vector<256x128xf32>
      %21 = vector.broadcast %15 : vector<1x128xf32> to vector<256x128xf32>
      %22 = arith.addf %20, %21 : vector<256x128xf32>
      %cst_19 = arith.constant 0.000000e+00 : f32
      %23 = vector.broadcast %cst_19 : f32 to vector<256x128xf32>
      %24 = arith.maximumf %22, %23 : vector<256x128xf32>
      %25 = arith.truncf %24 : vector<256x128xf32> to vector<256x128xbf16>
      %c0_20 = arith.constant 0 : index
      %c0_21 = arith.constant 0 : index
      %26 = vector.load %arg5[%c0_20, %c0_21] : memref<128x128xbf16, #tpu.memory_space<vmem>>, vector<128x128xbf16>
      %cst_22 = arith.constant dense<0.000000e+00> : vector<256x128xf32>
      %27 = tpu.matmul %25, %26, %cst_22 {dimension_numbers = #tpu.dot_dimension_numbers<[1], [0], [0], [1], [0, 0, 1, 1], [], []>} : vector<256x128xbf16>, vector<128x128xbf16>, vector<256x128xf32> -> vector<256x128xf32>
      %28 = vector.broadcast %16 : vector<1x128xf32> to vector<256x128xf32>
      %29 = arith.addf %27, %28 : vector<256x128xf32>
      %cst_23 = arith.constant 0.000000e+00 : f32
      %30 = vector.broadcast %cst_23 : f32 to vector<256x128xf32>
      %31 = arith.maximumf %29, %30 : vector<256x128xf32>
      %32 = arith.truncf %31 : vector<256x128xf32> to vector<256x128xbf16>
      %c0_24 = arith.constant 0 : index
      %c0_25 = arith.constant 0 : index
      %33 = vector.load %arg7[%c0_24, %c0_25] : memref<128x128xbf16, #tpu.memory_space<vmem>>, vector<128x128xbf16>
      %cst_26 = arith.constant dense<0.000000e+00> : vector<256x128xf32>
      %34 = tpu.matmul %32, %33, %cst_26 {dimension_numbers = #tpu.dot_dimension_numbers<[1], [0], [0], [1], [0, 0, 1, 1], [], []>} : vector<256x128xbf16>, vector<128x128xbf16>, vector<256x128xf32> -> vector<256x128xf32>
      %35 = vector.broadcast %17 : vector<1x128xf32> to vector<256x128xf32>
      %36 = arith.addf %34, %35 : vector<256x128xf32>
      %37 = arith.addf %36, %24 : vector<256x128xf32>
      %cst_27 = arith.constant 0.000000e+00 : f32
      %38 = vector.broadcast %cst_27 : f32 to vector<256x128xf32>
      %39 = arith.maximumf %37, %38 : vector<256x128xf32>
      %cst_28 = arith.constant dense<0.000000e+00> : vector<256xf32>
      %40 = vector.multi_reduction <add>, %39, %cst_28 [1] : vector<256x128xf32> to vector<256xf32>
      %41 = vector.shape_cast %40 : vector<256xf32> to vector<256x1xf32>
      %cst_29 = arith.constant 1.562500e-02 : f32
      %42 = vector.broadcast %cst_29 : f32 to vector<256x1xf32>
      %43 = arith.mulf %41, %42 : vector<256x1xf32>
      %44 = arith.mulf %39, %39 : vector<256x128xf32>
      %cst_30 = arith.constant dense<0.000000e+00> : vector<256xf32>
      %45 = vector.multi_reduction <add>, %44, %cst_30 [1] : vector<256x128xf32> to vector<256xf32>
      %46 = vector.shape_cast %45 : vector<256xf32> to vector<256x1xf32>
      %cst_31 = arith.constant 1.562500e-02 : f32
      %47 = vector.broadcast %cst_31 : f32 to vector<256x1xf32>
      %48 = arith.mulf %46, %47 : vector<256x1xf32>
      %49 = arith.mulf %43, %43 : vector<256x1xf32>
      %50 = arith.subf %48, %49 : vector<256x1xf32>
      %cst_32 = arith.constant 0.000000e+00 : f32
      %51 = vector.broadcast %cst_32 : f32 to vector<256x1xf32>
      %52 = arith.maximumf %50, %51 : vector<256x1xf32>
      %53 = vector.broadcast %43 : vector<256x1xf32> to vector<256x128xf32>
      %54 = arith.subf %39, %53 : vector<256x128xf32>
      %cst_33 = arith.constant 9.99999974E-6 : f32
      %55 = vector.broadcast %cst_33 : f32 to vector<256x1xf32>
      %56 = arith.addf %52, %55 : vector<256x1xf32>
      %57 = math.rsqrt %56 : vector<256x1xf32>
      %58 = vector.broadcast %57 : vector<256x1xf32> to vector<256x128xf32>
      %59 = arith.mulf %54, %58 : vector<256x128xf32>
      %60 = vector.broadcast %18 : vector<1x128xf32> to vector<256x128xf32>
      %61 = arith.mulf %59, %60 : vector<256x128xf32>
      %62 = vector.broadcast %19 : vector<1x128xf32> to vector<256x128xf32>
      %63 = arith.addf %61, %62 : vector<256x128xf32>
      %64 = arith.truncf %63 : vector<256x128xf32> to vector<256x128xbf16>
      %c0_34 = arith.constant 0 : index
      %c0_35 = arith.constant 0 : index
      %65 = vector.load %arg11[%c0_34, %c0_35] : memref<256x128xbf16, #tpu.memory_space<vmem>>, vector<256x128xbf16>
      tpu.vector_store %arg11[%c0_34, %c0_35], %64 {strides = array<i32>} : memref<256x128xbf16, #tpu.memory_space<vmem>>, vector<256x128xbf16>,
    } else {
    }
    return
  }
  func.func @transform_0(%arg0: i32, %arg1: i32) -> (i32, i32) {
    %c0_i32 = arith.constant 0 : i32
    return %arg0, %arg1 : i32, i32
  }
  func.func @transform_1(%arg0: i32, %arg1: i32) -> (i32, i32) {
    %c0_i32 = arith.constant 0 : i32
    %c0_i32_0 = arith.constant 0 : i32
    %c0_i32_1 = arith.constant 0 : i32
    return %c0_i32, %c0_i32_0 : i32, i32
  }
  func.func @transform_2(%arg0: i32, %arg1: i32) -> (i32, i32) {
    %c0_i32 = arith.constant 0 : i32
    %c0_i32_0 = arith.constant 0 : i32
    %c0_i32_1 = arith.constant 0 : i32
    return %c0_i32, %c0_i32_0 : i32, i32
  }
  func.func @transform_3(%arg0: i32, %arg1: i32) -> (i32, i32) {
    %c0_i32 = arith.constant 0 : i32
    %c0_i32_0 = arith.constant 0 : i32
    %c0_i32_1 = arith.constant 0 : i32
    return %c0_i32, %c0_i32_0 : i32, i32
  }
  func.func @transform_4(%arg0: i32, %arg1: i32) -> (i32, i32) {
    %c0_i32 = arith.constant 0 : i32
    %c0_i32_0 = arith.constant 0 : i32
    %c0_i32_1 = arith.constant 0 : i32
    return %c0_i32, %c0_i32_0 : i32, i32
  }
  func.func @transform_5(%arg0: i32, %arg1: i32) -> (i32, i32) {
    %c0_i32 = arith.constant 0 : i32
    %c0_i32_0 = arith.constant 0 : i32
    %c0_i32_1 = arith.constant 0 : i32
    return %c0_i32, %c0_i32_0 : i32, i32
  }
  func.func @transform_6(%arg0: i32, %arg1: i32) -> (i32, i32) {
    %c0_i32 = arith.constant 0 : i32
    %c0_i32_0 = arith.constant 0 : i32
    %c0_i32_1 = arith.constant 0 : i32
    return %c0_i32, %c0_i32_0 : i32, i32
  }
  func.func @transform_7(%arg0: i32, %arg1: i32) -> (i32, i32) {
    %c0_i32 = arith.constant 0 : i32
    %c0_i32_0 = arith.constant 0 : i32
    %c0_i32_1 = arith.constant 0 : i32
    return %c0_i32, %c0_i32_0 : i32, i32
  }
  func.func @transform_8(%arg0: i32, %arg1: i32) -> (i32, i32) {
    %c0_i32 = arith.constant 0 : i32
    %c0_i32_0 = arith.constant 0 : i32
    %c0_i32_1 = arith.constant 0 : i32
    return %c0_i32, %c0_i32_0 : i32, i32
  }
  func.func @transform_9(%arg0: i32, %arg1: i32) -> (i32, i32) {
    %c0_i32 = arith.constant 0 : i32
    %c0_i32_0 = arith.constant 0 : i32
    return %arg0, %c0_i32 : i32, i32
  }
}

module attributes {stable_mosaic.version = 11 : i64} {
  func.func @_gcn_stage2_kernel(%arg0: i32, %arg1: i32, %arg2: memref<256x256xbf16, #tpu.memory_space<vmem>>, %arg3: memref<256x128xbf16, #tpu.memory_space<vmem>>, %arg4: memref<256x128xbf16, #tpu.memory_space<vmem>>, %arg5: memref<128x128xbf16, #tpu.memory_space<vmem>>, %arg6: memref<1x128xf32, #tpu.memory_space<vmem>>, %arg7: memref<128x128xbf16, #tpu.memory_space<vmem>>, %arg8: memref<1x128xf32, #tpu.memory_space<vmem>>, %arg9: memref<128x128xbf16, #tpu.memory_space<vmem>>, %arg10: memref<1x128xf32, #tpu.memory_space<vmem>>, %arg11: memref<1x128xf32, #tpu.memory_space<vmem>>, %arg12: memref<1x128xf32, #tpu.memory_space<vmem>>, %arg13: memref<128x128xbf16, #tpu.memory_space<vmem>>, %arg14: memref<1x128xf32, #tpu.memory_space<vmem>>, %arg15: memref<256x128xf32, #tpu.memory_space<vmem>>, %arg16: memref<256x128xf32, #tpu.memory_space<vmem>>) attributes {dimension_semantics = [#tpu.dimension_semantics<parallel>, #tpu.dimension_semantics<arbitrary>], iteration_bounds = array<i64: 1, 1>, scalar_prefetch = 0 : i64, scratch_operands = 1 : i64, tpu.core_type = #tpu.core_type<tc>, window_params = [{transform_indices = @transform_0, window_bounds = array<i64: 256, 256>}, {pipeline_mode = #tpu.pipeline_mode<synchronous>, transform_indices = @transform_1, window_bounds = array<i64: 256, 128>}, {transform_indices = @transform_2, window_bounds = array<i64: 256, 128>}, {pipeline_mode = #tpu.pipeline_mode<synchronous>, transform_indices = @transform_3, window_bounds = array<i64: 128, 128>}, {pipeline_mode = #tpu.pipeline_mode<synchronous>, transform_indices = @transform_4, window_bounds = array<i64: 1, 128>}, {pipeline_mode = #tpu.pipeline_mode<synchronous>, transform_indices = @transform_5, window_bounds = array<i64: 128, 128>}, {pipeline_mode = #tpu.pipeline_mode<synchronous>, transform_indices = @transform_6, window_bounds = array<i64: 1, 128>}, {pipeline_mode = #tpu.pipeline_mode<synchronous>, transform_indices = @transform_7, window_bounds = array<i64: 128, 128>}, {pipeline_mode = #tpu.pipeline_mode<synchronous>, transform_indices = @transform_8, window_bounds = array<i64: 1, 128>}, {pipeline_mode = #tpu.pipeline_mode<synchronous>, transform_indices = @transform_9, window_bounds = array<i64: 1, 128>}, {pipeline_mode = #tpu.pipeline_mode<synchronous>, transform_indices = @transform_10, window_bounds = array<i64: 1, 128>}, {pipeline_mode = #tpu.pipeline_mode<synchronous>, transform_indices = @transform_11, window_bounds = array<i64: 128, 128>}, {pipeline_mode = #tpu.pipeline_mode<synchronous>, transform_indices = @transform_12, window_bounds = array<i64: 1, 128>}, {transform_indices = @transform_13, window_bounds = array<i64: 256, 128>}]} {
    %c256_i32 = arith.constant 256 : i32
    %0 = arith.muli %arg1, %c256_i32 : i32
    %1 = tpu.assume_multiple %0, 256 : i32
    %2 = arith.index_cast %1 : i32 to index
    %c0 = arith.constant 0 : index
    %3 = vector.load %arg3[%2, %c0] : memref<256x128xbf16, #tpu.memory_space<vmem>>, vector<256x128xbf16>
    %c0_0 = arith.constant 0 : index
    %c0_1 = arith.constant 0 : index
    %4 = vector.load %arg2[%c0_0, %c0_1] : memref<256x256xbf16, #tpu.memory_space<vmem>>, vector<256x256xbf16>
    %cst = arith.constant dense<0.000000e+00> : vector<256x128xf32>
    %5 = tpu.matmul %4, %3, %cst {dimension_numbers = #tpu.dot_dimension_numbers<[1], [0], [0], [1], [0, 0, 1, 1], [], []>} : vector<256x256xbf16>, vector<256x128xbf16>, vector<256x128xf32> -> vector<256x128xf32>
    %c0_i32 = arith.constant 0 : i32
    %6 = arith.cmpi eq, %arg1, %c0_i32 : i32
    %7 = arith.extui %6 : i1 to i32
    %c0_i32_2 = arith.constant 0 : i32
    %8 = arith.cmpi ne, %7, %c0_i32_2 : i32
    scf.if %8 {
      %c0_7 = arith.constant 0 : index
      %c0_8 = arith.constant 0 : index
      %15 = vector.load %arg16[%c0_7, %c0_8] : memref<256x128xf32, #tpu.memory_space<vmem>>, vector<256x128xf32>
      tpu.vector_store %arg16[%c0_7, %c0_8], %5 {strides = array<i32>} : memref<256x128xf32, #tpu.memory_space<vmem>>, vector<256x128xf32>,
    } else {
    }
    %c0_i32_3 = arith.constant 0 : i32
    %9 = arith.cmpi sgt, %arg1, %c0_i32_3 : i32
    %10 = arith.extui %9 : i1 to i32
    %c0_i32_4 = arith.constant 0 : i32
    %11 = arith.cmpi ne, %10, %c0_i32_4 : i32
    scf.if %11 {
      %c0_7 = arith.constant 0 : index
      %c0_8 = arith.constant 0 : index
      %15 = vector.load %arg16[%c0_7, %c0_8] : memref<256x128xf32, #tpu.memory_space<vmem>>, vector<256x128xf32>
      %16 = arith.addf %15, %5 : vector<256x128xf32>
      %c0_9 = arith.constant 0 : index
      %c0_10 = arith.constant 0 : index
      %17 = vector.load %arg16[%c0_9, %c0_10] : memref<256x128xf32, #tpu.memory_space<vmem>>, vector<256x128xf32>
      tpu.vector_store %arg16[%c0_9, %c0_10], %16 {strides = array<i32>} : memref<256x128xf32, #tpu.memory_space<vmem>>, vector<256x128xf32>,
    } else {
    }
    %c0_i32_5 = arith.constant 0 : i32
    %12 = arith.cmpi eq, %arg1, %c0_i32_5 : i32
    %13 = arith.extui %12 : i1 to i32
    %c0_i32_6 = arith.constant 0 : i32
    %14 = arith.cmpi ne, %13, %c0_i32_6 : i32
    scf.if %14 {
      %c0_7 = arith.constant 0 : index
      %c0_8 = arith.constant 0 : index
      %15 = vector.load %arg6[%c0_7, %c0_8] : memref<1x128xf32, #tpu.memory_space<vmem>>, vector<1x128xf32>
      %c0_9 = arith.constant 0 : index
      %c0_10 = arith.constant 0 : index
      %16 = vector.load %arg8[%c0_9, %c0_10] : memref<1x128xf32, #tpu.memory_space<vmem>>, vector<1x128xf32>
      %c0_11 = arith.constant 0 : index
      %c0_12 = arith.constant 0 : index
      %17 = vector.load %arg10[%c0_11, %c0_12] : memref<1x128xf32, #tpu.memory_space<vmem>>, vector<1x128xf32>
      %c0_13 = arith.constant 0 : index
      %c0_14 = arith.constant 0 : index
      %18 = vector.load %arg11[%c0_13, %c0_14] : memref<1x128xf32, #tpu.memory_space<vmem>>, vector<1x128xf32>
      %c0_15 = arith.constant 0 : index
      %c0_16 = arith.constant 0 : index
      %19 = vector.load %arg12[%c0_15, %c0_16] : memref<1x128xf32, #tpu.memory_space<vmem>>, vector<1x128xf32>
      %c0_17 = arith.constant 0 : index
      %c0_18 = arith.constant 0 : index
      %20 = vector.load %arg14[%c0_17, %c0_18] : memref<1x128xf32, #tpu.memory_space<vmem>>, vector<1x128xf32>
      %c0_19 = arith.constant 0 : index
      %c0_20 = arith.constant 0 : index
      %21 = vector.load %arg16[%c0_19, %c0_20] : memref<256x128xf32, #tpu.memory_space<vmem>>, vector<256x128xf32>
      %22 = arith.truncf %21 : vector<256x128xf32> to vector<256x128xbf16>
      %c0_21 = arith.constant 0 : index
      %c0_22 = arith.constant 0 : index
      %23 = vector.load %arg5[%c0_21, %c0_22] : memref<128x128xbf16, #tpu.memory_space<vmem>>, vector<128x128xbf16>
      %cst_23 = arith.constant dense<0.000000e+00> : vector<256x128xf32>
      %24 = tpu.matmul %22, %23, %cst_23 {dimension_numbers = #tpu.dot_dimension_numbers<[1], [0], [0], [1], [0, 0, 1, 1], [], []>} : vector<256x128xbf16>, vector<128x128xbf16>, vector<256x128xf32> -> vector<256x128xf32>
      %25 = vector.broadcast %15 : vector<1x128xf32> to vector<256x128xf32>
      %26 = arith.addf %24, %25 : vector<256x128xf32>
      %27 = arith.truncf %26 : vector<256x128xf32> to vector<256x128xbf16>
      %c0_24 = arith.constant 0 : index
      %c0_25 = arith.constant 0 : index
      %28 = vector.load %arg7[%c0_24, %c0_25] : memref<128x128xbf16, #tpu.memory_space<vmem>>, vector<128x128xbf16>
      %cst_26 = arith.constant dense<0.000000e+00> : vector<256x128xf32>
      %29 = tpu.matmul %27, %28, %cst_26 {dimension_numbers = #tpu.dot_dimension_numbers<[1], [0], [0], [1], [0, 0, 1, 1], [], []>} : vector<256x128xbf16>, vector<128x128xbf16>, vector<256x128xf32> -> vector<256x128xf32>
      %30 = vector.broadcast %16 : vector<1x128xf32> to vector<256x128xf32>
      %31 = arith.addf %29, %30 : vector<256x128xf32>
      %cst_27 = arith.constant 0.000000e+00 : f32
      %32 = vector.broadcast %cst_27 : f32 to vector<256x128xf32>
      %33 = arith.maximumf %31, %32 : vector<256x128xf32>
      %34 = arith.truncf %33 : vector<256x128xf32> to vector<256x128xbf16>
      %c0_28 = arith.constant 0 : index
      %c0_29 = arith.constant 0 : index
      %35 = vector.load %arg9[%c0_28, %c0_29] : memref<128x128xbf16, #tpu.memory_space<vmem>>, vector<128x128xbf16>
      %cst_30 = arith.constant dense<0.000000e+00> : vector<256x128xf32>
      %36 = tpu.matmul %34, %35, %cst_30 {dimension_numbers = #tpu.dot_dimension_numbers<[1], [0], [0], [1], [0, 0, 1, 1], [], []>} : vector<256x128xbf16>, vector<128x128xbf16>, vector<256x128xf32> -> vector<256x128xf32>
      %37 = vector.broadcast %17 : vector<1x128xf32> to vector<256x128xf32>
      %38 = arith.addf %36, %37 : vector<256x128xf32>
      %c0_31 = arith.constant 0 : index
      %c0_32 = arith.constant 0 : index
      %39 = vector.load %arg4[%c0_31, %c0_32] : memref<256x128xbf16, #tpu.memory_space<vmem>>, vector<256x128xbf16>
      %40 = arith.extf %39 : vector<256x128xbf16> to vector<256x128xf32>
      %41 = arith.addf %38, %40 : vector<256x128xf32>
      %cst_33 = arith.constant dense<0.000000e+00> : vector<256xf32>
      %42 = vector.multi_reduction <add>, %41, %cst_33 [1] : vector<256x128xf32> to vector<256xf32>
      %43 = vector.shape_cast %42 : vector<256xf32> to vector<256x1xf32>
      %cst_34 = arith.constant 1.562500e-02 : f32
      %44 = vector.broadcast %cst_34 : f32 to vector<256x1xf32>
      %45 = arith.mulf %43, %44 : vector<256x1xf32>
      %46 = arith.mulf %41, %41 : vector<256x128xf32>
      %cst_35 = arith.constant dense<0.000000e+00> : vector<256xf32>
      %47 = vector.multi_reduction <add>, %46, %cst_35 [1] : vector<256x128xf32> to vector<256xf32>
      %48 = vector.shape_cast %47 : vector<256xf32> to vector<256x1xf32>
      %cst_36 = arith.constant 1.562500e-02 : f32
      %49 = vector.broadcast %cst_36 : f32 to vector<256x1xf32>
      %50 = arith.mulf %48, %49 : vector<256x1xf32>
      %51 = arith.mulf %45, %45 : vector<256x1xf32>
      %52 = arith.subf %50, %51 : vector<256x1xf32>
      %cst_37 = arith.constant 0.000000e+00 : f32
      %53 = vector.broadcast %cst_37 : f32 to vector<256x1xf32>
      %54 = arith.maximumf %52, %53 : vector<256x1xf32>
      %55 = vector.broadcast %45 : vector<256x1xf32> to vector<256x128xf32>
      %56 = arith.subf %41, %55 : vector<256x128xf32>
      %cst_38 = arith.constant 9.99999974E-6 : f32
      %57 = vector.broadcast %cst_38 : f32 to vector<256x1xf32>
      %58 = arith.addf %54, %57 : vector<256x1xf32>
      %59 = math.rsqrt %58 : vector<256x1xf32>
      %60 = vector.broadcast %59 : vector<256x1xf32> to vector<256x128xf32>
      %61 = arith.mulf %56, %60 : vector<256x128xf32>
      %62 = vector.broadcast %18 : vector<1x128xf32> to vector<256x128xf32>
      %63 = arith.mulf %61, %62 : vector<256x128xf32>
      %64 = vector.broadcast %19 : vector<1x128xf32> to vector<256x128xf32>
      %65 = arith.addf %63, %64 : vector<256x128xf32>
      %66 = arith.truncf %65 : vector<256x128xf32> to vector<256x128xbf16>
      %c0_39 = arith.constant 0 : index
      %c0_40 = arith.constant 0 : index
      %67 = vector.load %arg13[%c0_39, %c0_40] : memref<128x128xbf16, #tpu.memory_space<vmem>>, vector<128x128xbf16>
      %cst_41 = arith.constant dense<0.000000e+00> : vector<256x128xf32>
      %68 = tpu.matmul %66, %67, %cst_41 {dimension_numbers = #tpu.dot_dimension_numbers<[1], [0], [0], [1], [0, 0, 1, 1], [], []>} : vector<256x128xbf16>, vector<128x128xbf16>, vector<256x128xf32> -> vector<256x128xf32>
      %69 = vector.broadcast %20 : vector<1x128xf32> to vector<256x128xf32>
      %70 = arith.addf %68, %69 : vector<256x128xf32>
      %cst_42 = arith.constant dense<0xFF800000> : vector<256xf32>
      %71 = vector.multi_reduction <maximumf>, %70, %cst_42 [1] : vector<256x128xf32> to vector<256xf32>
      %72 = vector.shape_cast %71 : vector<256xf32> to vector<256x1xf32>
      %73 = vector.broadcast %72 : vector<256x1xf32> to vector<256x128xf32>
      %74 = arith.subf %70, %73 : vector<256x128xf32>
      %75 = math.exp %74 : vector<256x128xf32>
      %cst_43 = arith.constant dense<0.000000e+00> : vector<256xf32>
      %76 = vector.multi_reduction <add>, %75, %cst_43 [1] : vector<256x128xf32> to vector<256xf32>
      %77 = vector.shape_cast %76 : vector<256xf32> to vector<256x1xf32>
      %78 = math.log %77 : vector<256x1xf32>
      %79 = vector.broadcast %78 : vector<256x1xf32> to vector<256x128xf32>
      %80 = arith.subf %74, %79 : vector<256x128xf32>
      %c0_44 = arith.constant 0 : index
      %c0_45 = arith.constant 0 : index
      %81 = vector.load %arg15[%c0_44, %c0_45] : memref<256x128xf32, #tpu.memory_space<vmem>>, vector<256x128xf32>
      tpu.vector_store %arg15[%c0_44, %c0_45], %80 {strides = array<i32>} : memref<256x128xf32, #tpu.memory_space<vmem>>, vector<256x128xf32>,
    } else {
    }
    return
  }
  func.func @transform_0(%arg0: i32, %arg1: i32) -> (i32, i32) {
    %c0_i32 = arith.constant 0 : i32
    return %arg0, %arg1 : i32, i32
  }
  func.func @transform_1(%arg0: i32, %arg1: i32) -> (i32, i32) {
    %c0_i32 = arith.constant 0 : i32
    %c0_i32_0 = arith.constant 0 : i32
    %c0_i32_1 = arith.constant 0 : i32
    return %c0_i32, %c0_i32_0 : i32, i32
  }
  func.func @transform_2(%arg0: i32, %arg1: i32) -> (i32, i32) {
    %c0_i32 = arith.constant 0 : i32
    %c0_i32_0 = arith.constant 0 : i32
    return %arg0, %c0_i32 : i32, i32
  }
  func.func @transform_3(%arg0: i32, %arg1: i32) -> (i32, i32) {
    %c0_i32 = arith.constant 0 : i32
    %c0_i32_0 = arith.constant 0 : i32
    %c0_i32_1 = arith.constant 0 : i32
    return %c0_i32, %c0_i32_0 : i32, i32
  }
  func.func @transform_4(%arg0: i32, %arg1: i32) -> (i32, i32) {
    %c0_i32 = arith.constant 0 : i32
    %c0_i32_0 = arith.constant 0 : i32
    %c0_i32_1 = arith.constant 0 : i32
    return %c0_i32, %c0_i32_0 : i32, i32
  }
  func.func @transform_5(%arg0: i32, %arg1: i32) -> (i32, i32) {
    %c0_i32 = arith.constant 0 : i32
    %c0_i32_0 = arith.constant 0 : i32
    %c0_i32_1 = arith.constant 0 : i32
    return %c0_i32, %c0_i32_0 : i32, i32
  }
  func.func @transform_6(%arg0: i32, %arg1: i32) -> (i32, i32) {
    %c0_i32 = arith.constant 0 : i32
    %c0_i32_0 = arith.constant 0 : i32
    %c0_i32_1 = arith.constant 0 : i32
    return %c0_i32, %c0_i32_0 : i32, i32
  }
  func.func @transform_7(%arg0: i32, %arg1: i32) -> (i32, i32) {
    %c0_i32 = arith.constant 0 : i32
    %c0_i32_0 = arith.constant 0 : i32
    %c0_i32_1 = arith.constant 0 : i32
    return %c0_i32, %c0_i32_0 : i32, i32
  }
  func.func @transform_8(%arg0: i32, %arg1: i32) -> (i32, i32) {
    %c0_i32 = arith.constant 0 : i32
    %c0_i32_0 = arith.constant 0 : i32
    %c0_i32_1 = arith.constant 0 : i32
    return %c0_i32, %c0_i32_0 : i32, i32
  }
  func.func @transform_9(%arg0: i32, %arg1: i32) -> (i32, i32) {
    %c0_i32 = arith.constant 0 : i32
    %c0_i32_0 = arith.constant 0 : i32
    %c0_i32_1 = arith.constant 0 : i32
    return %c0_i32, %c0_i32_0 : i32, i32
  }
  func.func @transform_10(%arg0: i32, %arg1: i32) -> (i32, i32) {
    %c0_i32 = arith.constant 0 : i32
    %c0_i32_0 = arith.constant 0 : i32
    %c0_i32_1 = arith.constant 0 : i32
    return %c0_i32, %c0_i32_0 : i32, i32
  }
  func.func @transform_11(%arg0: i32, %arg1: i32) -> (i32, i32) {
    %c0_i32 = arith.constant 0 : i32
    %c0_i32_0 = arith.constant 0 : i32
    %c0_i32_1 = arith.constant 0 : i32
    return %c0_i32, %c0_i32_0 : i32, i32
  }
  func.func @transform_12(%arg0: i32, %arg1: i32) -> (i32, i32) {
    %c0_i32 = arith.constant 0 : i32
    %c0_i32_0 = arith.constant 0 : i32
    %c0_i32_1 = arith.constant 0 : i32
    return %c0_i32, %c0_i32_0 : i32, i32
  }
  func.func @transform_13(%arg0: i32, %arg1: i32) -> (i32, i32) {
    %c0_i32 = arith.constant 0 : i32
    %c0_i32_0 = arith.constant 0 : i32
    return %arg0, %c0_i32 : i32, i32
  }
}

</mosaic_0001>

<bundles_post_ra>
// kernel: gcn_forward.3
= control target key start
LH: loop header
LB: loop body
LE: loop exit
PB: predicated region body
PF: predicated region fallthrough
CT: control target
= control target key end

     0   :  { %s4828_s1 = inlined_call_operand.vmem [shape: bf16[256,128], index: 1, kind: input, shape index: {}, may-alias: {1,2}]   ;;  %s4829_s0 = inlined_call_operand.vmem [shape: bf16[256,256], index: 0, kind: input, shape index: {}]   ;;  %s4830_s3 = inlined_call_operand.vmem [shape: bf16[128,128], index: 3, kind: input, shape index: {}]   ;;  %s4831_s5 = inlined_call_operand.vmem [shape: bf16[128,128], index: 5, kind: input, shape index: {}]   ;;  %s4832_s7 = inlined_call_operand.vmem [shape: bf16[128,128], index: 7, kind: input, shape index: {}]   ;;  %s4833_s4 = inlined_call_operand.vmem [shape: f32[1,128], index: 4, kind: input, shape index: {}]   ;;  %s4834_s6 = inlined_call_operand.vmem [shape: f32[1,128], index: 6, kind: input, shape index: {}]   ;;  %s4835_s2 = inlined_call_operand.vmem [shape: bf16[256,128], index: 2, kind: input, shape index: {}, may-alias: {1,2}]   ;;  %s4836_s8 = inlined_call_operand.vmem [shape: f32[1,128], index: 8, kind: input, shape index: {}]   ;;  %s4837_s11 = inlined_call_operand.vmem [shape: bf16[128,128], index: 11, kind: input, shape index: {}]   ;;  %s4838_s9 = inlined_call_operand.vmem [shape: f32[1,128], index: 9, kind: input, shape index: {}]   ;;  %s4839_s10 = inlined_call_operand.vmem [shape: f32[1,128], index: 10, kind: input, shape index: {}]   ;;  %s4840_s12 = inlined_call_operand.vmem [shape: f32[1,128], index: 12, kind: input, shape index: {}]   ;;  %s4841_s13 = inlined_call_operand.vmem [shape: f32[256,128], index: 13, kind: output, shape index: {}]  }
   0x1   :  { %v3271_v0 = vld [vmem:[%s4828_s1 + $0x40] sm:$0xff]   ;;  %v3273_v2 = vld [vmem:[%s4828_s1 + $0x48] sm:$0xff]   ;;  %v3275_v4 = vld [vmem:[%s4828_s1 + $0x50] sm:$0xff]  }
   0x2   :  { %v3272_v1 = vld [vmem:[%s4828_s1] sm:$0xff]   ;;  %2871 = vmatprep.subr.bf16.mxu0 %v3271_v0  ;;  %v3274_v3 = vld [vmem:[%s4828_s1 + $0x8] sm:$0xff]   ;;  %v3276_v5 = vld [vmem:[%s4828_s1 + $0x10] sm:$0xff]  }
   0x3   :  { %2872 = vmatpush3.bf16.msra.mxu0 %v3272_v1  ;;  %v3277_v6 = vld [vmem:[%s4828_s1 + $0x58] sm:$0xff]   ;;  %v3279_v8 = vld [vmem:[%s4828_s1 + $0x60] sm:$0xff]   ;;  %v3281_v10 = vld [vmem:[%s4828_s1 + $0x68] sm:$0xff]  }
   0x4   :  { %2873 = vmatprep.subr.bf16.mxu0 %v3273_v2  ;;  %v3278_v7 = vld [vmem:[%s4828_s1 + $0x18] sm:$0xff]   ;;  %v3280_v9 = vld [vmem:[%s4828_s1 + $0x20] sm:$0xff]   ;;  %v3282_v12 = vld [vmem:[%s4828_s1 + $0x28] sm:$0xff]  }
   0x5   :  { %v3289_v11 = vld [vmem:[%s4829_s0 + $0x4] ss:$8 sps:$4 sm:$0xff]   ;;  %v3283_v13 = vld [vmem:[%s4828_s1 + $0x70] sm:$0xff]   ;;  %v3285_v15 = vld [vmem:[%s4828_s1 + $0x78] sm:$0xff]  }
   0x6   :  { %402 = vmatprep.mubr.bf16.mxu0 %v3289_v11  ;;  %v3284_v14 = vld [vmem:[%s4828_s1 + $0x30] sm:$0xff]   ;;  %v3286_v16 = vld [vmem:[%s4828_s1 + $0x38] sm:$0xff]   ;;  %v3287_v17 = vld [vmem:[%s4829_s0] ss:$8 sps:$4 sm:$0xff]  }
   0x7   :  { %2874 = vmatpush3.bf16.msra.mxu0 %v3274_v3  ;;  %v3290_v18 = vld [vmem:[%s4829_s0 + $0x14] ss:$8 sps:$4 sm:$0xff]   ;;  %v3292_v19 = vld [vmem:[%s4829_s0 + $0x10] ss:$8 sps:$4 sm:$0xff]   ;;  %v3293_v20 = vld [vmem:[%s4829_s0 + $0x24] ss:$8 sps:$4 sm:$0xff]  }
   0x8   :  { %2875 = vmatprep.subr.bf16.mxu0 %v3275_v4  ;;  %v3335_v21 = vld [vmem:[%s4830_s3] sm:$0xff]   ;;  %v3336_v22 = vld [vmem:[%s4830_s3 + $0x8] sm:$0xff]   ;;  %v3337_v23 = vld [vmem:[%s4830_s3 + $0x10] sm:$0xff]  }
   0x9   :  { %3079 = vmatprep.subr.bf16.mxu1 %v3335_v21  ;;  %v3295_v24 = vld [vmem:[%s4829_s0 + $0x20] ss:$8 sps:$4 sm:$0xff]   ;;  %v3338_v25 = vld [vmem:[%s4830_s3 + $0x18] sm:$0xff]   ;;  %v3299_v28 = vld [vmem:[%s4829_s0 + $0x44] ss:$8 sps:$4 sm:$0xff]  }
   0xa   :  { %3080 = vmatpush3.bf16.msra.mxu1 %v3335_v21  ;;  %v3296_v26 = vld [vmem:[%s4829_s0 + $0x34] ss:$8 sps:$4 sm:$0xff]   ;;  %v3298_v27 = vld [vmem:[%s4829_s0 + $0x30] ss:$8 sps:$4 sm:$0xff]   ;;  %v3301_v29 = vld [vmem:[%s4829_s0 + $0x40] ss:$8 sps:$4 sm:$0xff]  }
   0xb   :  { %2876 = vmatpush3.bf16.msra.mxu0 %v3276_v5  ;;  %3081 = vmatprep.subr.bf16.mxu1 %v3336_v22  ;;  %v3302_v30 = vld [vmem:[%s4829_s0 + $0x54] ss:$8 sps:$4 sm:$0xff]   ;;  %v3304_v31 = vld [vmem:[%s4829_s0 + $0x50] ss:$8 sps:$4 sm:$0xff]   ;;  %v3305_v32 = vld [vmem:[%s4829_s0 + $0x64] ss:$8 sps:$4 sm:$0xff]  }
   0xc   :  { %2877 = vmatprep.subr.bf16.mxu0 %v3277_v6  ;;  %v3307_v33 = vld [vmem:[%s4829_s0 + $0x60] ss:$8 sps:$4 sm:$0xff]   ;;  %v3308_v34 = vld [vmem:[%s4829_s0 + $0x74] ss:$8 sps:$4 sm:$0xff]   ;;  %v3310_v35 = vld [vmem:[%s4829_s0 + $0x70] ss:$8 sps:$4 sm:$0xff]  }
   0xd   :  { %v3311_v36 = vld [vmem:[%s4829_s0 + $0x84] ss:$8 sps:$4 sm:$0xff]   ;;  %v3313_v37 = vld [vmem:[%s4829_s0 + $0x80] ss:$8 sps:$4 sm:$0xff]   ;;  %v3314_v38 = vld [vmem:[%s4829_s0 + $0x94] ss:$8 sps:$4 sm:$0xff]  }
   0xe   :  { %3082 = vmatpush3.bf16.msra.mxu1 %v3336_v22  ;;  %v3316_v39 = vld [vmem:[%s4829_s0 + $0x90] ss:$8 sps:$4 sm:$0xff]   ;;  %v3317_v40 = vld [vmem:[%s4829_s0 + $0xa4] ss:$8 sps:$4 sm:$0xff]   ;;  %v3319_v41 = vld [vmem:[%s4829_s0 + $0xa0] ss:$8 sps:$4 sm:$0xff]  }
   0xf   :  { %2878 = vmatpush3.bf16.msra.mxu0 %v3278_v7  ;;  %3083 = vmatprep.subr.bf16.mxu1 %v3337_v23  ;;  %v3320_v42 = vld [vmem:[%s4829_s0 + $0xb4] ss:$8 sps:$4 sm:$0xff]   ;;  %v3339_v43 = vld [vmem:[%s4830_s3 + $0x20] sm:$0xff]   ;;  %v3322_v44 = vld [vmem:[%s4829_s0 + $0xb0] ss:$8 sps:$4 sm:$0xff]  }
  0x10   :  { %2879 = vmatprep.subr.bf16.mxu0 %v3279_v8  ;;  %v3323_v45 = vld [vmem:[%s4829_s0 + $0xc4] ss:$8 sps:$4 sm:$0xff]   ;;  %v3341_v47 = vld [vmem:[%s4830_s3 + $0x30] sm:$0xff]   ;;  %v3325_v48 = vld [vmem:[%s4829_s0 + $0xc0] ss:$8 sps:$4 sm:$0xff]  }
  0x11   :  { %v3340_v46 = vld [vmem:[%s4830_s3 + $0x28] sm:$0xff]   ;;  %v3326_v49 = vld [vmem:[%s4829_s0 + $0xd4] ss:$8 sps:$4 sm:$0xff]   ;;  %v3328_v51 = vld [vmem:[%s4829_s0 + $0xd0] ss:$8 sps:$4 sm:$0xff]  }
  0x12   :  { %3084 = vmatpush3.bf16.msra.mxu1 %v3337_v23  ;;  %v3342_v50 = vld [vmem:[%s4830_s3 + $0x38] sm:$0xff]   ;;  %v3329_v52 = vld [vmem:[%s4829_s0 + $0xe4] ss:$8 sps:$4 sm:$0xff]   ;;  %v3331_v53 = vld [vmem:[%s4829_s0 + $0xe0] ss:$8 sps:$4 sm:$0xff]  }
  0x13   :  { %2880 = vmatpush3.bf16.msra.mxu0 %v3280_v9  ;;  %3085 = vmatprep.subr.bf16.mxu1 %v3338_v25  ;;  %v3332_v54 = vld [vmem:[%s4829_s0 + $0xf4] ss:$8 sps:$4 sm:$0xff]   ;;  %v3334_v55 = vld [vmem:[%s4829_s0 + $0xf0] ss:$8 sps:$4 sm:$0xff]   ;;  %v3343_v58 = vld [vmem:[%s4831_s5] sm:$0xff]  }
  0x14   :  { %2881 = vmatprep.subr.bf16.mxu0 %v3281_v10  ;;  %v3344_v7 = vld [vmem:[%s4831_s5 + $0x8] sm:$0xff]   ;;  %v3347_v21 = vld [vmem:[%s4831_s5 + $0x20] sm:$0xff]  }
  0x16   :  { %3086 = vmatpush3.bf16.msra.mxu1 %v3338_v25  ;;  %v3348_v25 = vld [vmem:[%s4831_s5 + $0x28] sm:$0xff]  }
  0x17   :  { %2882 = vmatpush3.bf16.msra.mxu0 %v3282_v12  ;;  %3087 = vmatprep.subr.bf16.mxu1 %v3339_v43  ;;  %v3345_v12 = vld [vmem:[%s4831_s5 + $0x10] sm:$0xff]  }
  0x18   :  { %2883 = vmatprep.subr.bf16.mxu0 %v3283_v13 }
  0x1a   :  { %3088 = vmatpush3.bf16.msra.mxu1 %v3339_v43 }
  0x1b   :  { %2884 = vmatpush3.bf16.msra.mxu0 %v3284_v14  ;;  %3089 = vmatprep.subr.bf16.mxu1 %v3340_v46 }
  0x1c   :  { %2885 = vmatprep.subr.bf16.mxu0 %v3285_v15 }
  0x1e   :  { %3090 = vmatpush3.bf16.msra.mxu1 %v3340_v46 }
  0x1f   :  { %2886 = vmatpush3.bf16.msra.mxu0 %v3286_v16  ;;  %3091 = vmatprep.subr.bf16.mxu1 %v3341_v47  ;;  %v3346_v16 = vld [vmem:[%s4831_s5 + $0x18] sm:$0xff]  }
  0x22   :  { %403 = vmatmul.mubr.bf16.vlgmr.msra.gmra.mrb[0].mxu0 %v3287_v17  ;;  %3092 = vmatpush3.bf16.msra.mxu1 %v3341_v47 }
  0x23   :  { %410 = vmatprep.mubr.bf16.mxu0 %v3290_v18  ;;  %3093 = vmatprep.subr.bf16.mxu1 %v3342_v50 }
  0x26   :  { %3094 = vmatpush3.bf16.msra.mxu1 %v3342_v50 }
  0x27   :  { %3127 = vmatprep.subr.bf16.mxu1 %v3343_v58 }
  0x2a   :  { %411 = vmatmul.mubr.bf16.gmra.mrb[4].mxu0 %v3292_v19 }
  0x2b   :  { %418 = vmatprep.mubr.bf16.mxu0 %v3293_v20 }
  0x32   :  { %419 = vmatmul.mubr.bf16.gmra.mrb[8].mxu0 %v3295_v24 }
  0x33   :  { %426 = vmatprep.mubr.bf16.mxu0 %v3296_v26 }
  0x3a   :  { %427 = vmatmul.mubr.bf16.gmra.mrb[12].mxu0 %v3298_v27 }
  0x3b   :  { %434 = vmatprep.mubr.bf16.mxu0 %v3299_v28 }
  0x42   :  { %435 = vmatmul.mubr.bf16.gmra.mrb[16].mxu0 %v3301_v29 }
  0x43   :  { %442 = vmatprep.mubr.bf16.mxu0 %v3302_v30  ;;  %v3349_v30 = vld [vmem:[%s4831_s5 + $0x30] sm:$0xff]  }
  0x4a   :  { %443 = vmatmul.mubr.bf16.gmra.mrb[20].mxu0 %v3304_v31 }
  0x4b   :  { %450 = vmatprep.mubr.bf16.mxu0 %v3305_v32 }
  0x52   :  { %451 = vmatmul.mubr.bf16.gmra.mrb[24].mxu0 %v3307_v33 }
  0x53   :  { %458 = vmatprep.mubr.bf16.mxu0 %v3308_v34 }
  0x5a   :  { %459 = vmatmul.mubr.bf16.gmra.mrb[28].mxu0 %v3310_v35 }
  0x5b   :  { %466 = vmatprep.mubr.bf16.mxu0 %v3311_v36 }
  0x62   :  { %467 = vmatmul.mubr.bf16.gmra.mrb[32].mxu0 %v3313_v37 }
  0x63   :  { %474 = vmatprep.mubr.bf16.mxu0 %v3314_v38 }
  0x6a   :  { %475 = vmatmul.mubr.bf16.gmra.mrb[36].mxu0 %v3316_v39 }
  0x6b   :  { %482 = vmatprep.mubr.bf16.mxu0 %v3317_v40 }
  0x72   :  { %483 = vmatmul.mubr.bf16.gmra.mrb[40].mxu0 %v3319_v41 }
  0x73   :  { %490 = vmatprep.mubr.bf16.mxu0 %v3320_v42 }
  0x7a   :  { %491 = vmatmul.mubr.bf16.gmra.mrb[44].mxu0 %v3322_v44 }
  0x7b   :  { %498 = vmatprep.mubr.bf16.mxu0 %v3323_v45 }
  0x82   :  { %499 = vmatmul.mubr.bf16.gmra.mrb[48].mxu0 %v3325_v48 }
  0x83   :  { %506 = vmatprep.mubr.bf16.mxu0 %v3326_v49 }
  0x8a   :  { %507 = vmatmul.mubr.bf16.gmra.mrb[52].mxu0 %v3328_v51 }
  0x8b   :  { %514 = vmatprep.mubr.bf16.mxu0 %v3329_v52 }
  0x92   :  { %515 = vmatmul.mubr.bf16.gmra.mrb[56].mxu0 %v3331_v53 }
  0x93   :  { %522 = vmatprep.mubr.bf16.mxu0 %v3332_v54 }
  0x9a   :  { %523 = vmatmul.mubr.bf16.gmra.mrb[60].mxu0 %v3334_v55 }
  0xf5   :  { %v2887_v56 = vpop.f32.mrb[0].mxu0 }
  0xf6   :  { %v2888_v57 = vpop.f32.mrb[1].mxu0 }
  0xf7   :  { %v2889_v59 = vadd.f32 %v2888_v57, %v2887_v56  ;;  %v2890_v60 = vpop.f32.mrb[2].mxu0 }
  0xf8   :  { %v2891_v61 = vpop.f32.mrb[3].mxu0 }
  0xf9   :  { %v2892_v62 = vadd.f32 %v2891_v61, %v2890_v60 }
  0xfb   :  { %v708_v63 = vpack.c.bf16 %v2892_v62, %v2889_v59 }
  0xfd   :  { %v2893_v0 = vpop.f32.mrb[4].mxu0  ;;  %3095 = vmatprep.mubr.bf16.mxu1 %v708_v63 }
  0xfe   :  { %v2894_v1 = vpop.f32.mrb[5].mxu0 }
  0xff   :  { %v2895_v2 = vadd.f32 %v2894_v1, %v2893_v0  ;;  %v2896_v3 = vpop.f32.mrb[6].mxu0 }
 0x100   :  { %v2897_v4 = vpop.f32.mrb[7].mxu0 }
 0x101   :  { %v2898_v5 = vadd.f32 %v2897_v4, %v2896_v3 }
 0x103   :  { %v709_v6 = vpack.c.bf16 %v2898_v5, %v2895_v2 }
 0x105   :  { %v2899_v8 = vpop.f32.mrb[8].mxu0  ;;  %3096 = vmatmul.mubr.bf16.vlgmr.msra.gmra.mrb[0].mxu1 %v709_v6 }
 0x106   :  { %v2900_v9 = vpop.f32.mrb[9].mxu0  ;;  %3128 = vmatpush3.bf16.msra.mxu1 %v3343_v58 }
 0x107   :  { %v2901_v10 = vadd.f32 %v2900_v9, %v2899_v8  ;;  %v2902_v11 = vpop.f32.mrb[10].mxu0  ;;  %3129 = vmatprep.subr.bf16.mxu1 %v3344_v7 }
 0x108   :  { %v2903_v13 = vpop.f32.mrb[11].mxu0 }
 0x109   :  { %v2904_v14 = vadd.f32 %v2903_v13, %v2902_v11 }
 0x10a   :  { %3130 = vmatpush3.bf16.msra.mxu1 %v3344_v7 }
 0x10b   :  { %v710_v15 = vpack.c.bf16 %v2904_v14, %v2901_v10  ;;  %3131 = vmatprep.subr.bf16.mxu1 %v3345_v12 }
 0x10d   :  { %v2905_v17 = vpop.f32.mrb[12].mxu0  ;;  %3099 = vmatprep.mubr.bf16.mxu1 %v710_v15 }
 0x10e   :  { %v2906_v18 = vpop.f32.mrb[13].mxu0  ;;  %3132 = vmatpush3.bf16.msra.mxu1 %v3345_v12 }
 0x10f   :  { %v2907_v19 = vadd.f32 %v2906_v18, %v2905_v17  ;;  %v2908_v20 = vpop.f32.mrb[14].mxu0  ;;  %3133 = vmatprep.subr.bf16.mxu1 %v3346_v16 }
 0x110   :  { %v2909_v22 = vpop.f32.mrb[15].mxu0 }
 0x111   :  { %v2910_v23 = vadd.f32 %v2909_v22, %v2908_v20 }
 0x112   :  { %3134 = vmatpush3.bf16.msra.mxu1 %v3346_v16 }
 0x113   :  { %v711_v24 = vpack.c.bf16 %v2910_v23, %v2907_v19  ;;  %3135 = vmatprep.subr.bf16.mxu1 %v3347_v21 }
 0x115   :  { %v2911_v26 = vpop.f32.mrb[16].mxu0  ;;  %3100 = vmatmul.mubr.bf16.gmra.mrb[4].mxu1 %v711_v24 }
 0x116   :  { %v2912_v27 = vpop.f32.mrb[17].mxu0  ;;  %3136 = vmatpush3.bf16.msra.mxu1 %v3347_v21 }
 0x117   :  { %v2913_v28 = vadd.f32 %v2912_v27, %v2911_v26  ;;  %v2914_v29 = vpop.f32.mrb[18].mxu0  ;;  %3137 = vmatprep.subr.bf16.mxu1 %v3348_v25 }
 0x118   :  { %v2915_v31 = vpop.f32.mrb[19].mxu0 }
 0x119   :  { %v2916_v32 = vadd.f32 %v2915_v31, %v2914_v29 }
 0x11a   :  { %3138 = vmatpush3.bf16.msra.mxu1 %v3348_v25  ;;  %v3350_v25 = vld [vmem:[%s4831_s5 + $0x38] sm:$0xff]  }
 0x11b   :  { %v712_v33 = vpack.c.bf16 %v2916_v32, %v2913_v28  ;;  %3139 = vmatprep.subr.bf16.mxu1 %v3349_v30 }
 0x11d   :  { %v2917_v34 = vpop.f32.mrb[20].mxu0  ;;  %3103 = vmatprep.mubr.bf16.mxu1 %v712_v33 }
 0x11e   :  { %v2918_v35 = vpop.f32.mrb[21].mxu0  ;;  %3140 = vmatpush3.bf16.msra.mxu1 %v3349_v30 }
 0x11f   :  { %v2919_v36 = vadd.f32 %v2918_v35, %v2917_v34  ;;  %v2920_v37 = vpop.f32.mrb[22].mxu0  ;;  %3141 = vmatprep.subr.bf16.mxu1 %v3350_v25 }
 0x120   :  { %v2921_v38 = vpop.f32.mrb[23].mxu0 }
 0x121   :  { %v2922_v39 = vadd.f32 %v2921_v38, %v2920_v37 }
 0x122   :  { %3142 = vmatpush3.bf16.msra.mxu1 %v3350_v25 }
 0x123   :  { %v713_v40 = vpack.c.bf16 %v2922_v39, %v2919_v36 }
 0x125   :  { %v2923_v41 = vpop.f32.mrb[24].mxu0  ;;  %3104 = vmatmul.mubr.bf16.gmra.mrb[8].mxu1 %v713_v40 }
 0x126   :  { %v2924_v42 = vpop.f32.mrb[25].mxu0 }
 0x127   :  { %v2925_v43 = vadd.f32 %v2924_v42, %v2923_v41  ;;  %v2926_v44 = vpop.f32.mrb[26].mxu0 }
 0x128   :  { %v2927_v45 = vpop.f32.mrb[27].mxu0 }
 0x129   :  { %v2928_v46 = vadd.f32 %v2927_v45, %v2926_v44 }
 0x12b   :  { %v714_v47 = vpack.c.bf16 %v2928_v46, %v2925_v43 }
 0x12d   :  { %v2929_v48 = vpop.f32.mrb[28].mxu0  ;;  %3107 = vmatprep.mubr.bf16.mxu1 %v714_v47 }
 0x12e   :  { %v2930_v49 = vpop.f32.mrb[29].mxu0 }
 0x12f   :  { %v2931_v50 = vadd.f32 %v2930_v49, %v2929_v48  ;;  %v2932_v51 = vpop.f32.mrb[30].mxu0  ;;  %v3351_v48 = vld [vmem:[%s4832_s7] sm:$0xff]   ;;  %v3352_v49 = vld [vmem:[%s4832_s7 + $0x8] sm:$0xff]  }
 0x130   :  { %v2933_v52 = vpop.f32.mrb[31].mxu0  ;;  %3175 = vmatprep.subr.bf16.mxu0 %v3351_v48 }
 0x131   :  { %v2934_v53 = vadd.f32 %v2933_v52, %v2932_v51  ;;  %3176 = vmatpush3.bf16.msra.mxu0 %v3351_v48  ;;  %v3354_v51 = vld [vmem:[%s4832_s7 + $0x18] sm:$0xff]   ;;  %v3355_v52 = vld [vmem:[%s4832_s7 + $0x20] sm:$0xff]  }
 0x132   :  { %3177 = vmatprep.subr.bf16.mxu0 %v3352_v49 }
 0x133   :  { %v715_v54 = vpack.c.bf16 %v2934_v53, %v2931_v50  ;;  %v3353_v50 = vld [vmem:[%s4832_s7 + $0x10] sm:$0xff]  }
 0x135   :  { %v2935_v55 = vpop.f32.mrb[32].mxu0  ;;  %3108 = vmatmul.mubr.bf16.gmra.mrb[12].mxu1 %v715_v54  ;;  %3178 = vmatpush3.bf16.msra.mxu0 %v3352_v49  ;;  %v3839_v54 = vld [vmem:[%s4833_s4] ss:$0 sm:$0xff] }
 0x136   :  { %v2936_v56 = vpop.f32.mrb[33].mxu0  ;;  %3179 = vmatprep.subr.bf16.mxu0 %v3353_v50 }
 0x137   :  { %v2937_v57 = vadd.f32 %v2936_v56, %v2935_v55  ;;  %v2938_v58 = vpop.f32.mrb[34].mxu0 }
 0x138   :  { %v2939_v59 = vpop.f32.mrb[35].mxu0 }
 0x139   :  { %v2940_v60 = vadd.f32 %v2939_v59, %v2938_v58  ;;  %3180 = vmatpush3.bf16.msra.mxu0 %v3353_v50 }
 0x13a   :  { %3181 = vmatprep.subr.bf16.mxu0 %v3354_v51 }
 0x13b   :  { %v716_v61 = vpack.c.bf16 %v2940_v60, %v2937_v57  ;;  %v3356_v57 = vld [vmem:[%s4832_s7 + $0x28] sm:$0xff]  }
 0x13d   :  { %v2941_v62 = vpop.f32.mrb[36].mxu0  ;;  %3111 = vmatprep.mubr.bf16.mxu1 %v716_v61  ;;  %3182 = vmatpush3.bf16.msra.mxu0 %v3354_v51 }
 0x13e   :  { %v2942_v63 = vpop.f32.mrb[37].mxu0  ;;  %3183 = vmatprep.subr.bf16.mxu0 %v3355_v52 }
 0x13f   :  { %v2943_v0 = vadd.f32 %v2942_v63, %v2941_v62  ;;  %v2944_v1 = vpop.f32.mrb[38].mxu0 }
 0x140   :  { %v2945_v2 = vpop.f32.mrb[39].mxu0 }
 0x141   :  { %v2946_v3 = vadd.f32 %v2945_v2, %v2944_v1  ;;  %3184 = vmatpush3.bf16.msra.mxu0 %v3355_v52  ;;  %v3357_v1 = vld [vmem:[%s4832_s7 + $0x30] sm:$0xff]   ;;  %v3358_v2 = vld [vmem:[%s4832_s7 + $0x38] sm:$0xff]  }
 0x142   :  { %3185 = vmatprep.subr.bf16.mxu0 %v3356_v57 }
 0x143   :  { %v717_v4 = vpack.c.bf16 %v2946_v3, %v2943_v0 }
 0x145   :  { %v2947_v5 = vpop.f32.mrb[40].mxu0  ;;  %3112 = vmatmul.mubr.bf16.gmra.mrb[16].mxu1 %v717_v4  ;;  %3186 = vmatpush3.bf16.msra.mxu0 %v3356_v57 }
 0x146   :  { %v2948_v6 = vpop.f32.mrb[41].mxu0  ;;  %3187 = vmatprep.subr.bf16.mxu0 %v3357_v1 }
 0x147   :  { %v2949_v7 = vadd.f32 %v2948_v6, %v2947_v5  ;;  %v2950_v8 = vpop.f32.mrb[42].mxu0 }
 0x148   :  { %v2951_v9 = vpop.f32.mrb[43].mxu0 }
 0x149   :  { %v2952_v10 = vadd.f32 %v2951_v9, %v2950_v8  ;;  %3188 = vmatpush3.bf16.msra.mxu0 %v3357_v1 }
 0x14a   :  { %3189 = vmatprep.subr.bf16.mxu0 %v3358_v2 }
 0x14b   :  { %v718_v11 = vpack.c.bf16 %v2952_v10, %v2949_v7 }
 0x14d   :  { %v2953_v12 = vpop.f32.mrb[44].mxu0  ;;  %3115 = vmatprep.mubr.bf16.mxu1 %v718_v11  ;;  %3190 = vmatpush3.bf16.msra.mxu0 %v3358_v2 }
 0x14e   :  { %v2954_v13 = vpop.f32.mrb[45].mxu0 }
 0x14f   :  { %v2955_v14 = vadd.f32 %v2954_v13, %v2953_v12  ;;  %v2956_v15 = vpop.f32.mrb[46].mxu0 }
 0x150   :  { %v2957_v16 = vpop.f32.mrb[47].mxu0 }
 0x151   :  { %v2958_v17 = vadd.f32 %v2957_v16, %v2956_v15 }
 0x153   :  { %v719_v18 = vpack.c.bf16 %v2958_v17, %v2955_v14 }
 0x155   :  { %v2959_v19 = vpop.f32.mrb[48].mxu0  ;;  %3116 = vmatmul.mubr.bf16.gmra.mrb[20].mxu1 %v719_v18 }
 0x156   :  { %v2960_v20 = vpop.f32.mrb[49].mxu0 }
 0x157   :  { %v2961_v21 = vadd.f32 %v2960_v20, %v2959_v19  ;;  %v2962_v22 = vpop.f32.mrb[50].mxu0 }
 0x158   :  { %v2963_v23 = vpop.f32.mrb[51].mxu0 }
 0x159   :  { %v2964_v24 = vadd.f32 %v2963_v23, %v2962_v22 }
 0x15b   :  { %v720_v26 = vpack.c.bf16 %v2964_v24, %v2961_v21 }
 0x15d   :  { %v2965_v27 = vpop.f32.mrb[52].mxu0  ;;  %3119 = vmatprep.mubr.bf16.mxu1 %v720_v26 }
 0x15e   :  { %v2966_v28 = vpop.f32.mrb[53].mxu0 }
 0x15f   :  { %v2967_v29 = vadd.f32 %v2966_v28, %v2965_v27  ;;  %v2968_v30 = vpop.f32.mrb[54].mxu0 }
 0x160   :  { %v2969_v31 = vpop.f32.mrb[55].mxu0 }
 0x161   :  { %v2970_v32 = vadd.f32 %v2969_v31, %v2968_v30 }
 0x163   :  { %v721_v33 = vpack.c.bf16 %v2970_v32, %v2967_v29 }
 0x165   :  { %v2971_v34 = vpop.f32.mrb[56].mxu0  ;;  %3120 = vmatmul.mubr.bf16.gmra.mrb[24].mxu1 %v721_v33 }
 0x166   :  { %v2972_v35 = vpop.f32.mrb[57].mxu0 }
 0x167   :  { %v2973_v36 = vadd.f32 %v2972_v35, %v2971_v34  ;;  %v2974_v37 = vpop.f32.mrb[58].mxu0 }
 0x168   :  { %v2975_v38 = vpop.f32.mrb[59].mxu0 }
 0x169   :  { %v2976_v39 = vadd.f32 %v2975_v38, %v2974_v37 }
 0x16b   :  { %v722_v40 = vpack.c.bf16 %v2976_v39, %v2973_v36 }
 0x16d   :  { %v2977_v41 = vpop.f32.mrb[60].mxu0  ;;  %3123 = vmatprep.mubr.bf16.mxu1 %v722_v40 }
 0x16e   :  { %v2978_v42 = vpop.f32.mrb[61].mxu0 }
 0x16f   :  { %v2979_v43 = vadd.f32 %v2978_v42, %v2977_v41  ;;  %v2980_v44 = vpop.f32.mrb[62].mxu0 }
 0x170   :  { %v2981_v45 = vpop.f32.mrb[63].mxu0 }
 0x171   :  { %v2982_v46 = vadd.f32 %v2981_v45, %v2980_v44 }
 0x173   :  { %v723_v47 = vpack.c.bf16 %v2982_v46, %v2979_v43 }
 0x175   :  { %3124 = vmatmul.mubr.bf16.gmra.mrb[28].mxu1 %v723_v47 }
 0x1d8   :  { %v3097_v53 = vpop.f32.mrb[0].mxu1 }
 0x1d9   :  { %v828_v55 = vpop.f32.mrb[1].mxu1  ;;  %v837_v58 = vadd.f32 %v3097_v53, %v3839_v54 }
 0x1da   :  { %v3098_v56 = vpop.f32.mrb[2].mxu1  ;;  %v829_v61 = vadd.f32 %v3839_v54, %v828_v55 }
 0x1db   :  { %v840_v59 = vadd.f32 %v3098_v56, %v3839_v54  ;;  %v831_v60 = vpop.f32.mrb[3].mxu1 }
 0x1dc   :  { %v832_v62 = vadd.f32 %v3839_v54, %v831_v60 }
 0x1dd   :  { %v956_v63 = vpack.c.bf16 %v840_v59, %v837_v58 }
 0x1de   :  { %v955_v0 = vpack.c.bf16 %v832_v62, %v829_v61 }
 0x1e0   :  { %3143 = vmatprep.mubr.bf16.mxu1 %v955_v0 }
 0x1e1   :  { %3144 = vmatmul.mubr.bf16.vlgmr.msra.gmra.mrb[32].mxu1 %v956_v63 }
 0x1e8   :  { %v3101_v3 = vpop.f32.mrb[4].mxu1 }
 0x1e9   :  { %v844_v4 = vpop.f32.mrb[5].mxu1  ;;  %v853_v6 = vadd.f32 %v3101_v3, %v3839_v54 }
 0x1ea   :  { %v3102_v5 = vpop.f32.mrb[6].mxu1  ;;  %v845_v9 = vadd.f32 %v3839_v54, %v844_v4 }
 0x1eb   :  { %v856_v7 = vadd.f32 %v3102_v5, %v3839_v54  ;;  %v847_v8 = vpop.f32.mrb[7].mxu1 }
 0x1ec   :  { %v848_v10 = vadd.f32 %v3839_v54, %v847_v8 }
 0x1ed   :  { %v958_v11 = vpack.c.bf16 %v856_v7, %v853_v6 }
 0x1ee   :  { %v957_v12 = vpack.c.bf16 %v848_v10, %v845_v9  ;;  %v3885_v10 = vld [vmem:[%s4834_s6] ss:$0 sm:$0xff] }
 0x1f0   :  { %3147 = vmatprep.mubr.bf16.mxu1 %v957_v12 }
 0x1f1   :  { %3148 = vmatmul.mubr.bf16.gmra.mrb[36].mxu1 %v958_v11 }
 0x1f8   :  { %v3105_v13 = vpop.f32.mrb[8].mxu1 }
 0x1f9   :  { %v860_v14 = vpop.f32.mrb[9].mxu1  ;;  %v869_v16 = vadd.f32 %v3105_v13, %v3839_v54 }
 0x1fa   :  { %v3106_v15 = vpop.f32.mrb[10].mxu1  ;;  %v861_v19 = vadd.f32 %v3839_v54, %v860_v14 }
 0x1fb   :  { %v872_v17 = vadd.f32 %v3106_v15, %v3839_v54  ;;  %v863_v18 = vpop.f32.mrb[11].mxu1 }
 0x1fc   :  { %v864_v20 = vadd.f32 %v3839_v54, %v863_v18 }
 0x1fd   :  { %v960_v21 = vpack.c.bf16 %v872_v17, %v869_v16 }
 0x1fe   :  { %v959_v22 = vpack.c.bf16 %v864_v20, %v861_v19 }
 0x200   :  { %3151 = vmatprep.mubr.bf16.mxu1 %v959_v22 }
 0x201   :  { %3152 = vmatmul.mubr.bf16.gmra.mrb[40].mxu1 %v960_v21 }
 0x208   :  { %v3109_v23 = vpop.f32.mrb[12].mxu1 }
 0x209   :  { %v876_v24 = vpop.f32.mrb[13].mxu1  ;;  %v885_v26 = vadd.f32 %v3109_v23, %v3839_v54 }
 0x20a   :  { %v3110_v25 = vpop.f32.mrb[14].mxu1  ;;  %v877_v29 = vadd.f32 %v3839_v54, %v876_v24 }
 0x20b   :  { %v888_v27 = vadd.f32 %v3110_v25, %v3839_v54  ;;  %v879_v28 = vpop.f32.mrb[15].mxu1 }
 0x20c   :  { %v880_v30 = vadd.f32 %v3839_v54, %v879_v28 }
 0x20d   :  { %v962_v31 = vpack.c.bf16 %v888_v27, %v885_v26 }
 0x20e   :  { %v961_v32 = vpack.c.bf16 %v880_v30, %v877_v29 }
 0x210   :  { %3155 = vmatprep.mubr.bf16.mxu1 %v961_v32 }
 0x211   :  { %3156 = vmatmul.mubr.bf16.gmra.mrb[44].mxu1 %v962_v31 }
 0x218   :  { %v3113_v33 = vpop.f32.mrb[16].mxu1 }
 0x219   :  { %v892_v34 = vpop.f32.mrb[17].mxu1  ;;  %v901_v36 = vadd.f32 %v3113_v33, %v3839_v54 }
 0x21a   :  { %v3114_v35 = vpop.f32.mrb[18].mxu1  ;;  %v893_v39 = vadd.f32 %v3839_v54, %v892_v34 }
 0x21b   :  { %v904_v37 = vadd.f32 %v3114_v35, %v3839_v54  ;;  %v895_v38 = vpop.f32.mrb[19].mxu1 }
 0x21c   :  { %v896_v40 = vadd.f32 %v3839_v54, %v895_v38 }
 0x21d   :  { %v964_v41 = vpack.c.bf16 %v904_v37, %v901_v36 }
 0x21e   :  { %v963_v42 = vpack.c.bf16 %v896_v40, %v893_v39 }
 0x220   :  { %3159 = vmatprep.mubr.bf16.mxu1 %v963_v42 }
 0x221   :  { %3160 = vmatmul.mubr.bf16.gmra.mrb[48].mxu1 %v964_v41 }
 0x228   :  { %v3117_v43 = vpop.f32.mrb[20].mxu1 }
 0x229   :  { %v908_v44 = vpop.f32.mrb[21].mxu1  ;;  %v917_v46 = vadd.f32 %v3117_v43, %v3839_v54 }
 0x22a   :  { %v3118_v45 = vpop.f32.mrb[22].mxu1  ;;  %v909_v49 = vadd.f32 %v3839_v54, %v908_v44 }
 0x22b   :  { %v920_v47 = vadd.f32 %v3118_v45, %v3839_v54  ;;  %v911_v48 = vpop.f32.mrb[23].mxu1 }
 0x22c   :  { %v912_v50 = vadd.f32 %v3839_v54, %v911_v48 }
 0x22d   :  { %v966_v51 = vpack.c.bf16 %v920_v47, %v917_v46 }
 0x22e   :  { %v965_v52 = vpack.c.bf16 %v912_v50, %v909_v49 }
 0x230   :  { %3163 = vmatprep.mubr.bf16.mxu1 %v965_v52 }
 0x231   :  { %3164 = vmatmul.mubr.bf16.gmra.mrb[52].mxu1 %v966_v51 }
 0x238   :  { %v3121_v53 = vpop.f32.mrb[24].mxu1 }
 0x239   :  { %v924_v55 = vpop.f32.mrb[25].mxu1  ;;  %v933_v57 = vadd.f32 %v3121_v53, %v3839_v54 }
 0x23a   :  { %v3122_v56 = vpop.f32.mrb[26].mxu1  ;;  %v925_v60 = vadd.f32 %v3839_v54, %v924_v55 }
 0x23b   :  { %v936_v58 = vadd.f32 %v3122_v56, %v3839_v54  ;;  %v927_v59 = vpop.f32.mrb[27].mxu1 }
 0x23c   :  { %v928_v61 = vadd.f32 %v3839_v54, %v927_v59 }
 0x23d   :  { %v968_v62 = vpack.c.bf16 %v936_v58, %v933_v57 }
 0x23e   :  { %v967_v63 = vpack.c.bf16 %v928_v61, %v925_v60 }
 0x240   :  { %3167 = vmatprep.mubr.bf16.mxu1 %v967_v63 }
 0x241   :  { %3168 = vmatmul.mubr.bf16.gmra.mrb[56].mxu1 %v968_v62 }
 0x248   :  { %v3125_v0 = vpop.f32.mrb[28].mxu1 }
 0x249   :  { %v940_v1 = vpop.f32.mrb[29].mxu1  ;;  %v949_v3 = vadd.f32 %v3125_v0, %v3839_v54 }
 0x24a   :  { %v3126_v2 = vpop.f32.mrb[30].mxu1  ;;  %v941_v6 = vadd.f32 %v3839_v54, %v940_v1 }
 0x24b   :  { %v952_v4 = vadd.f32 %v3126_v2, %v3839_v54  ;;  %v943_v5 = vpop.f32.mrb[31].mxu1 }
 0x24c   :  { %v944_v7 = vadd.f32 %v3839_v54, %v943_v5 }
 0x24d   :  { %v970_v8 = vpack.c.bf16 %v952_v4, %v949_v3 }
 0x24e   :  { %v969_v9 = vpack.c.bf16 %v944_v7, %v941_v6 }
 0x250   :  { %3171 = vmatprep.mubr.bf16.mxu1 %v969_v9 }
 0x251   :  { %3172 = vmatmul.mubr.bf16.gmra.mrb[60].mxu1 %v970_v8 }
 0x2b4   :  { %v3145_v11 = vpop.f32.mrb[32].mxu1 }
 0x2b5   :  { %v1084_v12 = vadd.f32 %v3145_v11, %v3885_v10  ;;  %v1075_v13 = vpop.f32.mrb[33].mxu1 }
 0x2b6   :  { %v1076_v14 = vadd.f32 %v3885_v10, %v1075_v13  ;;  %v3146_v15 = vpop.f32.mrb[34].mxu1 }
 0x2b7   :  { %v1087_v16 = vadd.f32 %v3146_v15, %v3885_v10  ;;  %v1078_v17 = vpop.f32.mrb[35].mxu1  ;;  %v1204_v18 = vmax.f32 %v1084_v12, 0.0 }
 0x2b8   :  { %v1079_v54 = vadd.f32 %v3885_v10, %v1078_v17  ;;  %v1202_v20 = vmax.f32 %v1076_v14, 0.0 }
 0x2b9   :  { %v1205_v19 = vmax.f32 %v1087_v16, 0.0 }
 0x2ba   :  { %v1203_v21 = vmax.f32 %v1079_v54, 0.0 }
 0x2bb   :  { %v1235_v22 = vpack.c.bf16 %v1205_v19, %v1204_v18 }
 0x2bc   :  { %v1234_v23 = vpack.c.bf16 %v1203_v21, %v1202_v20 }
 0x2be   :  { %3191 = vmatprep.mubr.bf16.mxu0 %v1234_v23 }
 0x2bf   :  { %3192 = vmatmul.mubr.bf16.vlgmr.msra.gmra.mrb[64].mxu0 %v1235_v22 }
 0x2c4   :  { %v3149_v24 = vpop.f32.mrb[36].mxu1 }
 0x2c5   :  { %v1100_v25 = vadd.f32 %v3149_v24, %v3885_v10  ;;  %v1091_v26 = vpop.f32.mrb[37].mxu1 }
 0x2c6   :  { %v1092_v27 = vadd.f32 %v3885_v10, %v1091_v26  ;;  %v3150_v28 = vpop.f32.mrb[38].mxu1 }
 0x2c7   :  { %v1103_v29 = vadd.f32 %v3150_v28, %v3885_v10  ;;  %v1094_v30 = vpop.f32.mrb[39].mxu1  ;;  %v1208_v32 = vmax.f32 %v1100_v25, 0.0 }
 0x2c8   :  { %v1095_v31 = vadd.f32 %v3885_v10, %v1094_v30  ;;  %v1206_v34 = vmax.f32 %v1092_v27, 0.0 }
 0x2c9   :  { %v1209_v33 = vmax.f32 %v1103_v29, 0.0 }
 0x2ca   :  { %v1207_v35 = vmax.f32 %v1095_v31, 0.0 }
 0x2cb   :  { %v1237_v36 = vpack.c.bf16 %v1209_v33, %v1208_v32 }
 0x2cc   :  { %v1236_v37 = vpack.c.bf16 %v1207_v35, %v1206_v34 }
 0x2ce   :  { %3195 = vmatprep.mubr.bf16.mxu0 %v1236_v37 }
 0x2cf   :  { %3196 = vmatmul.mubr.bf16.gmra.mrb[68].mxu0 %v1237_v36 }
 0x2d4   :  { %v3153_v38 = vpop.f32.mrb[40].mxu1 }
 0x2d5   :  { %v1116_v39 = vadd.f32 %v3153_v38, %v3885_v10  ;;  %v1107_v40 = vpop.f32.mrb[41].mxu1 }
 0x2d6   :  { %v1108_v41 = vadd.f32 %v3885_v10, %v1107_v40  ;;  %v3154_v42 = vpop.f32.mrb[42].mxu1 }
 0x2d7   :  { %v1119_v43 = vadd.f32 %v3154_v42, %v3885_v10  ;;  %v1110_v44 = vpop.f32.mrb[43].mxu1  ;;  %v1212_v46 = vmax.f32 %v1116_v39, 0.0 }
 0x2d8   :  { %v1111_v45 = vadd.f32 %v3885_v10, %v1110_v44  ;;  %v1210_v48 = vmax.f32 %v1108_v41, 0.0 }
 0x2d9   :  { %v1213_v47 = vmax.f32 %v1119_v43, 0.0 }
 0x2da   :  { %v1211_v49 = vmax.f32 %v1111_v45, 0.0 }
 0x2db   :  { %v1239_v50 = vpack.c.bf16 %v1213_v47, %v1212_v46 }
 0x2dc   :  { %v1238_v51 = vpack.c.bf16 %v1211_v49, %v1210_v48 }
 0x2de   :  { %3199 = vmatprep.mubr.bf16.mxu0 %v1238_v51 }
 0x2df   :  { %3200 = vmatmul.mubr.bf16.gmra.mrb[72].mxu0 %v1239_v50 }
 0x2e4   :  { %v3157_v52 = vpop.f32.mrb[44].mxu1 }
 0x2e5   :  { %v1132_v53 = vadd.f32 %v3157_v52, %v3885_v10  ;;  %v1123_v55 = vpop.f32.mrb[45].mxu1 }
 0x2e6   :  { %v1124_v56 = vadd.f32 %v3885_v10, %v1123_v55  ;;  %v3158_v57 = vpop.f32.mrb[46].mxu1 }
 0x2e7   :  { %v1135_v58 = vadd.f32 %v3158_v57, %v3885_v10  ;;  %v1126_v59 = vpop.f32.mrb[47].mxu1  ;;  %v1216_v61 = vmax.f32 %v1132_v53, 0.0 }
 0x2e8   :  { %v1127_v60 = vadd.f32 %v3885_v10, %v1126_v59  ;;  %v1214_v63 = vmax.f32 %v1124_v56, 0.0 }
 0x2e9   :  { %v1217_v62 = vmax.f32 %v1135_v58, 0.0 }
 0x2ea   :  { %v1215_v0 = vmax.f32 %v1127_v60, 0.0  ;;  %v2856_v60 = vld [vmem:[%s4835_s2 + $0x8] sm:$0xff]  }
 0x2eb   :  { %v1241_v1 = vpack.c.bf16 %v1217_v62, %v1216_v61  ;;  %v2793_v61 = vld [vmem:[%s4835_s2] sm:$0xff]   ;;  %v2798_v62 = vunpack.c.l.bf16 %v2856_v60 }
 0x2ec   :  { %v1240_v2 = vpack.c.bf16 %v1215_v0, %v1214_v63  ;;  %v2794_v0 = vunpack.c.l.bf16 %v2793_v61 }
 0x2ee   :  { %3203 = vmatprep.mubr.bf16.mxu0 %v1240_v2 }
 0x2ef   :  { %3204 = vmatmul.mubr.bf16.gmra.mrb[76].mxu0 %v1241_v1 }
 0x2f4   :  { %v3161_v3 = vpop.f32.mrb[48].mxu1 }
 0x2f5   :  { %v1148_v4 = vadd.f32 %v3161_v3, %v3885_v10  ;;  %v1139_v5 = vpop.f32.mrb[49].mxu1 }
 0x2f6   :  { %v1140_v6 = vadd.f32 %v3885_v10, %v1139_v5  ;;  %v3162_v7 = vpop.f32.mrb[50].mxu1 }
 0x2f7   :  { %v1151_v8 = vadd.f32 %v3162_v7, %v3885_v10  ;;  %v1142_v9 = vpop.f32.mrb[51].mxu1  ;;  %v1220_v12 = vmax.f32 %v1148_v4, 0.0  ;;  %v2799_v7 = vunpack.c.h.bf16 %v2856_v60  ;;  %v3362_v60 = vld [vmem:[%s4837_s11 + $0x18] sm:$0xff]  }
 0x2f8   :  { %v1143_v11 = vadd.f32 %v3885_v10, %v1142_v9  ;;  %v1218_v14 = vmax.f32 %v1140_v6, 0.0 }
 0x2f9   :  { %v1221_v13 = vmax.f32 %v1151_v8, 0.0 }
 0x2fa   :  { %v1219_v15 = vmax.f32 %v1143_v11, 0.0 }
 0x2fb   :  { %v1243_v16 = vpack.c.bf16 %v1221_v13, %v1220_v12  ;;  %v2795_v13 = vunpack.c.h.bf16 %v2793_v61 }
 0x2fc   :  { %v1242_v17 = vpack.c.bf16 %v1219_v15, %v1218_v14 }
 0x2fe   :  { %3207 = vmatprep.mubr.bf16.mxu0 %v1242_v17  ;;  %v2858_v17 = vld [vmem:[%s4835_s2 + $0x18] sm:$0xff]  }
 0x2ff   :  { %3208 = vmatmul.mubr.bf16.gmra.mrb[80].mxu0 %v1243_v16 }
 0x304   :  { %v3165_v54 = vpop.f32.mrb[52].mxu1 }
 0x305   :  { %v1164_v18 = vadd.f32 %v3165_v54, %v3885_v10  ;;  %v1155_v19 = vpop.f32.mrb[53].mxu1  ;;  %v2806_v54 = vunpack.c.l.bf16 %v2858_v17 }
 0x306   :  { %v1156_v20 = vadd.f32 %v3885_v10, %v1155_v19  ;;  %v3166_v21 = vpop.f32.mrb[54].mxu1 }
 0x307   :  { %v1167_v22 = vadd.f32 %v3166_v21, %v3885_v10  ;;  %v1158_v23 = vpop.f32.mrb[55].mxu1  ;;  %v1224_v25 = vmax.f32 %v1164_v18, 0.0 }
 0x308   :  { %v1159_v24 = vadd.f32 %v3885_v10, %v1158_v23  ;;  %v1222_v27 = vmax.f32 %v1156_v20, 0.0  ;;  %v2857_v23 = vld [vmem:[%s4835_s2 + $0x10] sm:$0xff]  }
 0x309   :  { %v1225_v26 = vmax.f32 %v1167_v22, 0.0 }
 0x30a   :  { %v1223_v28 = vmax.f32 %v1159_v24, 0.0  ;;  %v2807_v24 = vunpack.c.h.bf16 %v2858_v17 }
 0x30b   :  { %v1245_v29 = vpack.c.bf16 %v1225_v26, %v1224_v25 }
 0x30c   :  { %v1244_v30 = vpack.c.bf16 %v1223_v28, %v1222_v27 }
 0x30e   :  { %3211 = vmatprep.mubr.bf16.mxu0 %v1244_v30  ;;  %v2802_v30 = vunpack.c.l.bf16 %v2857_v23 }
 0x30f   :  { %3212 = vmatmul.mubr.bf16.gmra.mrb[84].mxu0 %v1245_v29 }
 0x314   :  { %v3169_v31 = vpop.f32.mrb[56].mxu1 }
 0x315   :  { %v1180_v32 = vadd.f32 %v3169_v31, %v3885_v10  ;;  %v1171_v33 = vpop.f32.mrb[57].mxu1 }
 0x316   :  { %v1172_v34 = vadd.f32 %v3885_v10, %v1171_v33  ;;  %v3170_v35 = vpop.f32.mrb[58].mxu1  ;;  %v2803_v33 = vunpack.c.h.bf16 %v2857_v23 }
 0x317   :  { %v1183_v36 = vadd.f32 %v3170_v35, %v3885_v10  ;;  %v1174_v37 = vpop.f32.mrb[59].mxu1  ;;  %v1228_v39 = vmax.f32 %v1180_v32, 0.0 }
 0x318   :  { %v1175_v38 = vadd.f32 %v3885_v10, %v1174_v37  ;;  %v1226_v41 = vmax.f32 %v1172_v34, 0.0  ;;  %v3359_v37 = vld [vmem:[%s4837_s11] sm:$0xff]  }
 0x319   :  { %v1229_v40 = vmax.f32 %v1183_v36, 0.0  ;;  %v2860_v36 = vld [vmem:[%s4835_s2 + $0x28] sm:$0xff]   ;;  %3223 = vmatprep.subr.bf16.mxu1 %v3359_v37 }
 0x31a   :  { %v1227_v42 = vmax.f32 %v1175_v38, 0.0  ;;  %3224 = vmatpush3.bf16.msra.mxu1 %v3359_v37 }
 0x31b   :  { %v1247_v43 = vpack.c.bf16 %v1229_v40, %v1228_v39  ;;  %v3360_v40 = vld [vmem:[%s4837_s11 + $0x8] sm:$0xff]  }
 0x31c   :  { %v1246_v44 = vpack.c.bf16 %v1227_v42, %v1226_v41  ;;  %v2814_v41 = vunpack.c.l.bf16 %v2860_v36  ;;  %3225 = vmatprep.subr.bf16.mxu1 %v3360_v40 }
 0x31e   :  { %3215 = vmatprep.mubr.bf16.mxu0 %v1246_v44  ;;  %3226 = vmatpush3.bf16.msra.mxu1 %v3360_v40 }
 0x31f   :  { %3216 = vmatmul.mubr.bf16.gmra.mrb[88].mxu0 %v1247_v43 }
 0x324   :  { %v3173_v45 = vpop.f32.mrb[60].mxu1 }
 0x325   :  { %v1196_v46 = vadd.f32 %v3173_v45, %v3885_v10  ;;  %v1187_v47 = vpop.f32.mrb[61].mxu1 }
 0x326   :  { %v1188_v48 = vadd.f32 %v3885_v10, %v1187_v47  ;;  %v3174_v49 = vpop.f32.mrb[62].mxu1  ;;  %v2815_v47 = vunpack.c.h.bf16 %v2860_v36 }
 0x327   :  { %v1199_v50 = vadd.f32 %v3174_v49, %v3885_v10  ;;  %v1190_v51 = vpop.f32.mrb[63].mxu1  ;;  %v1232_v53 = vmax.f32 %v1196_v46, 0.0  ;;  %v2859_v46 = vld [vmem:[%s4835_s2 + $0x20] sm:$0xff]  }
 0x328   :  { %v1191_v52 = vadd.f32 %v3885_v10, %v1190_v51  ;;  %v1230_v56 = vmax.f32 %v1188_v48, 0.0  ;;  %v3928_v10 = vld [vmem:[%s4836_s8] ss:$0 sm:$0xff] }
 0x329   :  { %v1233_v55 = vmax.f32 %v1199_v50, 0.0  ;;  %v3361_v50 = vld [vmem:[%s4837_s11 + $0x10] sm:$0xff]  }
 0x32a   :  { %v1231_v57 = vmax.f32 %v1191_v52, 0.0  ;;  %3227 = vmatprep.subr.bf16.mxu1 %v3361_v50 }
 0x32b   :  { %v1249_v58 = vpack.c.bf16 %v1233_v55, %v1232_v53  ;;  %3228 = vmatpush3.bf16.msra.mxu1 %v3361_v50 }
 0x32c   :  { %v1248_v59 = vpack.c.bf16 %v1231_v57, %v1230_v56  ;;  %v2810_v56 = vunpack.c.l.bf16 %v2859_v46  ;;  %3229 = vmatprep.subr.bf16.mxu1 %v3362_v60 }
 0x32e   :  { %3219 = vmatprep.mubr.bf16.mxu0 %v1248_v59  ;;  %v2811_v59 = vunpack.c.h.bf16 %v2859_v46 }
 0x32f   :  { %3220 = vmatmul.mubr.bf16.gmra.mrb[92].mxu0 %v1249_v58  ;;  %3230 = vmatpush3.bf16.msra.mxu1 %v3362_v60 }
 0x392   :  { %v3193_v63 = vpop.f32.mrb[64].mxu0 }
 0x393   :  { %v1363_v1 = vadd.f32 %v3193_v63, %v3928_v10  ;;  %v1354_v2 = vpop.f32.mrb[65].mxu0  ;;  %v3363_v63 = vld [vmem:[%s4837_s11 + $0x20] sm:$0xff]  }
 0x394   :  { %v1355_v3 = vadd.f32 %v3928_v10, %v1354_v2  ;;  %v3194_v4 = vpop.f32.mrb[66].mxu0  ;;  %3231 = vmatprep.subr.bf16.mxu1 %v3363_v63 }
 0x395   :  { %v3932_v5 = vadd.f32 %v2798_v62, %v1363_v1  ;;  %v1366_v6 = vadd.f32 %v3194_v4, %v3928_v10  ;;  %v1357_v8 = vpop.f32.mrb[67].mxu0  ;;  %v2862_v1 = vld [vmem:[%s4835_s2 + $0x38] sm:$0xff]   ;;  %3232 = vmatpush3.bf16.msra.mxu1 %v3363_v63 }
 0x396   :  { %v3935_v9 = vadd.f32 %v2794_v0, %v1355_v3  ;;  %v1358_v12 = vadd.f32 %v3928_v10, %v1357_v8  ;;  %v3364_v3 = vld [vmem:[%s4837_s11 + $0x28] sm:$0xff]   ;;  %v2822_v4 = vunpack.c.l.bf16 %v2862_v1 }
 0x397   :  { %1581 = vadd.xlane.f32.xlu1 %v3932_v5  ;;  %v3939_v11 = vadd.f32 %v2799_v7, %v1366_v6  ;;  %v1675_v14 = vmul.f32 %v3932_v5, %v3932_v5  ;;  %3233 = vmatprep.subr.bf16.mxu1 %v3364_v3 }
 0x398   :  { %1577 = vadd.xlane.f32.xlu0 %v3935_v9  ;;  %v3945_v15 = vadd.f32 %v2795_v13, %v1358_v12  ;;  %v1673_v20 = vmul.f32 %v3935_v9, %v3935_v9  ;;  %v2861_v13 = vld [vmem:[%s4835_s2 + $0x30] sm:$0xff]  }
 0x399   :  { %v1676_v16 = vmul.f32 %v3939_v11, %v3939_v11  ;;  %3234 = vmatpush3.bf16.msra.mxu1 %v3364_v3 }
 0x39a   :  { %v1674_v18 = vmul.f32 %v3945_v15, %v3945_v15 }
 0x39b   :  { %1583 = vadd.xlane.f32.xlu1 %v3939_v11 }
 0x39c   :  { %1709 = vadd.xlane.f32.xlu0 %v1675_v14  ;;  %v2823_v14 = vunpack.c.h.bf16 %v2862_v1 }
 0x39f   :  { %1711 = vadd.xlane.f32.xlu1 %v1676_v16 }
 0x3a0   :  { %1579 = vadd.xlane.f32.xlu0 %v3945_v15 }
 0x3a2   :  { %v3197_v19 = vpop.f32.mrb[68].mxu0 }
 0x3a3   :  { %v1379_v21 = vadd.f32 %v3197_v19, %v3928_v10  ;;  %v1370_v22 = vpop.f32.mrb[69].mxu0  ;;  %1707 = vadd.xlane.f32.xlu1 %v1674_v18 }
 0x3a4   :  { %v3198_v25 = vpop.f32.mrb[70].mxu0  ;;  %1705 = vadd.xlane.f32.xlu0 %v1673_v20  ;;  %v1371_v29 = vadd.f32 %v3928_v10, %v1370_v22  ;;  %v2818_v22 = vunpack.c.l.bf16 %v2861_v13 }
 0x3a5   :  { %v3961_v26 = vadd.f32 %v2806_v54, %v1379_v21  ;;  %v1382_v27 = vadd.f32 %v3198_v25, %v3928_v10  ;;  %v1373_v28 = vpop.f32.mrb[71].mxu0  ;;  %v3365_v54 = vld [vmem:[%s4837_s11 + $0x30] sm:$0xff]   ;;  %v2819_v25 = vunpack.c.h.bf16 %v2861_v13 }
 0x3a6   :  { %v1374_v32 = vadd.f32 %v3928_v10, %v1373_v28  ;;  %v3970_v34 = vadd.f32 %v2802_v30, %v1371_v29  ;;  %3235 = vmatprep.subr.bf16.mxu1 %v3365_v54 }
 0x3a7   :  { %v3965_v31 = vadd.f32 %v2807_v24, %v1382_v27  ;;  %v1679_v38 = vmul.f32 %v3961_v26, %v3961_v26  ;;  %3236 = vmatpush3.bf16.msra.mxu1 %v3365_v54  ;;  %v3366_v27 = vld [vmem:[%s4837_s11 + $0x38] sm:$0xff]  }
 0x3a8   :  { %1589 = vadd.xlane.f32.xlu0 %v3961_v26  ;;  %v3972_v35 = vadd.f32 %v2803_v33, %v1374_v32  ;;  %v1677_v43 = vmul.f32 %v3970_v34, %v3970_v34  ;;  %3237 = vmatprep.subr.bf16.mxu1 %v3366_v27  ;;  %v2864_v32 = vld [vmem:[%s4835_s2 + $0x48] sm:$0xff]  }
 0x3a9   :  { %1591 = vadd.xlane.f32.xlu1 %v3965_v31  ;;  %v1680_v39 = vmul.f32 %v3965_v31, %v3965_v31  ;;  %v2830_v36 = vunpack.c.l.bf16 %v2864_v32 }
 0x3aa   :  { %v1678_v48 = vmul.f32 %v3972_v35, %v3972_v35 }
 0x3ab   :  { %3238 = vmatpush3.bf16.msra.mxu1 %v3366_v27 }
 0x3ac   :  { %1585 = vadd.xlane.f32.xlu0 %v3970_v34 }
 0x3ad   :  { %1587 = vadd.xlane.f32.xlu1 %v3972_v35 }
 0x3b0   :  { %1717 = vadd.xlane.f32.xlu0 %v1679_v38 }
 0x3b1   :  { %1719 = vadd.xlane.f32.xlu1 %v1680_v39 }
 0x3b2   :  { %v3201_v42 = vpop.f32.mrb[72].mxu0 }
 0x3b3   :  { %v1395_v44 = vadd.f32 %v3201_v42, %v3928_v10  ;;  %v1386_v45 = vpop.f32.mrb[73].mxu0  ;;  %v2831_v42 = vunpack.c.h.bf16 %v2864_v32 }
 0x3b4   :  { %v3202_v49 = vpop.f32.mrb[74].mxu0  ;;  %1713 = vadd.xlane.f32.xlu0 %v1677_v43  ;;  %v1387_v55 = vadd.f32 %v3928_v10, %v1386_v45 }
 0x3b5   :  { %v4000_v51 = vadd.f32 %v2814_v41, %v1395_v44  ;;  %v1398_v52 = vadd.f32 %v3202_v49, %v3928_v10  ;;  %v1389_v53 = vpop.f32.mrb[75].mxu0  ;;  %1715 = vadd.xlane.f32.xlu1 %v1678_v48  ;;  %v2863_v41 = vld [vmem:[%s4835_s2 + $0x40] sm:$0xff]  }
 0x3b6   :  { %v1390_v58 = vadd.f32 %v3928_v10, %v1389_v53  ;;  %v4012_v61 = vadd.f32 %v2810_v56, %v1387_v55  ;;  %v2826_v49 = vunpack.c.l.bf16 %v2863_v41  ;;  %v2827_v53 = vunpack.c.h.bf16 %v2863_v41 }
 0x3b7   :  { %v4004_v57 = vadd.f32 %v2815_v47, %v1398_v52  ;;  %v1683_v0 = vmul.f32 %v4000_v51, %v4000_v51 }
 0x3b8   :  { %1597 = vadd.xlane.f32.xlu0 %v4000_v51  ;;  %v4014_v62 = vadd.f32 %v2811_v59, %v1390_v58  ;;  %v1681_v7 = vmul.f32 %v4012_v61, %v4012_v61  ;;  %v2866_v59 = vld [vmem:[%s4835_s2 + $0x58] sm:$0xff]  }
 0x3b9   :  { %1599 = vadd.xlane.f32.xlu1 %v4004_v57  ;;  %v1684_v2 = vmul.f32 %v4004_v57, %v4004_v57  ;;  %v2838_v63 = vunpack.c.l.bf16 %v2866_v59 }
 0x3ba   :  { %v1682_v16 = vmul.f32 %v4014_v62, %v4014_v62 }
 0x3bc   :  { %1593 = vadd.xlane.f32.xlu0 %v4012_v61 }
 0x3bd   :  { %1595 = vadd.xlane.f32.xlu1 %v4014_v62 }
 0x3c0   :  { %1725 = vadd.xlane.f32.xlu0 %v1683_v0 }
 0x3c1   :  { %1727 = vadd.xlane.f32.xlu1 %v1684_v2 }
 0x3c2   :  { %v3205_v6 = vpop.f32.mrb[76].mxu0 }
 0x3c3   :  { %v1411_v8 = vadd.f32 %v3205_v6, %v3928_v10  ;;  %v1402_v12 = vpop.f32.mrb[77].mxu0  ;;  %v2839_v6 = vunpack.c.h.bf16 %v2866_v59 }
 0x3c4   :  { %v3206_v17 = vpop.f32.mrb[78].mxu0  ;;  %1721 = vadd.xlane.f32.xlu0 %v1681_v7  ;;  %v1403_v21 = vadd.f32 %v3928_v10, %v1402_v12 }
 0x3c5   :  { %v4042_v18 = vadd.f32 %v2822_v4, %v1411_v8  ;;  %v1414_v19 = vadd.f32 %v3206_v17, %v3928_v10  ;;  %v1405_v20 = vpop.f32.mrb[79].mxu0  ;;  %1723 = vadd.xlane.f32.xlu1 %v1682_v16  ;;  %v2865_v4 = vld [vmem:[%s4835_s2 + $0x50] sm:$0xff]  }
 0x3c6   :  { %v1406_v24 = vadd.f32 %v3928_v10, %v1405_v20  ;;  %v4054_v28 = vadd.f32 %v2818_v22, %v1403_v21  ;;  %v2834_v17 = vunpack.c.l.bf16 %v2865_v4  ;;  %v2835_v20 = vunpack.c.h.bf16 %v2865_v4 }
 0x3c7   :  { %v4046_v23 = vadd.f32 %v2823_v14, %v1414_v19  ;;  %v1687_v30 = vmul.f32 %v4042_v18, %v4042_v18 }
 0x3c8   :  { %1605 = vadd.xlane.f32.xlu0 %v4042_v18  ;;  %v4056_v29 = vadd.f32 %v2819_v25, %v1406_v24  ;;  %v1685_v38 = vmul.f32 %v4054_v28, %v4054_v28  ;;  %v2868_v25 = vld [vmem:[%s4835_s2 + $0x68] sm:$0xff]  }
 0x3c9   :  { %1607 = vadd.xlane.f32.xlu1 %v4046_v23  ;;  %v1688_v33 = vmul.f32 %v4046_v23, %v4046_v23 }
 0x3ca   :  { %v1686_v43 = vmul.f32 %v4056_v29, %v4056_v29 }
 0x3cc   :  { %1601 = vadd.xlane.f32.xlu0 %v4054_v28 }
 0x3cd   :  { %1603 = vadd.xlane.f32.xlu1 %v4056_v29 }
 0x3d0   :  { %1733 = vadd.xlane.f32.xlu0 %v1687_v30  ;;  %v2846_v30 = vunpack.c.l.bf16 %v2868_v25 }
 0x3d1   :  { %1735 = vadd.xlane.f32.xlu1 %v1688_v33 }
 0x3d2   :  { %v3209_v37 = vpop.f32.mrb[80].mxu0 }
 0x3d3   :  { %v1427_v39 = vadd.f32 %v3209_v37, %v3928_v10  ;;  %v1418_v40 = vpop.f32.mrb[81].mxu0 }
 0x3d4   :  { %v3210_v44 = vpop.f32.mrb[82].mxu0  ;;  %1729 = vadd.xlane.f32.xlu0 %v1685_v38  ;;  %v1419_v48 = vadd.f32 %v3928_v10, %v1418_v40  ;;  %v2867_v38 = vld [vmem:[%s4835_s2 + $0x60] sm:$0xff]  }
 0x3d5   :  { %v4075_v45 = vadd.f32 %v2830_v36, %v1427_v39  ;;  %v1430_v46 = vadd.f32 %v3210_v44, %v3928_v10  ;;  %v1421_v47 = vpop.f32.mrb[83].mxu0  ;;  %1731 = vadd.xlane.f32.xlu1 %v1686_v43  ;;  %v2847_v39 = vunpack.c.h.bf16 %v2868_v25 }
 0x3d6   :  { %v1422_v52 = vadd.f32 %v3928_v10, %v1421_v47  ;;  %v4084_v55 = vadd.f32 %v2826_v49, %v1419_v48  ;;  %v2842_v47 = vunpack.c.l.bf16 %v2867_v38 }
 0x3d7   :  { %v4079_v50 = vadd.f32 %v2831_v42, %v1430_v46  ;;  %v1691_v58 = vmul.f32 %v4075_v45, %v4075_v45 }
 0x3d8   :  { %1613 = vadd.xlane.f32.xlu0 %v4075_v45  ;;  %v4086_v56 = vadd.f32 %v2827_v53, %v1422_v52  ;;  %v1689_v1 = vmul.f32 %v4084_v55, %v4084_v55  ;;  %v2843_v52 = vunpack.c.h.bf16 %v2867_v38 }
 0x3d9   :  { %1615 = vadd.xlane.f32.xlu1 %v4079_v50  ;;  %v1692_v60 = vmul.f32 %v4079_v50, %v4079_v50 }
 0x3da   :  { %v1690_v7 = vmul.f32 %v4086_v56, %v4086_v56 }
 0x3dc   :  { %1609 = vadd.xlane.f32.xlu0 %v4084_v55 }
 0x3dd   :  { %1611 = vadd.xlane.f32.xlu1 %v4086_v56 }
 0x3e0   :  { %1741 = vadd.xlane.f32.xlu0 %v1691_v58 }
 0x3e1   :  { %1743 = vadd.xlane.f32.xlu1 %v1692_v60  ;;  %v2870_v60 = vld [vmem:[%s4835_s2 + $0x78] sm:$0xff]  }
 0x3e2   :  { %v3213_v0 = vpop.f32.mrb[84].mxu0 }
 0x3e3   :  { %v1443_v2 = vadd.f32 %v3213_v0, %v3928_v10  ;;  %v1434_v3 = vpop.f32.mrb[85].mxu0  ;;  %v2854_v0 = vunpack.c.l.bf16 %v2870_v60 }
 0x3e4   :  { %v3214_v8 = vpop.f32.mrb[86].mxu0  ;;  %1737 = vadd.xlane.f32.xlu0 %v1689_v1  ;;  %v1435_v16 = vadd.f32 %v3928_v10, %v1434_v3 }
 0x3e5   :  { %v4105_v12 = vadd.f32 %v2838_v63, %v1443_v2  ;;  %v1446_v13 = vadd.f32 %v3214_v8, %v3928_v10  ;;  %v1437_v14 = vpop.f32.mrb[87].mxu0  ;;  %1739 = vadd.xlane.f32.xlu1 %v1690_v7  ;;  %v2855_v7 = vunpack.c.h.bf16 %v2870_v60 }
 0x3e6   :  { %v1438_v19 = vadd.f32 %v3928_v10, %v1437_v14  ;;  %v4114_v21 = vadd.f32 %v2834_v17, %v1435_v16 }
 0x3e7   :  { %v4109_v54 = vadd.f32 %v2839_v6, %v1446_v13  ;;  %v1695_v24 = vmul.f32 %v4105_v12, %v4105_v12  ;;  %v2869_v6 = vld [vmem:[%s4835_s2 + $0x70] sm:$0xff]  }
 0x3e8   :  { %1621 = vadd.xlane.f32.xlu0 %v4105_v12  ;;  %v4116_v22 = vadd.f32 %v2835_v20, %v1438_v19  ;;  %v1693_v33 = vmul.f32 %v4114_v21, %v4114_v21  ;;  %v2850_v20 = vunpack.c.l.bf16 %v2869_v6 }
 0x3e9   :  { %1623 = vadd.xlane.f32.xlu1 %v4109_v54  ;;  %v1696_v27 = vmul.f32 %v4109_v54, %v4109_v54 }
 0x3ea   :  { %v1694_v40 = vmul.f32 %v4116_v22, %v4116_v22 }
 0x3ec   :  { %1617 = vadd.xlane.f32.xlu0 %v4114_v21 }
 0x3ed   :  { %1619 = vadd.xlane.f32.xlu1 %v4116_v22 }
 0x3f0   :  { %1749 = vadd.xlane.f32.xlu0 %v1695_v24 }
 0x3f1   :  { %1751 = vadd.xlane.f32.xlu1 %v1696_v27  ;;  %v2851_v27 = vunpack.c.h.bf16 %v2869_v6 }
 0x3f2   :  { %v3217_v32 = vpop.f32.mrb[88].mxu0 }
 0x3f3   :  { %v1459_v36 = vadd.f32 %v3217_v32, %v3928_v10  ;;  %v1450_v37 = vpop.f32.mrb[89].mxu0 }
 0x3f4   :  { %v3218_v41 = vpop.f32.mrb[90].mxu0  ;;  %1745 = vadd.xlane.f32.xlu0 %v1693_v33  ;;  %v1451_v46 = vadd.f32 %v3928_v10, %v1450_v37 }
 0x3f5   :  { %v4135_v42 = vadd.f32 %v2846_v30, %v1459_v36  ;;  %v1462_v43 = vadd.f32 %v3218_v41, %v3928_v10  ;;  %v1453_v44 = vpop.f32.mrb[91].mxu0  ;;  %1747 = vadd.xlane.f32.xlu1 %v1694_v40 }
 0x3f6   :  { %v1454_v49 = vadd.f32 %v3928_v10, %v1453_v44  ;;  %v4144_v53 = vadd.f32 %v2842_v47, %v1451_v46 }
 0x3f7   :  { %v4139_v48 = vadd.f32 %v2847_v39, %v1462_v43  ;;  %v1699_v59 = vmul.f32 %v4135_v42, %v4135_v42 }
 0x3f8   :  { %1629 = vadd.xlane.f32.xlu0 %v4135_v42  ;;  %v4146_v58 = vadd.f32 %v2843_v52, %v1454_v49  ;;  %v1697_v2 = vmul.f32 %v4144_v53, %v4144_v53 }
 0x3f9   :  { %1631 = vadd.xlane.f32.xlu1 %v4139_v48  ;;  %v1700_v63 = vmul.f32 %v4139_v48, %v4139_v48 }
 0x3fa   :  { %v1698_v8 = vmul.f32 %v4146_v58, %v4146_v58 }
 0x3fc   :  { %1625 = vadd.xlane.f32.xlu0 %v4144_v53 }
 0x3fd   :  { %1627 = vadd.xlane.f32.xlu1 %v4146_v58 }
 0x400   :  { %1757 = vadd.xlane.f32.xlu0 %v1699_v59 }
 0x401   :  { %1759 = vadd.xlane.f32.xlu1 %v1700_v63 }
 0x402   :  { %v3221_v1 = vpop.f32.mrb[92].mxu0 }
 0x403   :  { %v1475_v3 = vadd.f32 %v3221_v1, %v3928_v10  ;;  %v1466_v4 = vpop.f32.mrb[93].mxu0 }
 0x404   :  { %v3222_v13 = vpop.f32.mrb[94].mxu0  ;;  %1753 = vadd.xlane.f32.xlu0 %v1697_v2  ;;  %v1467_v19 = vadd.f32 %v3928_v10, %v1466_v4 }
 0x405   :  { %v4165_v14 = vadd.f32 %v2854_v0, %v1475_v3  ;;  %v1478_v16 = vadd.f32 %v3222_v13, %v3928_v10  ;;  %v1469_v17 = vpop.f32.mrb[95].mxu0  ;;  %1755 = vadd.xlane.f32.xlu1 %v1698_v8 }
 0x406   :  { %v1470_v25 = vadd.f32 %v3928_v10, %v1469_v17  ;;  %v4174_v30 = vadd.f32 %v2850_v20, %v1467_v19 }
 0x407   :  { %v4169_v24 = vadd.f32 %v2855_v7, %v1478_v16  ;;  %v1703_v10 = vmul.f32 %v4165_v14, %v4165_v14 }
 0x408   :  { %1637 = vadd.xlane.f32.xlu0 %v4165_v14  ;;  %v4176_v32 = vadd.f32 %v2851_v27, %v1470_v25  ;;  %v1701_v33 = vmul.f32 %v4174_v30, %v4174_v30 }
 0x409   :  { %1639 = vadd.xlane.f32.xlu1 %v4169_v24  ;;  %v1704_v37 = vmul.f32 %v4169_v24, %v4169_v24 }
 0x40a   :  { %v1702_v36 = vmul.f32 %v4176_v32, %v4176_v32 }
 0x40c   :  { %1633 = vadd.xlane.f32.xlu0 %v4174_v30 }
 0x40d   :  { %1635 = vadd.xlane.f32.xlu1 %v4176_v32 }
 0x410   :  { %1761 = vadd.xlane.f32.xlu0 %v1701_v33 }
 0x411   :  { %1763 = vadd.xlane.f32.xlu1 %v1702_v36 }
 0x414   :  { %1765 = vadd.xlane.f32.xlu0 %v1703_v10 }
 0x415   :  { %1767 = vadd.xlane.f32.xlu1 %v1704_v37 }
 0x424   :  { %v1582_v38 = vpop.xlane.xlu1 %1581 }
 0x425   :  { %v1578_v39 = vpop.xlane.xlu0 %1577  ;;  %v1643_v40 = vmul.f32 0.015625, %v1582_v38 }
 0x426   :  { %v4188_v0 = vmul.f32 0.015625, %v1578_v39 }
 0x427   :  { %v1803_v46 = vmul.f32 %v1643_v40, %v1643_v40 }
 0x428   :  { %v1584_v41 = vpop.xlane.xlu1 %1583  ;;  %v1801_v17 = vmul.f32 %v4188_v0, %v4188_v0 }
 0x429   :  { %v1644_v43 = vmul.f32 0.015625, %v1584_v41  ;;  %v1710_v44 = vpop.xlane.xlu0 %1709 }
 0x42a   :  { %v1771_v47 = vmul.f32 0.015625, %v1710_v44 }
 0x42b   :  { %v1804_v59 = vmul.f32 %v1644_v43, %v1644_v43 }
 0x42c   :  { %v1835_v49 = vsub.f32 %v1771_v47, %v1803_v46  ;;  %v1712_v52 = vpop.xlane.xlu1 %1711 }
 0x42d   :  { %v1772_v60 = vmul.f32 0.015625, %v1712_v52  ;;  %v1580_v63 = vpop.xlane.xlu0 %1579 }
 0x42e   :  { %v1867_v1 = vmax.f32 %v1835_v49, 0.0  ;;  %v1642_v2 = vmul.f32 0.015625, %v1580_v63 }
 0x42f   :  { %v1836_v3 = vsub.f32 %v1772_v60, %v1804_v59  ;;  %v1900_v59 = vsub.f32 %v3939_v11, %v1644_v43 }
 0x430   :  { %v1931_v4 = vadd.f32 1e-05, %v1867_v1  ;;  %v1802_v6 = vmul.f32 %v1642_v2, %v1642_v2  ;;  %v1708_v7 = vpop.xlane.xlu1 %1707  ;;  %v1898_v11 = vsub.f32 %v3945_v15, %v1642_v2  ;;  %v4216_v15 = vld [vmem:[%s4838_s9] ss:$0 sm:$0xff] }
 0x431   :  { %v1868_v8 = vmax.f32 %v1836_v3, 0.0  ;;  %v1770_v13 = vmul.f32 0.015625, %v1708_v7  ;;  %v1706_v16 = vpop.xlane.xlu0 %1705 }
 0x432   :  { %v1769_v19 = vmul.f32 0.015625, %v1706_v16  ;;  %3367 = vrsqrt.f32 %v1931_v4 }
 0x433   :  { %v1932_v20 = vadd.f32 1e-05, %v1868_v8  ;;  %v1834_v25 = vsub.f32 %v1770_v13, %v1802_v6  ;;  %v1899_v13 = vsub.f32 %v3932_v5, %v1643_v40 }
 0x434   :  { %v1833_v27 = vsub.f32 %v1769_v19, %v1801_v17 }
 0x435   :  { %3369 = vrsqrt.f32 %v1932_v20  ;;  %v1866_v33 = vmax.f32 %v1834_v25, 0.0  ;;  %v1590_v36 = vpop.xlane.xlu0 %1589 }
 0x436   :  { %v1865_v10 = vmax.f32 %v1833_v27, 0.0  ;;  %v1592_v37 = vpop.xlane.xlu1 %1591  ;;  %v4192_v44 = vmul.f32 0.015625, %v1590_v36 }
 0x437   :  { %v1930_v38 = vadd.f32 1e-05, %v1866_v33  ;;  %v4194_v47 = vmul.f32 0.015625, %v1592_v37  ;;  %v1897_v37 = vsub.f32 %v3935_v9, %v4188_v0 }
 0x438   :  { %v1929_v39 = vadd.f32 1e-05, %v1865_v10  ;;  %v1807_v60 = vmul.f32 %v4192_v44, %v4192_v44 }
 0x439   :  { %3371 = vrsqrt.f32 %v1930_v38  ;;  %v1586_v41 = vpop.xlane.xlu0 %1585  ;;  %v1808_v6 = vmul.f32 %v4194_v47, %v4194_v47 }
 0x43a   :  { %3373 = vrsqrt.f32 %v1929_v39  ;;  %v1588_v46 = vpop.xlane.xlu1 %1587  ;;  %v4199_v63 = vmul.f32 0.015625, %v1586_v41 }
 0x43b   :  { %v4203_v7 = vmul.f32 0.015625, %v1588_v46 }
 0x43c   :  { %v3368_v52 = vpop.eup %3367  ;;  %v1805_v25 = vmul.f32 %v4199_v63, %v4199_v63 }
 0x43d   :  { %v1718_v49 = vpop.xlane.xlu0 %1717  ;;  %v1995_v20 = vmul.f32 %v3368_v52, %v1899_v13  ;;  %v1806_v5 = vmul.f32 %v4203_v7, %v4203_v7 }
 0x43e   :  { %v1775_v1 = vmul.f32 0.015625, %v1718_v49  ;;  %v1720_v3 = vpop.xlane.xlu1 %1719 }
 0x43f   :  { %v3370_v4 = vpop.eup %3369  ;;  %v1776_v8 = vmul.f32 0.015625, %v1720_v3 }
 0x440   :  { %v1996_v16 = vmul.f32 %v3370_v4, %v1900_v59  ;;  %v1839_v17 = vsub.f32 %v1775_v1, %v1807_v60  ;;  %v2033_v4 = vmul.f32 %v4216_v15, %v1995_v20 }
 0x441   :  { %v1840_v43 = vsub.f32 %v1776_v8, %v1808_v6  ;;  %v1714_v19 = vpop.xlane.xlu0 %1713  ;;  %v4224_v8 = vld [vmem:[%s4839_s10] ss:$0 sm:$0xff] }
 0x442   :  { %v1871_v27 = vmax.f32 %v1839_v17, 0.0  ;;  %v1773_v33 = vmul.f32 0.015625, %v1714_v19  ;;  %v1716_v36 = vpop.xlane.xlu1 %1715  ;;  %v2034_v49 = vmul.f32 %v4216_v15, %v1996_v16 }
 0x443   :  { %v3372_v10 = vpop.eup %3371  ;;  %v1872_v40 = vmax.f32 %v1840_v43, 0.0  ;;  %v1774_v38 = vmul.f32 0.015625, %v1716_v36 }
 0x444   :  { %v3374_v2 = vpop.eup %3373  ;;  %v1935_v39 = vadd.f32 1e-05, %v1871_v27  ;;  %v1837_v41 = vsub.f32 %v1773_v33, %v1805_v25  ;;  %v1994_v46 = vmul.f32 %v3372_v10, %v1898_v11  ;;  %v2072_v11 = vadd.f32 %v4224_v8, %v2034_v49 }
 0x445   :  { %v1936_v52 = vadd.f32 1e-05, %v1872_v40  ;;  %v1838_v59 = vsub.f32 %v1774_v38, %v1806_v5  ;;  %v1598_v60 = vpop.xlane.xlu0 %1597  ;;  %v1993_v9 = vmul.f32 %v3374_v2, %v1897_v37  ;;  %v2071_v33 = vadd.f32 %v4224_v8, %v2033_v4 }
 0x446   :  { %3375 = vrsqrt.f32 %v1935_v39  ;;  %v1869_v0 = vmax.f32 %v1837_v41, 0.0  ;;  %v1600_v1 = vpop.xlane.xlu1 %1599  ;;  %v2032_v3 = vmul.f32 %v4216_v15, %v1994_v46  ;;  %v4230_v20 = vmul.f32 0.015625, %v1598_v60 }
 0x447   :  { %3377 = vrsqrt.f32 %v1936_v52  ;;  %v1870_v6 = vmax.f32 %v1838_v59, 0.0  ;;  %v2031_v13 = vmul.f32 %v4216_v15, %v1993_v9  ;;  %v4233_v36 = vmul.f32 0.015625, %v1600_v1 }
 0x448   :  { %v1933_v16 = vadd.f32 1e-05, %v1869_v0  ;;  %v2070_v17 = vadd.f32 %v4224_v8, %v2032_v3  ;;  %v2102_v37 = vpack.c.bf16 %v2072_v11, %v2071_v33  ;;  %v1811_v40 = vmul.f32 %v4230_v20, %v4230_v20 }
 0x449   :  { %v1934_v43 = vadd.f32 1e-05, %v1870_v6  ;;  %v1594_v19 = vpop.xlane.xlu0 %1593  ;;  %v2069_v25 = vadd.f32 %v4224_v8, %v2031_v13  ;;  %v1903_v41 = vsub.f32 %v3961_v26, %v4192_v44  ;;  %v1812_v46 = vmul.f32 %v4233_v36, %v4233_v36 }
 0x44a   :  { %3379 = vrsqrt.f32 %v1933_v16  ;;  %v1596_v27 = vpop.xlane.xlu1 %1595  ;;  %v4237_v38 = vmul.f32 0.015625, %v1594_v19  ;;  %v1904_v60 = vsub.f32 %v3965_v31, %v4194_v47  ;;  %v1902_v19 = vsub.f32 %v3972_v35, %v4203_v7 }
 0x44b   :  { %3381 = vrsqrt.f32 %v1934_v43  ;;  %v2101_v10 = vpack.c.bf16 %v2070_v17, %v2069_v25  ;;  %v4243_v49 = vmul.f32 0.015625, %v1596_v27  ;;  %v1901_v17 = vsub.f32 %v3970_v34, %v4199_v63 }
 0x44c   :  { %v1809_v6 = vmul.f32 %v4237_v38, %v4237_v38 }
 0x44d   :  { %3239 = vmatprep.mubr.bf16.mxu1 %v2101_v10  ;;  %v1726_v5 = vpop.xlane.xlu0 %1725  ;;  %v1810_v11 = vmul.f32 %v4243_v49, %v4243_v49 }
 0x44e   :  { %v1779_v2 = vmul.f32 0.015625, %v1726_v5  ;;  %v1728_v39 = vpop.xlane.xlu1 %1727  ;;  %3240 = vmatmul.mubr.bf16.vlgmr.msra.gmra.mrb[64].mxu1 %v2102_v37 }
 0x44f   :  { %v1780_v52 = vmul.f32 0.015625, %v1728_v39 }
 0x450   :  { %v3376_v59 = vpop.eup %3375  ;;  %v1843_v9 = vsub.f32 %v1779_v2, %v1811_v40 }
 0x451   :  { %v3378_v0 = vpop.eup %3377  ;;  %v1844_v1 = vsub.f32 %v1780_v52, %v1812_v46  ;;  %v1722_v3 = vpop.xlane.xlu0 %1721  ;;  %v1999_v4 = vmul.f32 %v3376_v59, %v1903_v41 }
 0x452   :  { %v1875_v13 = vmax.f32 %v1843_v9, 0.0  ;;  %v1777_v26 = vmul.f32 0.015625, %v1722_v3  ;;  %v1724_v44 = vpop.xlane.xlu1 %1723  ;;  %v2000_v16 = vmul.f32 %v3378_v0, %v1904_v60 }
 0x453   :  { %v1876_v43 = vmax.f32 %v1844_v1, 0.0  ;;  %v1778_v31 = vmul.f32 0.015625, %v1724_v44  ;;  %v2037_v2 = vmul.f32 %v4216_v15, %v1999_v4 }
 0x454   :  { %v3380_v47 = vpop.eup %3379  ;;  %v1939_v25 = vadd.f32 1e-05, %v1875_v13  ;;  %v1841_v27 = vsub.f32 %v1777_v26, %v1809_v6  ;;  %v2038_v41 = vmul.f32 %v4216_v15, %v2000_v16 }
 0x455   :  { %v3382_v33 = vpop.eup %3381  ;;  %v1940_v10 = vadd.f32 1e-05, %v1876_v43  ;;  %v1842_v37 = vsub.f32 %v1778_v31, %v1810_v11  ;;  %v1606_v5 = vpop.xlane.xlu0 %1605  ;;  %v1997_v40 = vmul.f32 %v3380_v47, %v1901_v17  ;;  %v2075_v0 = vadd.f32 %v4224_v8, %v2037_v2 }
 0x456   :  { %3383 = vrsqrt.f32 %v1939_v25  ;;  %v1873_v34 = vmax.f32 %v1841_v27, 0.0  ;;  %v1608_v63 = vpop.xlane.xlu1 %1607  ;;  %v1998_v39 = vmul.f32 %v3382_v33, %v1902_v19  ;;  %v4261_v1 = vmul.f32 0.015625, %v1606_v5 }
 0x457   :  { %3385 = vrsqrt.f32 %v1940_v10  ;;  %v1874_v46 = vmax.f32 %v1842_v37, 0.0  ;;  %v2035_v52 = vmul.f32 %v4216_v15, %v1997_v40  ;;  %v2076_v6 = vadd.f32 %v4224_v8, %v2038_v41 }
 0x458   :  { %v1937_v35 = vadd.f32 1e-05, %v1873_v34  ;;  %v2036_v7 = vmul.f32 %v4216_v15, %v1998_v39  ;;  %v4265_v13 = vmul.f32 0.015625, %v1608_v63  ;;  %v1815_v17 = vmul.f32 %v4261_v1, %v4261_v1 }
 0x459   :  { %v1938_v59 = vadd.f32 1e-05, %v1874_v46  ;;  %v1602_v60 = vpop.xlane.xlu0 %1601  ;;  %v2073_v9 = vadd.f32 %v4224_v8, %v2035_v52  ;;  %v2104_v16 = vpack.c.bf16 %v2076_v6, %v2075_v0  ;;  %v1907_v47 = vsub.f32 %v4000_v51, %v4230_v20 }
 0x45a   :  { %3387 = vrsqrt.f32 %v1937_v35  ;;  %v1604_v3 = vpop.xlane.xlu1 %1603  ;;  %v2074_v4 = vadd.f32 %v4224_v8, %v2036_v7  ;;  %v4269_v11 = vmul.f32 0.015625, %v1602_v60  ;;  %v1816_v19 = vmul.f32 %v4265_v13, %v4265_v13 }
 0x45b   :  { %3389 = vrsqrt.f32 %v1938_v59  ;;  %v4275_v25 = vmul.f32 0.015625, %v1604_v3  ;;  %v1908_v10 = vsub.f32 %v4004_v57, %v4233_v36  ;;  %v1905_v46 = vsub.f32 %v4012_v61, %v4237_v38 }
 0x45c   :  { %v2103_v26 = vpack.c.bf16 %v2074_v4, %v2073_v9  ;;  %v1813_v63 = vmul.f32 %v4269_v11, %v4269_v11  ;;  %v1906_v7 = vsub.f32 %v4014_v62, %v4243_v49 }
 0x45d   :  { %v1734_v44 = vpop.xlane.xlu0 %1733  ;;  %v1814_v52 = vmul.f32 %v4275_v25, %v4275_v25 }
 0x45e   :  { %v1783_v43 = vmul.f32 0.015625, %v1734_v44  ;;  %v1736_v31 = vpop.xlane.xlu1 %1735  ;;  %3243 = vmatprep.mubr.bf16.mxu1 %v2103_v26 }
 0x45f   :  { %v1784_v27 = vmul.f32 0.015625, %v1736_v31  ;;  %3244 = vmatmul.mubr.bf16.gmra.mrb[68].mxu1 %v2104_v16 }
 0x460   :  { %v3384_v33 = vpop.eup %3383  ;;  %v1847_v37 = vsub.f32 %v1783_v43, %v1815_v17 }
 0x461   :  { %v3386_v5 = vpop.eup %3385  ;;  %v1848_v40 = vsub.f32 %v1784_v27, %v1816_v19  ;;  %v1730_v2 = vpop.xlane.xlu0 %1729  ;;  %v2003_v34 = vmul.f32 %v3384_v33, %v1907_v47 }
 0x462   :  { %v1879_v51 = vmax.f32 %v1847_v37, 0.0  ;;  %v1781_v20 = vmul.f32 0.015625, %v1730_v2  ;;  %v1732_v39 = vpop.xlane.xlu1 %1731  ;;  %v2004_v41 = vmul.f32 %v3386_v5, %v1908_v10 }
 0x463   :  { %v1880_v35 = vmax.f32 %v1848_v40, 0.0  ;;  %v1782_v57 = vmul.f32 0.015625, %v1732_v39  ;;  %v2041_v26 = vmul.f32 %v4216_v15, %v2003_v34 }
 0x464   :  { %v3388_v36 = vpop.eup %3387  ;;  %v1943_v59 = vadd.f32 1e-05, %v1879_v51  ;;  %v1845_v60 = vsub.f32 %v1781_v20, %v1813_v63  ;;  %v2042_v16 = vmul.f32 %v4216_v15, %v2004_v41 }
 0x465   :  { %v3390_v9 = vpop.eup %3389  ;;  %v1944_v0 = vadd.f32 1e-05, %v1880_v35  ;;  %v1846_v3 = vsub.f32 %v1782_v57, %v1814_v52  ;;  %v1614_v4 = vpop.xlane.xlu0 %1613  ;;  %v2001_v6 = vmul.f32 %v3388_v36, %v1905_v46  ;;  %v2079_v27 = vadd.f32 %v4224_v8, %v2041_v26 }
 0x466   :  { %3391 = vrsqrt.f32 %v1943_v59  ;;  %v1877_v61 = vmax.f32 %v1845_v60, 0.0  ;;  %v1616_v38 = vpop.xlane.xlu1 %1615  ;;  %v2002_v44 = vmul.f32 %v3390_v9, %v1906_v7  ;;  %v4293_v33 = vmul.f32 0.015625, %v1614_v4 }
 0x467   :  { %3393 = vrsqrt.f32 %v1944_v0  ;;  %v1878_v17 = vmax.f32 %v1846_v3, 0.0  ;;  %v2039_v43 = vmul.f32 %v4216_v15, %v2001_v6  ;;  %v2080_v5 = vadd.f32 %v4224_v8, %v2042_v16 }
 0x468   :  { %v1941_v62 = vadd.f32 1e-05, %v1877_v61  ;;  %v2040_v49 = vmul.f32 %v4216_v15, %v2002_v44  ;;  %v4297_v40 = vmul.f32 0.015625, %v1616_v38  ;;  %v1819_v51 = vmul.f32 %v4293_v33, %v4293_v33 }
 0x469   :  { %v1942_v31 = vadd.f32 1e-05, %v1878_v17  ;;  %v1610_v47 = vpop.xlane.xlu0 %1609  ;;  %v2077_v19 = vadd.f32 %v4224_v8, %v2039_v43  ;;  %v2106_v63 = vpack.c.bf16 %v2080_v5, %v2079_v27  ;;  %v1911_v46 = vsub.f32 %v4042_v18, %v4261_v1 }
 0x46a   :  { %3395 = vrsqrt.f32 %v1941_v62  ;;  %v1612_v10 = vpop.xlane.xlu1 %1611  ;;  %v2078_v37 = vadd.f32 %v4224_v8, %v2040_v49  ;;  %v4301_v20 = vmul.f32 0.015625, %v1610_v47  ;;  %v1820_v52 = vmul.f32 %v4297_v40, %v4297_v40 }
 0x46b   :  { %3397 = vrsqrt.f32 %v1942_v31  ;;  %v4307_v35 = vmul.f32 0.015625, %v1612_v10  ;;  %v1912_v7 = vsub.f32 %v4046_v23, %v4265_v13  ;;  %v1909_v61 = vsub.f32 %v4054_v28, %v4269_v11 }
 0x46c   :  { %v2105_v2 = vpack.c.bf16 %v2078_v37, %v2077_v19  ;;  %v1817_v4 = vmul.f32 %v4301_v20, %v4301_v20  ;;  %v1910_v16 = vsub.f32 %v4056_v29, %v4275_v25 }
 0x46d   :  { %v1742_v34 = vpop.xlane.xlu0 %1741  ;;  %v1818_v38 = vmul.f32 %v4307_v35, %v4307_v35 }
 0x46e   :  { %v1787_v39 = vmul.f32 0.015625, %v1742_v34  ;;  %v1744_v41 = vpop.xlane.xlu1 %1743  ;;  %3247 = vmatprep.mubr.bf16.mxu1 %v2105_v2 }
 0x46f   :  { %v1788_v57 = vmul.f32 0.015625, %v1744_v41  ;;  %3248 = vmatmul.mubr.bf16.gmra.mrb[72].mxu1 %v2106_v63 }
 0x470   :  { %v3392_v36 = vpop.eup %3391  ;;  %v1851_v59 = vsub.f32 %v1787_v39, %v1819_v51 }
 0x471   :  { %v3394_v60 = vpop.eup %3393  ;;  %v1852_v9 = vsub.f32 %v1788_v57, %v1820_v52  ;;  %v1738_v0 = vpop.xlane.xlu0 %1737  ;;  %v2007_v3 = vmul.f32 %v3392_v36, %v1911_v46 }
 0x472   :  { %v1883_v18 = vmax.f32 %v1851_v59, 0.0  ;;  %v1785_v1 = vmul.f32 0.015625, %v1738_v0  ;;  %v1740_v6 = vpop.xlane.xlu1 %1739  ;;  %v2008_v26 = vmul.f32 %v3394_v60, %v1912_v7 }
 0x473   :  { %v1884_v44 = vmax.f32 %v1852_v9, 0.0  ;;  %v1786_v23 = vmul.f32 0.015625, %v1740_v6  ;;  %v2045_v27 = vmul.f32 %v4216_v15, %v2007_v3 }
 0x474   :  { %v3396_v13 = vpop.eup %3395  ;;  %v1947_v17 = vadd.f32 1e-05, %v1883_v18  ;;  %v1849_v43 = vsub.f32 %v1785_v1, %v1817_v4  ;;  %v2046_v37 = vmul.f32 %v4216_v15, %v2008_v26  ;;  %v1915_v18 = vsub.f32 %v4075_v45, %v4293_v33 }
 0x475   :  { %v3398_v62 = vpop.eup %3397  ;;  %v1948_v49 = vadd.f32 1e-05, %v1884_v44  ;;  %v1850_v31 = vsub.f32 %v1786_v23, %v1818_v38  ;;  %v1622_v47 = vpop.xlane.xlu0 %1621  ;;  %v2005_v19 = vmul.f32 %v3396_v13, %v1909_v61  ;;  %v2083_v39 = vadd.f32 %v4224_v8, %v2045_v27 }
 0x476   :  { %3399 = vrsqrt.f32 %v1947_v17  ;;  %v1881_v28 = vmax.f32 %v1849_v43, 0.0  ;;  %v1624_v11 = vpop.xlane.xlu1 %1623  ;;  %v2006_v10 = vmul.f32 %v3398_v62, %v1910_v16  ;;  %v4325_v41 = vmul.f32 0.015625, %v1622_v47 }
 0x477   :  { %3401 = vrsqrt.f32 %v1948_v49  ;;  %v1882_v5 = vmax.f32 %v1850_v31, 0.0  ;;  %v2043_v2 = vmul.f32 %v4216_v15, %v2005_v19  ;;  %v2084_v57 = vadd.f32 %v4224_v8, %v2046_v37 }
 0x478   :  { %v1945_v29 = vadd.f32 1e-05, %v1881_v28  ;;  %v2044_v25 = vmul.f32 %v4216_v15, %v2006_v10  ;;  %v4329_v36 = vmul.f32 0.015625, %v1624_v11  ;;  %v1823_v9 = vmul.f32 %v4325_v41, %v4325_v41 }
 0x479   :  { %v1946_v34 = vadd.f32 1e-05, %v1882_v5  ;;  %v1618_v63 = vpop.xlane.xlu0 %1617  ;;  %v2081_v51 = vadd.f32 %v4224_v8, %v2043_v2  ;;  %v2108_v60 = vpack.c.bf16 %v2084_v57, %v2083_v39  ;;  %v1916_v38 = vsub.f32 %v4079_v50, %v4297_v40 }
 0x47a   :  { %3403 = vrsqrt.f32 %v1945_v29  ;;  %v1620_v46 = vpop.xlane.xlu1 %1619  ;;  %v2082_v52 = vadd.f32 %v4224_v8, %v2044_v25  ;;  %v4333_v0 = vmul.f32 0.015625, %v1618_v63  ;;  %v1824_v1 = vmul.f32 %v4329_v36, %v4329_v36 }
 0x47b   :  { %3405 = vrsqrt.f32 %v1946_v34  ;;  %v4339_v6 = vmul.f32 0.015625, %v1620_v46  ;;  %v1913_v31 = vsub.f32 %v4084_v55, %v4301_v20  ;;  %v1914_v27 = vsub.f32 %v4086_v56, %v4307_v35 }
 0x47c   :  { %v2107_v7 = vpack.c.bf16 %v2082_v52, %v2081_v51  ;;  %v1821_v43 = vmul.f32 %v4333_v0, %v4333_v0 }
 0x47d   :  { %v1750_v59 = vpop.xlane.xlu0 %1749  ;;  %v1822_v47 = vmul.f32 %v4339_v6, %v4339_v6 }
 0x47e   :  { %v1791_v3 = vmul.f32 0.015625, %v1750_v59  ;;  %v1752_v4 = vpop.xlane.xlu1 %1751  ;;  %3251 = vmatprep.mubr.bf16.mxu1 %v2107_v7 }
 0x47f   :  { %v1792_v26 = vmul.f32 0.015625, %v1752_v4  ;;  %3252 = vmatmul.mubr.bf16.gmra.mrb[76].mxu1 %v2108_v60 }
 0x480   :  { %v3400_v61 = vpop.eup %3399  ;;  %v1855_v44 = vsub.f32 %v1791_v3, %v1823_v9 }
 0x481   :  { %v3402_v23 = vpop.eup %3401  ;;  %v1856_v13 = vsub.f32 %v1792_v26, %v1824_v1  ;;  %v1746_v16 = vpop.xlane.xlu0 %1745  ;;  %v2011_v17 = vmul.f32 %v3400_v61, %v1915_v18 }
 0x482   :  { %v1887_v45 = vmax.f32 %v1855_v44, 0.0  ;;  %v1789_v33 = vmul.f32 0.015625, %v1746_v16  ;;  %v1748_v62 = vpop.xlane.xlu1 %1747  ;;  %v2012_v49 = vmul.f32 %v3402_v23, %v1916_v38 }
 0x483   :  { %v1888_v19 = vmax.f32 %v1856_v13, 0.0  ;;  %v1790_v50 = vmul.f32 0.015625, %v1748_v62  ;;  %v2049_v25 = vmul.f32 %v4216_v15, %v2011_v17  ;;  %v1919_v13 = vsub.f32 %v4105_v12, %v4325_v41 }
 0x484   :  { %v3404_v40 = vpop.eup %3403  ;;  %v1951_v28 = vadd.f32 1e-05, %v1887_v45  ;;  %v1853_v11 = vsub.f32 %v1789_v33, %v1821_v43  ;;  %v2050_v63 = vmul.f32 %v4216_v15, %v2012_v49  ;;  %v1920_v33 = vsub.f32 %v4109_v54, %v4329_v36 }
 0x485   :  { %v3406_v10 = vpop.eup %3405  ;;  %v1952_v37 = vadd.f32 1e-05, %v1888_v19  ;;  %v1854_v5 = vsub.f32 %v1790_v50, %v1822_v47  ;;  %v1630_v2 = vpop.xlane.xlu0 %1629  ;;  %v2009_v29 = vmul.f32 %v3404_v40, %v1913_v31  ;;  %v2087_v7 = vadd.f32 %v4224_v8, %v2049_v25 }
 0x486   :  { %3407 = vrsqrt.f32 %v1951_v28  ;;  %v1885_v55 = vmax.f32 %v1853_v11, 0.0  ;;  %v1632_v20 = vpop.xlane.xlu1 %1631  ;;  %v2010_v34 = vmul.f32 %v3406_v10, %v1914_v27  ;;  %v4357_v59 = vmul.f32 0.015625, %v1630_v2 }
 0x487   :  { %3409 = vrsqrt.f32 %v1952_v37  ;;  %v1886_v51 = vmax.f32 %v1854_v5, 0.0  ;;  %v2047_v39 = vmul.f32 %v4216_v15, %v2009_v29  ;;  %v2088_v3 = vadd.f32 %v4224_v8, %v2050_v63 }
 0x488   :  { %v1949_v56 = vadd.f32 1e-05, %v1885_v55  ;;  %v2048_v35 = vmul.f32 %v4216_v15, %v2010_v34  ;;  %v4361_v4 = vmul.f32 0.015625, %v1632_v20  ;;  %v1827_v61 = vmul.f32 %v4357_v59, %v4357_v59 }
 0x489   :  { %v1950_v46 = vadd.f32 1e-05, %v1886_v51  ;;  %v1626_v52 = vpop.xlane.xlu0 %1625  ;;  %v2085_v57 = vadd.f32 %v4224_v8, %v2047_v39  ;;  %v2110_v26 = vpack.c.bf16 %v2088_v3, %v2087_v7  ;;  %v1917_v28 = vsub.f32 %v4114_v21, %v4333_v0 }
 0x48a   :  { %3411 = vrsqrt.f32 %v1949_v56  ;;  %v1628_v60 = vpop.xlane.xlu1 %1627  ;;  %v2086_v9 = vadd.f32 %v4224_v8, %v2048_v35  ;;  %v4365_v38 = vmul.f32 0.015625, %v1626_v52  ;;  %v1828_v16 = vmul.f32 %v4361_v4, %v4361_v4 }
 0x48b   :  { %3413 = vrsqrt.f32 %v1950_v46  ;;  %v4371_v17 = vmul.f32 0.015625, %v1628_v60  ;;  %v1918_v37 = vsub.f32 %v4116_v22, %v4339_v6 }
 0x48c   :  { %v2109_v18 = vpack.c.bf16 %v2086_v9, %v2085_v57  ;;  %v1825_v50 = vmul.f32 %v4365_v38, %v4365_v38 }
 0x48d   :  { %v1758_v1 = vpop.xlane.xlu0 %1757  ;;  %v1826_v11 = vmul.f32 %v4371_v17, %v4371_v17 }
 0x48e   :  { %v1795_v44 = vmul.f32 0.015625, %v1758_v1  ;;  %v1760_v23 = vpop.xlane.xlu1 %1759  ;;  %3255 = vmatprep.mubr.bf16.mxu1 %v2109_v18 }
 0x48f   :  { %v1796_v43 = vmul.f32 0.015625, %v1760_v23  ;;  %3256 = vmatmul.mubr.bf16.gmra.mrb[80].mxu1 %v2110_v26 }
 0x490   :  { %v3408_v45 = vpop.eup %3407  ;;  %v1859_v62 = vsub.f32 %v1795_v44, %v1827_v61 }
 0x491   :  { %v3410_v49 = vpop.eup %3409  ;;  %v1860_v31 = vsub.f32 %v1796_v43, %v1828_v16  ;;  %v1754_v47 = vpop.xlane.xlu0 %1753  ;;  %v2015_v19 = vmul.f32 %v3408_v45, %v1919_v13  ;;  %v1923_v45 = vsub.f32 %v4135_v42, %v4357_v59 }
 0x492   :  { %v1891_v12 = vmax.f32 %v1859_v62, 0.0  ;;  %v1793_v41 = vmul.f32 0.015625, %v1754_v47  ;;  %v1756_v40 = vpop.xlane.xlu1 %1755  ;;  %v2016_v27 = vmul.f32 %v3410_v49, %v1920_v33  ;;  %v1924_v47 = vsub.f32 %v4139_v48, %v4361_v4 }
 0x493   :  { %v1892_v10 = vmax.f32 %v1860_v31, 0.0  ;;  %v1794_v54 = vmul.f32 0.015625, %v1756_v40  ;;  %v2053_v63 = vmul.f32 %v4216_v15, %v2015_v19 }
 0x494   :  { %v3412_v36 = vpop.eup %3411  ;;  %v1955_v5 = vadd.f32 1e-05, %v1891_v12  ;;  %v1857_v2 = vsub.f32 %v1793_v41, %v1825_v50  ;;  %v2054_v39 = vmul.f32 %v4216_v15, %v2016_v27 }
 0x495   :  { %v3414_v29 = vpop.eup %3413  ;;  %v1956_v25 = vadd.f32 1e-05, %v1892_v10  ;;  %v1858_v55 = vsub.f32 %v1794_v54, %v1826_v11  ;;  %v1638_v20 = vpop.xlane.xlu0 %1637  ;;  %v2013_v34 = vmul.f32 %v3412_v36, %v1917_v28  ;;  %v2091_v7 = vadd.f32 %v4224_v8, %v2053_v63 }
 0x496   :  { %3415 = vrsqrt.f32 %v1955_v5  ;;  %v1889_v21 = vmax.f32 %v1857_v2, 0.0  ;;  %v1640_v0 = vpop.xlane.xlu1 %1639  ;;  %v2014_v51 = vmul.f32 %v3414_v29, %v1918_v37  ;;  %v2092_v18 = vadd.f32 %v4224_v8, %v2054_v39 }
 0x497   :  { %3417 = vrsqrt.f32 %v1956_v25  ;;  %v1890_v56 = vmax.f32 %v1858_v55, 0.0  ;;  %v2051_v35 = vmul.f32 %v4216_v15, %v2013_v34  ;;  %v4395_v23 = vmul.f32 0.015625, %v1638_v20 }
 0x498   :  { %v1953_v22 = vadd.f32 1e-05, %v1889_v21  ;;  %v2052_v6 = vmul.f32 %v4216_v15, %v2014_v51  ;;  %v2112_v44 = vpack.c.bf16 %v2092_v18, %v2091_v7  ;;  %v4401_v33 = vmul.f32 0.015625, %v1640_v0 }
 0x499   :  { %v1954_v46 = vadd.f32 1e-05, %v1890_v56  ;;  %v1634_v52 = vpop.xlane.xlu0 %1633  ;;  %v2089_v57 = vadd.f32 %v4224_v8, %v2051_v35  ;;  %v1831_v27 = vmul.f32 %v4395_v23, %v4395_v23  ;;  %v1921_v10 = vsub.f32 %v4144_v53, %v4365_v38 }
 0x49a   :  { %3419 = vrsqrt.f32 %v1953_v22  ;;  %v4389_v60 = vmul.f32 0.015625, %v1634_v52  ;;  %v1636_v9 = vpop.xlane.xlu1 %1635  ;;  %v2090_v3 = vadd.f32 %v4224_v8, %v2052_v6  ;;  %v1832_v54 = vmul.f32 %v4401_v33, %v4401_v33 }
 0x49b   :  { %3421 = vrsqrt.f32 %v1954_v46  ;;  %v4393_v1 = vmul.f32 0.015625, %v1636_v9  ;;  %v1922_v37 = vsub.f32 %v4146_v58, %v4371_v17 }
 0x49c   :  { %v2111_v26 = vpack.c.bf16 %v2090_v3, %v2089_v57  ;;  %v1829_v13 = vmul.f32 %v4389_v60, %v4389_v60  ;;  %v1925_v52 = vsub.f32 %v4174_v30, %v4389_v60 }
 0x49d   :  { %v1762_v61 = vpop.xlane.xlu0 %1761  ;;  %v1830_v62 = vmul.f32 %v4393_v1, %v4393_v1  ;;  %v1926_v7 = vsub.f32 %v4176_v32, %v4393_v1 }
 0x49e   :  { %v1797_v16 = vmul.f32 0.015625, %v1762_v61  ;;  %v1764_v43 = vpop.xlane.xlu1 %1763  ;;  %3259 = vmatprep.mubr.bf16.mxu1 %v2111_v26  ;;  %v1927_v26 = vsub.f32 %v4165_v14, %v4395_v23 }
 0x49f   :  { %v1798_v49 = vmul.f32 0.015625, %v1764_v43  ;;  %3260 = vmatmul.mubr.bf16.gmra.mrb[84].mxu1 %v2112_v44 }
 0x4a0   :  { %v3416_v31 = vpop.eup %3415  ;;  %v1861_v19 = vsub.f32 %v1797_v16, %v1829_v13  ;;  %v1928_v13 = vsub.f32 %v4169_v24, %v4401_v33  ;;  %v4442_v33 = vld [vmem:[%s4840_s12] ss:$0 sm:$0xff] }
 0x4a1   :  { %v3418_v50 = vpop.eup %3417  ;;  %v1862_v12 = vsub.f32 %v1798_v49, %v1830_v62  ;;  %v1766_v41 = vpop.xlane.xlu0 %1765  ;;  %v2019_v40 = vmul.f32 %v3416_v31, %v1923_v45 }
 0x4a2   :  { %v1893_v42 = vmax.f32 %v1861_v19, 0.0  ;;  %v1799_v59 = vmul.f32 0.015625, %v1766_v41  ;;  %v1768_v28 = vpop.xlane.xlu1 %1767  ;;  %v2020_v11 = vmul.f32 %v3418_v50, %v1924_v47 }
 0x4a3   :  { %v1894_v36 = vmax.f32 %v1862_v12, 0.0  ;;  %v1800_v48 = vmul.f32 0.015625, %v1768_v28  ;;  %v2057_v29 = vmul.f32 %v4216_v15, %v2019_v40 }
 0x4a4   :  { %v3420_v4 = vpop.eup %3419  ;;  %v1957_v5 = vadd.f32 1e-05, %v1893_v42  ;;  %v1863_v2 = vsub.f32 %v1799_v59, %v1831_v27  ;;  %v2058_v63 = vmul.f32 %v4216_v15, %v2020_v11 }
 0x4a5   :  { %v3422_v25 = vpop.eup %3421  ;;  %v1958_v55 = vadd.f32 1e-05, %v1894_v36  ;;  %v1864_v20 = vsub.f32 %v1800_v48, %v1832_v54  ;;  %v2017_v34 = vmul.f32 %v3420_v4, %v1921_v10  ;;  %v2095_v56 = vadd.f32 %v4224_v8, %v2057_v29 }
 0x4a6   :  { %3423 = vrsqrt.f32 %v1957_v5  ;;  %v1895_v53 = vmax.f32 %v1863_v2, 0.0  ;;  %v2018_v38 = vmul.f32 %v3422_v25, %v1922_v37  ;;  %v2096_v35 = vadd.f32 %v4224_v8, %v2058_v63 }
 0x4a7   :  { %3425 = vrsqrt.f32 %v1958_v55  ;;  %v1896_v21 = vmax.f32 %v1864_v20, 0.0  ;;  %v2055_v0 = vmul.f32 %v4216_v15, %v2017_v34 }
 0x4a8   :  { %v1959_v51 = vadd.f32 1e-05, %v1895_v53  ;;  %v2056_v58 = vmul.f32 %v4216_v15, %v2018_v38  ;;  %v2114_v46 = vpack.c.bf16 %v2096_v35, %v2095_v56 }
 0x4a9   :  { %v1960_v17 = vadd.f32 1e-05, %v1896_v21  ;;  %v2093_v39 = vadd.f32 %v4224_v8, %v2055_v0 }
 0x4aa   :  { %3427 = vrsqrt.f32 %v1959_v51  ;;  %v2094_v22 = vadd.f32 %v4224_v8, %v2056_v58 }
 0x4ab   :  { %3429 = vrsqrt.f32 %v1960_v17 }
 0x4ac   :  { %v2113_v6 = vpack.c.bf16 %v2094_v22, %v2093_v39 }
 0x4ae   :  { %3263 = vmatprep.mubr.bf16.mxu1 %v2113_v6 }
 0x4af   :  { %3264 = vmatmul.mubr.bf16.gmra.mrb[88].mxu1 %v2114_v46 }
 0x4b0   :  { %v3424_v57 = vpop.eup %3423 }
 0x4b1   :  { %v3426_v9 = vpop.eup %3425  ;;  %v2021_v3 = vmul.f32 %v3424_v57, %v1925_v52 }
 0x4b2   :  { %v2022_v18 = vmul.f32 %v3426_v9, %v1926_v7 }
 0x4b3   :  { %v2059_v61 = vmul.f32 %v4216_v15, %v2021_v3 }
 0x4b4   :  { %v3428_v44 = vpop.eup %3427  ;;  %v2060_v16 = vmul.f32 %v4216_v15, %v2022_v18 }
 0x4b5   :  { %v3430_v30 = vpop.eup %3429  ;;  %v2097_v60 = vadd.f32 %v4224_v8, %v2059_v61  ;;  %v2023_v43 = vmul.f32 %v3428_v44, %v1927_v26 }
 0x4b6   :  { %v2098_v32 = vadd.f32 %v4224_v8, %v2060_v16  ;;  %v2024_v1 = vmul.f32 %v3430_v30, %v1928_v13 }
 0x4b7   :  { %v2061_v45 = vmul.f32 %v4216_v15, %v2023_v43 }
 0x4b8   :  { %v2115_v62 = vpack.c.bf16 %v2098_v32, %v2097_v60  ;;  %v2062_v14 = vmul.f32 %v4216_v15, %v2024_v1 }
 0x4b9   :  { %v2099_v23 = vadd.f32 %v4224_v8, %v2061_v45 }
 0x4ba   :  { %3267 = vmatprep.mubr.bf16.mxu1 %v2115_v62  ;;  %v2100_v49 = vadd.f32 %v4224_v8, %v2062_v14 }
 0x4bc   :  { %v2116_v24 = vpack.c.bf16 %v2100_v49, %v2099_v23 }
 0x4be   :  { %3268 = vmatmul.mubr.bf16.gmra.mrb[92].mxu1 %v2116_v24 }
 0x521   :  { %v3241_v31 = vpop.f32.mrb[64].mxu1 }
 0x522   :  { %v4445_v47 = vadd.f32 %v3241_v31, %v4442_v33  ;;  %v2221_v19 = vpop.f32.mrb[65].mxu1 }
 0x523   :  { %v3242_v50 = vpop.f32.mrb[66].mxu1  ;;  %v4452_v8 = vadd.f32 %v4442_v33, %v2221_v19 }
 0x524   :  { %v4448_v15 = vadd.f32 %v3242_v50, %v4442_v33  ;;  %2352 = vmax.xlane.f32.xlu0 %v4445_v47  ;;  %v2224_v12 = vpop.f32.mrb[67].mxu1 }
 0x525   :  { %v4456_v41 = vadd.f32 %v4442_v33, %v2224_v12 }
 0x526   :  { %2354 = vmax.xlane.f32.xlu1 %v4448_v15 }
 0x528   :  { %2348 = vmax.xlane.f32.xlu0 %v4452_v8 }
 0x52a   :  { %2350 = vmax.xlane.f32.xlu1 %v4456_v41 }
 0x532   :  { %v3245_v40 = vpop.f32.mrb[68].mxu1 }
 0x533   :  { %v4461_v27 = vadd.f32 %v3245_v40, %v4442_v33  ;;  %v2237_v42 = vpop.f32.mrb[69].mxu1 }
 0x534   :  { %v3246_v59 = vpop.f32.mrb[70].mxu1  ;;  %v4468_v10 = vadd.f32 %v4442_v33, %v2237_v42 }
 0x535   :  { %v4464_v28 = vadd.f32 %v3246_v59, %v4442_v33  ;;  %2360 = vmax.xlane.f32.xlu0 %v4461_v27  ;;  %v2240_v11 = vpop.f32.mrb[71].mxu1 }
 0x536   :  { %v4472_v54 = vadd.f32 %v4442_v33, %v2240_v11 }
 0x537   :  { %2362 = vmax.xlane.f32.xlu1 %v4464_v28 }
 0x539   :  { %2356 = vmax.xlane.f32.xlu0 %v4468_v10 }
 0x53b   :  { %2358 = vmax.xlane.f32.xlu1 %v4472_v54 }
 0x542   :  { %v3249_v36 = vpop.f32.mrb[72].mxu1 }
 0x543   :  { %v4477_v48 = vadd.f32 %v3249_v36, %v4442_v33  ;;  %v2253_v4 = vpop.f32.mrb[73].mxu1 }
 0x544   :  { %v3250_v37 = vpop.f32.mrb[74].mxu1  ;;  %v4484_v29 = vadd.f32 %v4442_v33, %v2253_v4 }
 0x545   :  { %v4480_v5 = vadd.f32 %v3250_v37, %v4442_v33  ;;  %2368 = vmax.xlane.f32.xlu0 %v4477_v48  ;;  %v2256_v2 = vpop.f32.mrb[75].mxu1 }
 0x546   :  { %v4488_v25 = vadd.f32 %v4442_v33, %v2256_v2 }
 0x547   :  { %2370 = vmax.xlane.f32.xlu1 %v4480_v5 }
 0x549   :  { %2364 = vmax.xlane.f32.xlu0 %v4484_v29 }
 0x54b   :  { %2366 = vmax.xlane.f32.xlu1 %v4488_v25 }
 0x552   :  { %v3253_v55 = vpop.f32.mrb[76].mxu1 }
 0x553   :  { %v4493_v20 = vadd.f32 %v3253_v55, %v4442_v33  ;;  %v2269_v34 = vpop.f32.mrb[77].mxu1 }
 0x554   :  { %v3254_v63 = vpop.f32.mrb[78].mxu1  ;;  %v4500_v21 = vadd.f32 %v4442_v33, %v2269_v34 }
 0x555   :  { %v4496_v53 = vadd.f32 %v3254_v63, %v4442_v33  ;;  %2376 = vmax.xlane.f32.xlu0 %v4493_v20  ;;  %v2272_v38 = vpop.f32.mrb[79].mxu1 }
 0x556   :  { %v4504_v0 = vadd.f32 %v4442_v33, %v2272_v38 }
 0x557   :  { %2378 = vmax.xlane.f32.xlu1 %v4496_v53 }
 0x559   :  { %2372 = vmax.xlane.f32.xlu0 %v4500_v21 }
 0x55b   :  { %2374 = vmax.xlane.f32.xlu1 %v4504_v0 }
 0x562   :  { %v3257_v51 = vpop.f32.mrb[80].mxu1 }
 0x563   :  { %v4509_v58 = vadd.f32 %v3257_v51, %v4442_v33  ;;  %v2285_v17 = vpop.f32.mrb[81].mxu1 }
 0x564   :  { %v3258_v39 = vpop.f32.mrb[82].mxu1  ;;  %v4516_v22 = vadd.f32 %v4442_v33, %v2285_v17 }
 0x565   :  { %v4512_v56 = vadd.f32 %v3258_v39, %v4442_v33  ;;  %2384 = vmax.xlane.f32.xlu0 %v4509_v58  ;;  %v2288_v35 = vpop.f32.mrb[83].mxu1 }
 0x566   :  { %v4520_v6 = vadd.f32 %v4442_v33, %v2288_v35 }
 0x567   :  { %2386 = vmax.xlane.f32.xlu1 %v4512_v56 }
 0x569   :  { %2380 = vmax.xlane.f32.xlu0 %v4516_v22 }
 0x56b   :  { %2382 = vmax.xlane.f32.xlu1 %v4520_v6 }
 0x572   :  { %v3261_v46 = vpop.f32.mrb[84].mxu1 }
 0x573   :  { %v4525_v52 = vadd.f32 %v3261_v46, %v4442_v33  ;;  %v2301_v57 = vpop.f32.mrb[85].mxu1 }
 0x574   :  { %v3262_v7 = vpop.f32.mrb[86].mxu1  ;;  %v4532_v18 = vadd.f32 %v4442_v33, %v2301_v57 }
 0x575   :  { %v4528_v9 = vadd.f32 %v3262_v7, %v4442_v33  ;;  %2392 = vmax.xlane.f32.xlu0 %v4525_v52  ;;  %v2304_v3 = vpop.f32.mrb[87].mxu1 }
 0x576   :  { %v4536_v26 = vadd.f32 %v4442_v33, %v2304_v3 }
 0x577   :  { %2394 = vmax.xlane.f32.xlu1 %v4528_v9 }
 0x579   :  { %2388 = vmax.xlane.f32.xlu0 %v4532_v18 }
 0x57b   :  { %2390 = vmax.xlane.f32.xlu1 %v4536_v26 }
 0x582   :  { %v3265_v61 = vpop.f32.mrb[88].mxu1 }
 0x583   :  { %v4541_v44 = vadd.f32 %v3265_v61, %v4442_v33  ;;  %v2317_v13 = vpop.f32.mrb[89].mxu1 }
 0x584   :  { %v3266_v16 = vpop.f32.mrb[90].mxu1  ;;  %v4548_v43 = vadd.f32 %v4442_v33, %v2317_v13 }
 0x585   :  { %v4544_v30 = vadd.f32 %v3266_v16, %v4442_v33  ;;  %2400 = vmax.xlane.f32.xlu0 %v4541_v44  ;;  %v2320_v60 = vpop.f32.mrb[91].mxu1 }
 0x586   :  { %v4552_v32 = vadd.f32 %v4442_v33, %v2320_v60 }
 0x587   :  { %2402 = vmax.xlane.f32.xlu1 %v4544_v30 }
 0x589   :  { %2396 = vmax.xlane.f32.xlu0 %v4548_v43 }
 0x58b   :  { %2398 = vmax.xlane.f32.xlu1 %v4552_v32 }
 0x591   :  { %v3269_v1 = vpop.f32.mrb[92].mxu1 }
 0x592   :  { %v2333_v45 = vpop.f32.mrb[93].mxu1  ;;  %v4564_v24 = vadd.f32 %v3269_v1, %v4442_v33 }
 0x593   :  { %v4557_v62 = vadd.f32 %v4442_v33, %v2333_v45  ;;  %v3270_v14 = vpop.f32.mrb[94].mxu1 }
 0x594   :  { %v2336_v23 = vpop.f32.mrb[95].mxu1  ;;  %v4568_v31 = vadd.f32 %v3270_v14, %v4442_v33 }
 0x595   :  { %v4560_v49 = vadd.f32 %v4442_v33, %v2336_v23  ;;  %2404 = vmax.xlane.f32.xlu0 %v4557_v62 }
 0x597   :  { %2406 = vmax.xlane.f32.xlu1 %v4560_v49 }
 0x599   :  { %2408 = vmax.xlane.f32.xlu0 %v4564_v24 }
 0x59b   :  { %2410 = vmax.xlane.f32.xlu1 %v4568_v31 }
 0x5b1   :  { %v2353_v19 = vpop.xlane.xlu0 %2352 }
 0x5b2   :  { %v4573_v50 = vsub.f32 %v4445_v47, %v2353_v19 }
 0x5b3   :  { %v2355_v12 = vpop.xlane.xlu1 %2354 }
 0x5b4   :  { %v2448_v40 = vmul.f32 1.442695, %v4573_v50  ;;  %v4577_v42 = vsub.f32 %v4448_v15, %v2355_v12 }
 0x5b5   :  { %v2349_v59 = vpop.xlane.xlu0 %2348 }
 0x5b6   :  { %3431 = vpow2.f32 %v2448_v40  ;;  %v2450_v11 = vmul.f32 1.442695, %v4577_v42  ;;  %v4581_v33 = vsub.f32 %v4452_v8, %v2349_v59 }
 0x5b7   :  { %v2351_v36 = vpop.xlane.xlu1 %2350 }
 0x5b8   :  { %3433 = vpow2.f32 %v2450_v11  ;;  %v2444_v4 = vmul.f32 1.442695, %v4581_v33  ;;  %v4585_v47 = vsub.f32 %v4456_v41, %v2351_v36 }
 0x5ba   :  { %3435 = vpow2.f32 %v2444_v4  ;;  %v2446_v37 = vmul.f32 1.442695, %v4585_v47 }
 0x5bc   :  { %3437 = vpow2.f32 %v2446_v37 }
 0x5c0   :  { %v3432_v15 = vpop.eup %3431 }
 0x5c1   :  { %2512 = vadd.xlane.f32.xlu0 %v3432_v15 }
 0x5c2   :  { %v3434_v2 = vpop.eup %3433  ;;  %v2361_v55 = vpop.xlane.xlu0 %2360 }
 0x5c3   :  { %v4589_v34 = vsub.f32 %v4461_v27, %v2361_v55  ;;  %2514 = vadd.xlane.f32.xlu1 %v3434_v2 }
 0x5c4   :  { %v3436_v8 = vpop.eup %3435  ;;  %v2363_v63 = vpop.xlane.xlu1 %2362 }
 0x5c5   :  { %v2456_v38 = vmul.f32 1.442695, %v4589_v34  ;;  %v4593_v51 = vsub.f32 %v4464_v28, %v2363_v63  ;;  %2508 = vadd.xlane.f32.xlu0 %v3436_v8 }
 0x5c6   :  { %v3438_v41 = vpop.eup %3437  ;;  %v2357_v17 = vpop.xlane.xlu0 %2356 }
 0x5c7   :  { %3439 = vpow2.f32 %v2456_v38  ;;  %v2458_v39 = vmul.f32 1.442695, %v4593_v51  ;;  %v4597_v35 = vsub.f32 %v4468_v10, %v2357_v17  ;;  %2510 = vadd.xlane.f32.xlu1 %v3438_v41 }
 0x5c8   :  { %v2359_v27 = vpop.xlane.xlu1 %2358 }
 0x5c9   :  { %3441 = vpow2.f32 %v2458_v39  ;;  %v2452_v46 = vmul.f32 1.442695, %v4597_v35  ;;  %v4601_v57 = vsub.f32 %v4472_v54, %v2359_v27 }
 0x5cb   :  { %3443 = vpow2.f32 %v2452_v46  ;;  %v2454_v28 = vmul.f32 1.442695, %v4601_v57 }
 0x5cd   :  { %3445 = vpow2.f32 %v2454_v28 }
 0x5d1   :  { %v3440_v7 = vpop.eup %3439 }
 0x5d2   :  { %2520 = vadd.xlane.f32.xlu0 %v3440_v7  ;;  %v2369_v3 = vpop.xlane.xlu0 %2368 }
 0x5d3   :  { %v3442_v61 = vpop.eup %3441  ;;  %v4605_v13 = vsub.f32 %v4477_v48, %v2369_v3 }
 0x5d4   :  { %v2371_v10 = vpop.xlane.xlu1 %2370  ;;  %2522 = vadd.xlane.f32.xlu1 %v3442_v61 }
 0x5d5   :  { %v3444_v16 = vpop.eup %3443  ;;  %v2464_v60 = vmul.f32 1.442695, %v4605_v13  ;;  %v4609_v1 = vsub.f32 %v4480_v5, %v2371_v10 }
 0x5d6   :  { %2516 = vadd.xlane.f32.xlu0 %v3444_v16  ;;  %v2365_v54 = vpop.xlane.xlu0 %2364 }
 0x5d7   :  { %v3446_v45 = vpop.eup %3445  ;;  %3447 = vpow2.f32 %v2464_v60  ;;  %v2466_v14 = vmul.f32 1.442695, %v4609_v1  ;;  %v4613_v23 = vsub.f32 %v4484_v29, %v2365_v54 }
 0x5d8   :  { %v2367_v19 = vpop.xlane.xlu1 %2366  ;;  %2518 = vadd.xlane.f32.xlu1 %v3446_v45 }
 0x5d9   :  { %3449 = vpow2.f32 %v2466_v14  ;;  %v2460_v48 = vmul.f32 1.442695, %v4613_v23  ;;  %v4617_v12 = vsub.f32 %v4488_v25, %v2367_v19 }
 0x5db   :  { %3451 = vpow2.f32 %v2460_v48  ;;  %v2462_v5 = vmul.f32 1.442695, %v4617_v12 }
 0x5dd   :  { %3453 = vpow2.f32 %v2462_v5 }
 0x5e1   :  { %v3448_v40 = vpop.eup %3447 }
 0x5e2   :  { %2528 = vadd.xlane.f32.xlu0 %v3448_v40  ;;  %v2377_v59 = vpop.xlane.xlu0 %2376 }
 0x5e3   :  { %v3450_v11 = vpop.eup %3449  ;;  %v4621_v36 = vsub.f32 %v4493_v20, %v2377_v59 }
 0x5e4   :  { %v2379_v29 = vpop.xlane.xlu1 %2378  ;;  %2530 = vadd.xlane.f32.xlu1 %v3450_v11 }
 0x5e5   :  { %v3452_v4 = vpop.eup %3451  ;;  %v2472_v37 = vmul.f32 1.442695, %v4621_v36  ;;  %v4625_v15 = vsub.f32 %v4496_v53, %v2379_v29 }
 0x5e6   :  { %2524 = vadd.xlane.f32.xlu0 %v3452_v4  ;;  %v2373_v25 = vpop.xlane.xlu0 %2372 }
 0x5e7   :  { %v3454_v2 = vpop.eup %3453  ;;  %3455 = vpow2.f32 %v2472_v37  ;;  %v2474_v55 = vmul.f32 1.442695, %v4625_v15  ;;  %v4629_v8 = vsub.f32 %v4500_v21, %v2373_v25 }
 0x5e8   :  { %v2375_v63 = vpop.xlane.xlu1 %2374  ;;  %2526 = vadd.xlane.f32.xlu1 %v3454_v2 }
 0x5e9   :  { %3457 = vpow2.f32 %v2474_v55  ;;  %v2468_v20 = vmul.f32 1.442695, %v4629_v8  ;;  %v4633_v38 = vsub.f32 %v4504_v0, %v2375_v63 }
 0x5eb   :  { %3459 = vpow2.f32 %v2468_v20  ;;  %v2470_v53 = vmul.f32 1.442695, %v4633_v38 }
 0x5ed   :  { %3461 = vpow2.f32 %v2470_v53 }
 0x5f1   :  { %v3456_v41 = vpop.eup %3455 }
 0x5f2   :  { %2536 = vadd.xlane.f32.xlu0 %v3456_v41  ;;  %v2385_v17 = vpop.xlane.xlu0 %2384 }
 0x5f3   :  { %v3458_v39 = vpop.eup %3457  ;;  %v4637_v27 = vsub.f32 %v4509_v58, %v2385_v17 }
 0x5f4   :  { %v2387_v21 = vpop.xlane.xlu1 %2386  ;;  %2538 = vadd.xlane.f32.xlu1 %v3458_v39 }
 0x5f5   :  { %v3460_v46 = vpop.eup %3459  ;;  %v2480_v28 = vmul.f32 1.442695, %v4637_v27  ;;  %v4641_v7 = vsub.f32 %v4512_v56, %v2387_v21 }
 0x5f6   :  { %2532 = vadd.xlane.f32.xlu0 %v3460_v46  ;;  %v2381_v0 = vpop.xlane.xlu0 %2380 }
 0x5f7   :  { %v3462_v3 = vpop.eup %3461  ;;  %3463 = vpow2.f32 %v2480_v28  ;;  %v2482_v61 = vmul.f32 1.442695, %v4641_v7  ;;  %v4645_v10 = vsub.f32 %v4516_v22, %v2381_v0 }
 0x5f8   :  { %v2383_v16 = vpop.xlane.xlu1 %2382  ;;  %2534 = vadd.xlane.f32.xlu1 %v3462_v3 }
 0x5f9   :  { %3465 = vpow2.f32 %v2482_v61  ;;  %v2476_v58 = vmul.f32 1.442695, %v4645_v10  ;;  %v4649_v60 = vsub.f32 %v4520_v6, %v2383_v16 }
 0x5fb   :  { %3467 = vpow2.f32 %v2476_v58  ;;  %v2478_v56 = vmul.f32 1.442695, %v4649_v60 }
 0x5fd   :  { %3469 = vpow2.f32 %v2478_v56 }
 0x601   :  { %v3464_v54 = vpop.eup %3463 }
 0x602   :  { %2544 = vadd.xlane.f32.xlu0 %v3464_v54  ;;  %v2393_v45 = vpop.xlane.xlu0 %2392 }
 0x603   :  { %v3466_v14 = vpop.eup %3465  ;;  %v4653_v19 = vsub.f32 %v4525_v52, %v2393_v45 }
 0x604   :  { %v2395_v22 = vpop.xlane.xlu1 %2394  ;;  %2546 = vadd.xlane.f32.xlu1 %v3466_v14 }
 0x605   :  { %v3468_v48 = vpop.eup %3467  ;;  %v2488_v5 = vmul.f32 1.442695, %v4653_v19  ;;  %v4657_v40 = vsub.f32 %v4528_v9, %v2395_v22 }
 0x606   :  { %2540 = vadd.xlane.f32.xlu0 %v3468_v48  ;;  %v2389_v6 = vpop.xlane.xlu0 %2388 }
 0x607   :  { %v3470_v59 = vpop.eup %3469  ;;  %3471 = vpow2.f32 %v2488_v5  ;;  %v2490_v11 = vmul.f32 1.442695, %v4657_v40  ;;  %v4661_v29 = vsub.f32 %v4532_v18, %v2389_v6 }
 0x608   :  { %v2391_v4 = vpop.xlane.xlu1 %2390  ;;  %2542 = vadd.xlane.f32.xlu1 %v3470_v59 }
 0x609   :  { %3473 = vpow2.f32 %v2490_v11  ;;  %v2484_v52 = vmul.f32 1.442695, %v4661_v29  ;;  %v4665_v37 = vsub.f32 %v4536_v26, %v2391_v4 }
 0x60b   :  { %3475 = vpow2.f32 %v2484_v52  ;;  %v2486_v9 = vmul.f32 1.442695, %v4665_v37 }
 0x60d   :  { %3477 = vpow2.f32 %v2486_v9 }
 0x611   :  { %v3472_v25 = vpop.eup %3471 }
 0x612   :  { %2552 = vadd.xlane.f32.xlu0 %v3472_v25  ;;  %v2401_v2 = vpop.xlane.xlu0 %2400 }
 0x613   :  { %v3474_v55 = vpop.eup %3473  ;;  %v4669_v63 = vsub.f32 %v4541_v44, %v2401_v2 }
 0x614   :  { %v2403_v18 = vpop.xlane.xlu1 %2402  ;;  %2554 = vadd.xlane.f32.xlu1 %v3474_v55 }
 0x615   :  { %v3476_v20 = vpop.eup %3475  ;;  %v2496_v53 = vmul.f32 1.442695, %v4669_v63  ;;  %v4673_v41 = vsub.f32 %v4544_v30, %v2403_v18 }
 0x616   :  { %2548 = vadd.xlane.f32.xlu0 %v3476_v20  ;;  %v2397_v26 = vpop.xlane.xlu0 %2396 }
 0x617   :  { %v3478_v17 = vpop.eup %3477  ;;  %3479 = vpow2.f32 %v2496_v53  ;;  %v2498_v39 = vmul.f32 1.442695, %v4673_v41  ;;  %v4677_v21 = vsub.f32 %v4548_v43, %v2397_v26 }
 0x618   :  { %v2399_v46 = vpop.xlane.xlu1 %2398  ;;  %2550 = vadd.xlane.f32.xlu1 %v3478_v17 }
 0x619   :  { %3481 = vpow2.f32 %v2498_v39  ;;  %v2492_v44 = vmul.f32 1.442695, %v4677_v21  ;;  %v4681_v28 = vsub.f32 %v4552_v32, %v2399_v46 }
 0x61b   :  { %3483 = vpow2.f32 %v2492_v44  ;;  %v2494_v30 = vmul.f32 1.442695, %v4681_v28 }
 0x61d   :  { %3485 = vpow2.f32 %v2494_v30 }
 0x621   :  { %v3480_v0 = vpop.eup %3479 }
 0x622   :  { %2560 = vadd.xlane.f32.xlu0 %v3480_v0  ;;  %v2405_v3 = vpop.xlane.xlu0 %2404 }
 0x623   :  { %v3482_v61 = vpop.eup %3481  ;;  %v4685_v16 = vsub.f32 %v4557_v62, %v2405_v3 }
 0x624   :  { %2562 = vadd.xlane.f32.xlu1 %v3482_v61  ;;  %v2407_v43 = vpop.xlane.xlu1 %2406 }
 0x625   :  { %v3484_v58 = vpop.eup %3483  ;;  %v2500_v56 = vmul.f32 1.442695, %v4685_v16  ;;  %v4689_v54 = vsub.f32 %v4560_v49, %v2407_v43 }
 0x626   :  { %2556 = vadd.xlane.f32.xlu0 %v3484_v58  ;;  %v2409_v32 = vpop.xlane.xlu0 %2408 }
 0x627   :  { %v3486_v45 = vpop.eup %3485  ;;  %3487 = vpow2.f32 %v2500_v56  ;;  %v2502_v14 = vmul.f32 1.442695, %v4689_v54  ;;  %v4693_v22 = vsub.f32 %v4564_v24, %v2409_v32 }
 0x628   :  { %2558 = vadd.xlane.f32.xlu1 %v3486_v45  ;;  %v2411_v62 = vpop.xlane.xlu1 %2410 }
 0x629   :  { %3489 = vpow2.f32 %v2502_v14  ;;  %v2504_v48 = vmul.f32 1.442695, %v4693_v22  ;;  %v4697_v5 = vsub.f32 %v4568_v31, %v2411_v62 }
 0x62b   :  { %3491 = vpow2.f32 %v2504_v48  ;;  %v2506_v49 = vmul.f32 1.442695, %v4697_v5 }
 0x62d   :  { %3493 = vpow2.f32 %v2506_v49 }
 0x631   :  { %v3488_v6 = vpop.eup %3487 }
 0x632   :  { %2564 = vadd.xlane.f32.xlu0 %v3488_v6 }
 0x633   :  { %v3490_v59 = vpop.eup %3489 }
 0x634   :  { %2566 = vadd.xlane.f32.xlu1 %v3490_v59 }
 0x635   :  { %v3492_v11 = vpop.eup %3491 }
 0x636   :  { %2568 = vadd.xlane.f32.xlu0 %v3492_v11 }
 0x637   :  { %v3494_v24 = vpop.eup %3493 }
 0x638   :  { %2570 = vadd.xlane.f32.xlu1 %v3494_v24 }
 0x64e   :  { %v2513_v4 = vpop.xlane.xlu0 %2512 }
 0x64f   :  { %3495 = vlog2.f32 %v2513_v4 }
 0x650   :  { %v2515_v52 = vpop.xlane.xlu1 %2514 }
 0x651   :  { %3497 = vlog2.f32 %v2515_v52 }
 0x652   :  { %v2509_v9 = vpop.xlane.xlu0 %2508 }
 0x653   :  { %3499 = vlog2.f32 %v2509_v9 }
 0x654   :  { %v2511_v31 = vpop.xlane.xlu1 %2510 }
 0x655   :  { %3501 = vlog2.f32 %v2511_v31 }
 0x659   :  { %v3496_v25 = vpop.eup %3495 }
 0x65a   :  { %v2577_v2 = vmul.f32 0.6931472, %v3496_v25 }
 0x65b   :  { %v3498_v55 = vpop.eup %3497 }
 0x65c   :  { %v2638_v18 = vsub.f32 %v4573_v50, %v2577_v2  ;;  %v2579_v20 = vmul.f32 0.6931472, %v3498_v55 }
 0x65d   :  { %v3500_v53 = vpop.eup %3499 }
 0x65e   :  { %2670 = vst [vmem:[%s4841_s13 + $0x10] sm:$0xff] %v2638_v18  ;;  %v2639_v26 = vsub.f32 %v4577_v42, %v2579_v20  ;;  %v2573_v17 = vmul.f32 0.6931472, %v3500_v53 }
 0x65f   :  { %v3502_v39 = vpop.eup %3501  ;;  %v2521_v46 = vpop.xlane.xlu0 %2520 }
 0x660   :  { %2671 = vst [vmem:[%s4841_s13 + $0x18] sm:$0xff] %v2639_v26  ;;  %v2636_v44 = vsub.f32 %v4581_v33, %v2573_v17  ;;  %v2575_v30 = vmul.f32 0.6931472, %v3502_v39  ;;  %3503 = vlog2.f32 %v2521_v46 }
 0x661   :  { %v2523_v50 = vpop.xlane.xlu1 %2522 }
 0x662   :  { %2668 = vst [vmem:[%s4841_s13] sm:$0xff] %v2636_v44  ;;  %v2637_v0 = vsub.f32 %v4585_v47, %v2575_v30  ;;  %3505 = vlog2.f32 %v2523_v50 }
 0x663   :  { %v2517_v42 = vpop.xlane.xlu0 %2516 }
 0x664   :  { %2669 = vst [vmem:[%s4841_s13 + $0x8] sm:$0xff] %v2637_v0  ;;  %3507 = vlog2.f32 %v2517_v42 }
 0x665   :  { %v2519_v3 = vpop.xlane.xlu1 %2518 }
 0x666   :  { %3509 = vlog2.f32 %v2519_v3 }
 0x66a   :  { %v3504_v61 = vpop.eup %3503 }
 0x66b   :  { %v2585_v33 = vmul.f32 0.6931472, %v3504_v61 }
 0x66c   :  { %v3506_v43 = vpop.eup %3505 }
 0x66d   :  { %v2642_v58 = vsub.f32 %v4589_v34, %v2585_v33  ;;  %v2587_v56 = vmul.f32 0.6931472, %v3506_v43 }
 0x66e   :  { %v3508_v32 = vpop.eup %3507 }
 0x66f   :  { %2674 = vst [vmem:[%s4841_s13 + $0x30] sm:$0xff] %v2642_v58  ;;  %v2643_v47 = vsub.f32 %v4593_v51, %v2587_v56  ;;  %v2581_v45 = vmul.f32 0.6931472, %v3508_v32  ;;  %v2529_v14 = vpop.xlane.xlu0 %2528 }
 0x670   :  { %v3510_v62 = vpop.eup %3509  ;;  %3511 = vlog2.f32 %v2529_v14 }
 0x671   :  { %2675 = vst [vmem:[%s4841_s13 + $0x38] sm:$0xff] %v2643_v47  ;;  %v2640_v48 = vsub.f32 %v4597_v35, %v2581_v45  ;;  %v2583_v49 = vmul.f32 0.6931472, %v3510_v62  ;;  %v2531_v34 = vpop.xlane.xlu1 %2530 }
 0x672   :  { %3513 = vlog2.f32 %v2531_v34 }
 0x673   :  { %2672 = vst [vmem:[%s4841_s13 + $0x20] sm:$0xff] %v2640_v48  ;;  %v2641_v6 = vsub.f32 %v4601_v57, %v2583_v49  ;;  %v2525_v51 = vpop.xlane.xlu0 %2524 }
 0x674   :  { %3515 = vlog2.f32 %v2525_v51 }
 0x675   :  { %2673 = vst [vmem:[%s4841_s13 + $0x28] sm:$0xff] %v2641_v6  ;;  %v2527_v59 = vpop.xlane.xlu1 %2526 }
 0x676   :  { %3517 = vlog2.f32 %v2527_v59 }
 0x67a   :  { %v3512_v11 = vpop.eup %3511 }
 0x67b   :  { %v2593_v24 = vmul.f32 0.6931472, %v3512_v11 }
 0x67c   :  { %v3514_v35 = vpop.eup %3513 }
 0x67d   :  { %v2646_v4 = vsub.f32 %v4605_v13, %v2593_v24  ;;  %v2595_v52 = vmul.f32 0.6931472, %v3514_v35 }
 0x67e   :  { %v3516_v9 = vpop.eup %3515 }
 0x67f   :  { %2678 = vst [vmem:[%s4841_s13 + $0x50] sm:$0xff] %v2646_v4  ;;  %v2647_v57 = vsub.f32 %v4609_v1, %v2595_v52  ;;  %v2589_v31 = vmul.f32 0.6931472, %v3516_v9  ;;  %v2537_v25 = vpop.xlane.xlu0 %2536 }
 0x680   :  { %v3518_v2 = vpop.eup %3517  ;;  %3519 = vlog2.f32 %v2537_v25 }
 0x681   :  { %2679 = vst [vmem:[%s4841_s13 + $0x58] sm:$0xff] %v2647_v57  ;;  %v2644_v55 = vsub.f32 %v4613_v23, %v2589_v31  ;;  %v2591_v18 = vmul.f32 0.6931472, %v3518_v2  ;;  %v2539_v13 = vpop.xlane.xlu1 %2538 }
 0x682   :  { %3521 = vlog2.f32 %v2539_v13 }
 0x683   :  { %2676 = vst [vmem:[%s4841_s13 + $0x40] sm:$0xff] %v2644_v55  ;;  %v2645_v20 = vsub.f32 %v4617_v12, %v2591_v18  ;;  %v2533_v1 = vpop.xlane.xlu0 %2532 }
 0x684   :  { %3523 = vlog2.f32 %v2533_v1 }
 0x685   :  { %2677 = vst [vmem:[%s4841_s13 + $0x48] sm:$0xff] %v2645_v20  ;;  %v2535_v53 = vpop.xlane.xlu1 %2534 }
 0x686   :  { %3525 = vlog2.f32 %v2535_v53 }
 0x68a   :  { %v3520_v26 = vpop.eup %3519 }
 0x68b   :  { %v2601_v17 = vmul.f32 0.6931472, %v3520_v26 }
 0x68c   :  { %v3522_v23 = vpop.eup %3521 }
 0x68d   :  { %v2650_v39 = vsub.f32 %v4621_v36, %v2601_v17  ;;  %v2603_v46 = vmul.f32 0.6931472, %v3522_v23 }
 0x68e   :  { %v3524_v44 = vpop.eup %3523 }
 0x68f   :  { %2682 = vst [vmem:[%s4841_s13 + $0x70] sm:$0xff] %v2650_v39  ;;  %v2651_v12 = vsub.f32 %v4625_v15, %v2603_v46  ;;  %v2597_v30 = vmul.f32 0.6931472, %v3524_v44  ;;  %v2545_v50 = vpop.xlane.xlu0 %2544 }
 0x690   :  { %v3526_v0 = vpop.eup %3525  ;;  %3527 = vlog2.f32 %v2545_v50 }
 0x691   :  { %2683 = vst [vmem:[%s4841_s13 + $0x78] sm:$0xff] %v2651_v12  ;;  %v2648_v42 = vsub.f32 %v4629_v8, %v2597_v30  ;;  %v2599_v3 = vmul.f32 0.6931472, %v3526_v0  ;;  %v2547_v36 = vpop.xlane.xlu1 %2546 }
 0x692   :  { %3529 = vlog2.f32 %v2547_v36 }
 0x693   :  { %2680 = vst [vmem:[%s4841_s13 + $0x60] sm:$0xff] %v2648_v42  ;;  %v2649_v61 = vsub.f32 %v4633_v38, %v2599_v3  ;;  %v2541_v15 = vpop.xlane.xlu0 %2540 }
 0x694   :  { %3531 = vlog2.f32 %v2541_v15 }
 0x695   :  { %2681 = vst [vmem:[%s4841_s13 + $0x68] sm:$0xff] %v2649_v61  ;;  %v2543_v33 = vpop.xlane.xlu1 %2542 }
 0x696   :  { %3533 = vlog2.f32 %v2543_v33 }
 0x69a   :  { %v3528_v43 = vpop.eup %3527 }
 0x69b   :  { %v2609_v58 = vmul.f32 0.6931472, %v3528_v43 }
 0x69c   :  { %v3530_v8 = vpop.eup %3529 }
 0x69d   :  { %v2654_v56 = vsub.f32 %v4637_v27, %v2609_v58  ;;  %v2611_v32 = vmul.f32 0.6931472, %v3530_v8 }
 0x69e   :  { %v3532_v47 = vpop.eup %3531 }
 0x69f   :  { %2686 = vst [vmem:[%s4841_s13 + $0x90] sm:$0xff] %v2654_v56  ;;  %v2655_v38 = vsub.f32 %v4641_v7, %v2611_v32  ;;  %v2605_v45 = vmul.f32 0.6931472, %v3532_v47  ;;  %v2553_v14 = vpop.xlane.xlu0 %2552 }
 0x6a0   :  { %v3534_v62 = vpop.eup %3533  ;;  %3535 = vlog2.f32 %v2553_v14 }
 0x6a1   :  { %2687 = vst [vmem:[%s4841_s13 + $0x98] sm:$0xff] %v2655_v38  ;;  %v2652_v48 = vsub.f32 %v4645_v10, %v2605_v45  ;;  %v2607_v49 = vmul.f32 0.6931472, %v3534_v62  ;;  %v2555_v27 = vpop.xlane.xlu1 %2554 }
 0x6a2   :  { %3537 = vlog2.f32 %v2555_v27 }
 0x6a3   :  { %2684 = vst [vmem:[%s4841_s13 + $0x80] sm:$0xff] %v2652_v48  ;;  %v2653_v34 = vsub.f32 %v4649_v60, %v2607_v49  ;;  %v2549_v7 = vpop.xlane.xlu0 %2548 }
 0x6a4   :  { %3539 = vlog2.f32 %v2549_v7 }
 0x6a5   :  { %2685 = vst [vmem:[%s4841_s13 + $0x88] sm:$0xff] %v2653_v34  ;;  %v2551_v6 = vpop.xlane.xlu1 %2550 }
 0x6a6   :  { %3541 = vlog2.f32 %v2551_v6 }
 0x6aa   :  { %v3536_v51 = vpop.eup %3535 }
 0x6ab   :  { %v2617_v59 = vmul.f32 0.6931472, %v3536_v51 }
 0x6ac   :  { %v3538_v10 = vpop.eup %3537 }
 0x6ad   :  { %v2658_v11 = vsub.f32 %v4653_v19, %v2617_v59  ;;  %v2619_v24 = vmul.f32 0.6931472, %v3538_v10 }
 0x6ae   :  { %v3540_v35 = vpop.eup %3539 }
 0x6af   :  { %2690 = vst [vmem:[%s4841_s13 + $0xb0] sm:$0xff] %v2658_v11  ;;  %v2659_v60 = vsub.f32 %v4657_v40, %v2619_v24  ;;  %v2613_v4 = vmul.f32 0.6931472, %v3540_v35  ;;  %v2561_v52 = vpop.xlane.xlu0 %2560 }
 0x6b0   :  { %v3542_v9 = vpop.eup %3541  ;;  %3543 = vlog2.f32 %v2561_v52 }
 0x6b1   :  { %2691 = vst [vmem:[%s4841_s13 + $0xb8] sm:$0xff] %v2659_v60  ;;  %v2656_v57 = vsub.f32 %v4661_v29, %v2613_v4  ;;  %v2615_v31 = vmul.f32 0.6931472, %v3542_v9  ;;  %v2563_v19 = vpop.xlane.xlu1 %2562 }
 0x6b2   :  { %3545 = vlog2.f32 %v2563_v19 }
 0x6b3   :  { %2688 = vst [vmem:[%s4841_s13 + $0xa0] sm:$0xff] %v2656_v57  ;;  %v2657_v25 = vsub.f32 %v4665_v37, %v2615_v31  ;;  %v2557_v40 = vpop.xlane.xlu0 %2556 }
 0x6b4   :  { %3547 = vlog2.f32 %v2557_v40 }
 0x6b5   :  { %2689 = vst [vmem:[%s4841_s13 + $0xa8] sm:$0xff] %v2657_v25  ;;  %v2559_v2 = vpop.xlane.xlu1 %2558 }
 0x6b6   :  { %3549 = vlog2.f32 %v2559_v2 }
 0x6ba   :  { %v3544_v55 = vpop.eup %3543 }
 0x6bb   :  { %v2625_v18 = vmul.f32 0.6931472, %v3544_v55 }
 0x6bc   :  { %v3546_v29 = vpop.eup %3545 }
 0x6bd   :  { %v2662_v13 = vsub.f32 %v4669_v63, %v2625_v18  ;;  %v2627_v20 = vmul.f32 0.6931472, %v3546_v29 }
 0x6be   :  { %v3548_v1 = vpop.eup %3547 }
 0x6bf   :  { %2694 = vst [vmem:[%s4841_s13 + $0xd0] sm:$0xff] %v2662_v13  ;;  %v2663_v37 = vsub.f32 %v4673_v41, %v2627_v20  ;;  %v2621_v53 = vmul.f32 0.6931472, %v3548_v1  ;;  %v2565_v26 = vpop.xlane.xlu0 %2564 }
 0x6c0   :  { %v3550_v17 = vpop.eup %3549  ;;  %3551 = vlog2.f32 %v2565_v26 }
 0x6c1   :  { %2695 = vst [vmem:[%s4841_s13 + $0xd8] sm:$0xff] %v2663_v37  ;;  %v2660_v23 = vsub.f32 %v4677_v21, %v2621_v53  ;;  %v2623_v39 = vmul.f32 0.6931472, %v3550_v17  ;;  %v2567_v63 = vpop.xlane.xlu1 %2566 }
 0x6c2   :  { %3553 = vlog2.f32 %v2567_v63 }
 0x6c3   :  { %2692 = vst [vmem:[%s4841_s13 + $0xc0] sm:$0xff] %v2660_v23  ;;  %v2661_v46 = vsub.f32 %v4681_v28, %v2623_v39  ;;  %v2569_v41 = vpop.xlane.xlu0 %2568 }
 0x6c4   :  { %3555 = vlog2.f32 %v2569_v41 }
 0x6c5   :  { %2693 = vst [vmem:[%s4841_s13 + $0xc8] sm:$0xff] %v2661_v46  ;;  %v2571_v44 = vpop.xlane.xlu1 %2570 }
 0x6c6   :  { %3557 = vlog2.f32 %v2571_v44 }
 0x6ca   :  { %v3552_v12 = vpop.eup %3551 }
 0x6cb   :  { %v2629_v30 = vmul.f32 0.6931472, %v3552_v12 }
 0x6cc   :  { %v3554_v21 = vpop.eup %3553 }
 0x6cd   :  { %v2664_v50 = vsub.f32 %v4685_v16, %v2629_v30  ;;  %v2631_v0 = vmul.f32 0.6931472, %v3554_v21 }
 0x6ce   :  { %v3556_v42 = vpop.eup %3555 }
 0x6cf   :  { %2696 = vst [vmem:[%s4841_s13 + $0xe0] sm:$0xff] %v2664_v50  ;;  %v2665_v28 = vsub.f32 %v4689_v54, %v2631_v0  ;;  %v2633_v3 = vmul.f32 0.6931472, %v3556_v42 }
 0x6d0   :  { %v3558_v36 = vpop.eup %3557 }
 0x6d1   :  { %2697 = vst [vmem:[%s4841_s13 + $0xe8] sm:$0xff] %v2665_v28  ;;  %v2666_v61 = vsub.f32 %v4693_v22, %v2633_v3  ;;  %v2635_v15 = vmul.f32 0.6931472, %v3558_v36 }
 0x6d3   :  { %2698 = vst [vmem:[%s4841_s13 + $0xf0] sm:$0xff] %v2666_v61  ;;  %v2667_v16 = vsub.f32 %v4697_v5, %v2635_v15 }
 0x6d5   :  { %2699 = vst [vmem:[%s4841_s13 + $0xf8] sm:$0xff] %v2667_v16 }

// kernel: gcn_forward.2
= control target key start
LH: loop header
LB: loop body
LE: loop exit
PB: predicated region body
PF: predicated region fallthrough
CT: control target
= control target key end

     0   :  { %s3714_s1 = inlined_call_operand.vmem [shape: bf16[256,128], index: 1, kind: input, shape index: {}]   ;;  %s3715_s0 = inlined_call_operand.vmem [shape: bf16[256,256], index: 0, kind: input, shape index: {}]   ;;  %s3716_s3 = inlined_call_operand.vmem [shape: bf16[128,128], index: 3, kind: input, shape index: {}]   ;;  %s3717_s2 = inlined_call_operand.vmem [shape: f32[1,128], index: 2, kind: input, shape index: {}]   ;;  %s3718_s5 = inlined_call_operand.vmem [shape: bf16[128,128], index: 5, kind: input, shape index: {}]   ;;  %s3719_s4 = inlined_call_operand.vmem [shape: f32[1,128], index: 4, kind: input, shape index: {}]   ;;  %s3720_s6 = inlined_call_operand.vmem [shape: f32[1,128], index: 6, kind: input, shape index: {}]   ;;  %s3721_s7 = inlined_call_operand.vmem [shape: f32[1,128], index: 7, kind: input, shape index: {}]   ;;  %s3722_s8 = inlined_call_operand.vmem [shape: f32[1,128], index: 8, kind: input, shape index: {}]   ;;  %s3723_s9 = inlined_call_operand.vmem [shape: bf16[256,128], index: 9, kind: output, shape index: {}]  }
   0x1   :  { %v2529_v0 = vld [vmem:[%s3714_s1 + $0x40] sm:$0xff]   ;;  %v2531_v2 = vld [vmem:[%s3714_s1 + $0x48] sm:$0xff]   ;;  %v2533_v4 = vld [vmem:[%s3714_s1 + $0x50] sm:$0xff]  }
   0x2   :  { %v2530_v1 = vld [vmem:[%s3714_s1] sm:$0xff]   ;;  %2273 = vmatprep.subr.bf16.mxu0 %v2529_v0  ;;  %v2532_v3 = vld [vmem:[%s3714_s1 + $0x8] sm:$0xff]   ;;  %v2534_v5 = vld [vmem:[%s3714_s1 + $0x10] sm:$0xff]  }
   0x3   :  { %2274 = vmatpush3.bf16.msra.mxu0 %v2530_v1  ;;  %v2535_v6 = vld [vmem:[%s3714_s1 + $0x58] sm:$0xff]   ;;  %v2537_v8 = vld [vmem:[%s3714_s1 + $0x60] sm:$0xff]   ;;  %v2539_v10 = vld [vmem:[%s3714_s1 + $0x68] sm:$0xff]  }
   0x4   :  { %2275 = vmatprep.subr.bf16.mxu0 %v2531_v2  ;;  %v2536_v7 = vld [vmem:[%s3714_s1 + $0x18] sm:$0xff]   ;;  %v2538_v9 = vld [vmem:[%s3714_s1 + $0x20] sm:$0xff]   ;;  %v2540_v12 = vld [vmem:[%s3714_s1 + $0x28] sm:$0xff]  }
   0x5   :  { %v2547_v11 = vld [vmem:[%s3715_s0 + $0x4] ss:$8 sps:$4 sm:$0xff]   ;;  %v2541_v13 = vld [vmem:[%s3714_s1 + $0x70] sm:$0xff]   ;;  %v2543_v15 = vld [vmem:[%s3714_s1 + $0x78] sm:$0xff]  }
   0x6   :  { %390 = vmatprep.mubr.bf16.mxu0 %v2547_v11  ;;  %v2542_v14 = vld [vmem:[%s3714_s1 + $0x30] sm:$0xff]   ;;  %v2544_v16 = vld [vmem:[%s3714_s1 + $0x38] sm:$0xff]   ;;  %v2545_v17 = vld [vmem:[%s3715_s0] ss:$8 sps:$4 sm:$0xff]  }
   0x7   :  { %2276 = vmatpush3.bf16.msra.mxu0 %v2532_v3  ;;  %v2548_v18 = vld [vmem:[%s3715_s0 + $0x14] ss:$8 sps:$4 sm:$0xff]   ;;  %v2550_v19 = vld [vmem:[%s3715_s0 + $0x10] ss:$8 sps:$4 sm:$0xff]   ;;  %v2551_v20 = vld [vmem:[%s3715_s0 + $0x24] ss:$8 sps:$4 sm:$0xff]  }
   0x8   :  { %2277 = vmatprep.subr.bf16.mxu0 %v2533_v4  ;;  %v2593_v21 = vld [vmem:[%s3716_s3] sm:$0xff]   ;;  %v2594_v22 = vld [vmem:[%s3716_s3 + $0x8] sm:$0xff]   ;;  %v2595_v23 = vld [vmem:[%s3716_s3 + $0x10] sm:$0xff]  }
   0x9   :  { %2433 = vmatprep.subr.bf16.mxu1 %v2593_v21  ;;  %v2553_v24 = vld [vmem:[%s3715_s0 + $0x20] ss:$8 sps:$4 sm:$0xff]   ;;  %v2554_v25 = vld [vmem:[%s3715_s0 + $0x34] ss:$8 sps:$4 sm:$0xff]   ;;  %v2556_v26 = vld [vmem:[%s3715_s0 + $0x30] ss:$8 sps:$4 sm:$0xff]  }
   0xa   :  { %2434 = vmatpush3.bf16.msra.mxu1 %v2593_v21  ;;  %v2557_v27 = vld [vmem:[%s3715_s0 + $0x44] ss:$8 sps:$4 sm:$0xff]   ;;  %v2559_v28 = vld [vmem:[%s3715_s0 + $0x40] ss:$8 sps:$4 sm:$0xff]   ;;  %v2560_v29 = vld [vmem:[%s3715_s0 + $0x54] ss:$8 sps:$4 sm:$0xff]  }
   0xb   :  { %2278 = vmatpush3.bf16.msra.mxu0 %v2534_v5  ;;  %2435 = vmatprep.subr.bf16.mxu1 %v2594_v22  ;;  %v2562_v30 = vld [vmem:[%s3715_s0 + $0x50] ss:$8 sps:$4 sm:$0xff]   ;;  %v2563_v31 = vld [vmem:[%s3715_s0 + $0x64] ss:$8 sps:$4 sm:$0xff]   ;;  %v2565_v32 = vld [vmem:[%s3715_s0 + $0x60] ss:$8 sps:$4 sm:$0xff]  }
   0xc   :  { %2279 = vmatprep.subr.bf16.mxu0 %v2535_v6  ;;  %v2566_v33 = vld [vmem:[%s3715_s0 + $0x74] ss:$8 sps:$4 sm:$0xff]   ;;  %v2568_v34 = vld [vmem:[%s3715_s0 + $0x70] ss:$8 sps:$4 sm:$0xff]   ;;  %v2569_v35 = vld [vmem:[%s3715_s0 + $0x84] ss:$8 sps:$4 sm:$0xff]  }
   0xd   :  { %v2571_v36 = vld [vmem:[%s3715_s0 + $0x80] ss:$8 sps:$4 sm:$0xff]   ;;  %v2572_v37 = vld [vmem:[%s3715_s0 + $0x94] ss:$8 sps:$4 sm:$0xff]   ;;  %v2574_v38 = vld [vmem:[%s3715_s0 + $0x90] ss:$8 sps:$4 sm:$0xff]  }
   0xe   :  { %2436 = vmatpush3.bf16.msra.mxu1 %v2594_v22  ;;  %v2575_v39 = vld [vmem:[%s3715_s0 + $0xa4] ss:$8 sps:$4 sm:$0xff]   ;;  %v2577_v40 = vld [vmem:[%s3715_s0 + $0xa0] ss:$8 sps:$4 sm:$0xff]   ;;  %v2578_v41 = vld [vmem:[%s3715_s0 + $0xb4] ss:$8 sps:$4 sm:$0xff]  }
   0xf   :  { %2280 = vmatpush3.bf16.msra.mxu0 %v2536_v7  ;;  %2437 = vmatprep.subr.bf16.mxu1 %v2595_v23  ;;  %v2596_v42 = vld [vmem:[%s3716_s3 + $0x18] sm:$0xff]   ;;  %v2581_v44 = vld [vmem:[%s3715_s0 + $0xc4] ss:$8 sps:$4 sm:$0xff]   ;;  %v2583_v47 = vld [vmem:[%s3715_s0 + $0xc0] ss:$8 sps:$4 sm:$0xff]  }
  0x10   :  { %2281 = vmatprep.subr.bf16.mxu0 %v2537_v8  ;;  %v2580_v43 = vld [vmem:[%s3715_s0 + $0xb0] ss:$8 sps:$4 sm:$0xff]   ;;  %v2597_v45 = vld [vmem:[%s3716_s3 + $0x20] sm:$0xff]   ;;  %v2598_v46 = vld [vmem:[%s3716_s3 + $0x28] sm:$0xff]  }
  0x11   :  { %v2584_v48 = vld [vmem:[%s3715_s0 + $0xd4] ss:$8 sps:$4 sm:$0xff]   ;;  %v2586_v51 = vld [vmem:[%s3715_s0 + $0xd0] ss:$8 sps:$4 sm:$0xff]   ;;  %v2587_v52 = vld [vmem:[%s3715_s0 + $0xe4] ss:$8 sps:$4 sm:$0xff]  }
  0x12   :  { %2438 = vmatpush3.bf16.msra.mxu1 %v2595_v23  ;;  %v2599_v49 = vld [vmem:[%s3716_s3 + $0x30] sm:$0xff]   ;;  %v2600_v50 = vld [vmem:[%s3716_s3 + $0x38] sm:$0xff]   ;;  %v2589_v53 = vld [vmem:[%s3715_s0 + $0xe0] ss:$8 sps:$4 sm:$0xff]  }
  0x13   :  { %2282 = vmatpush3.bf16.msra.mxu0 %v2538_v9  ;;  %2439 = vmatprep.subr.bf16.mxu1 %v2596_v42  ;;  %v2590_v54 = vld [vmem:[%s3715_s0 + $0xf4] ss:$8 sps:$4 sm:$0xff]   ;;  %v2592_v55 = vld [vmem:[%s3715_s0 + $0xf0] ss:$8 sps:$4 sm:$0xff]   ;;  %v2894_v58 = vld [vmem:[%s3717_s2] ss:$0 sm:$0xff] }
  0x14   :  { %2283 = vmatprep.subr.bf16.mxu0 %v2539_v10  ;;  %v2601_v0 = vld [vmem:[%s3718_s5] sm:$0xff]  }
  0x16   :  { %2440 = vmatpush3.bf16.msra.mxu1 %v2596_v42 }
  0x17   :  { %2284 = vmatpush3.bf16.msra.mxu0 %v2540_v12  ;;  %2441 = vmatprep.subr.bf16.mxu1 %v2597_v45 }
  0x18   :  { %2285 = vmatprep.subr.bf16.mxu0 %v2541_v13 }
  0x1a   :  { %2442 = vmatpush3.bf16.msra.mxu1 %v2597_v45 }
  0x1b   :  { %2286 = vmatpush3.bf16.msra.mxu0 %v2542_v14  ;;  %2443 = vmatprep.subr.bf16.mxu1 %v2598_v46 }
  0x1c   :  { %2287 = vmatprep.subr.bf16.mxu0 %v2543_v15 }
  0x1e   :  { %2444 = vmatpush3.bf16.msra.mxu1 %v2598_v46  ;;  %v2606_v46 = vld [vmem:[%s3718_s5 + $0x28] sm:$0xff]  }
  0x1f   :  { %2288 = vmatpush3.bf16.msra.mxu0 %v2544_v16  ;;  %2445 = vmatprep.subr.bf16.mxu1 %v2599_v49 }
  0x22   :  { %391 = vmatmul.mubr.bf16.vlgmr.msra.gmra.mrb[0].mxu0 %v2545_v17  ;;  %2446 = vmatpush3.bf16.msra.mxu1 %v2599_v49 }
  0x23   :  { %398 = vmatprep.mubr.bf16.mxu0 %v2548_v18  ;;  %2447 = vmatprep.subr.bf16.mxu1 %v2600_v50 }
  0x26   :  { %2448 = vmatpush3.bf16.msra.mxu1 %v2600_v50 }
  0x27   :  { %2481 = vmatprep.subr.bf16.mxu1 %v2601_v0 }
  0x2a   :  { %399 = vmatmul.mubr.bf16.gmra.mrb[4].mxu0 %v2550_v19 }
  0x2b   :  { %406 = vmatprep.mubr.bf16.mxu0 %v2551_v20  ;;  %v2602_v20 = vld [vmem:[%s3718_s5 + $0x8] sm:$0xff]  }
  0x32   :  { %407 = vmatmul.mubr.bf16.gmra.mrb[8].mxu0 %v2553_v24 }
  0x33   :  { %414 = vmatprep.mubr.bf16.mxu0 %v2554_v25  ;;  %v2603_v25 = vld [vmem:[%s3718_s5 + $0x10] sm:$0xff]  }
  0x3a   :  { %415 = vmatmul.mubr.bf16.gmra.mrb[12].mxu0 %v2556_v26 }
  0x3b   :  { %422 = vmatprep.mubr.bf16.mxu0 %v2557_v27 }
  0x42   :  { %423 = vmatmul.mubr.bf16.gmra.mrb[16].mxu0 %v2559_v28 }
  0x43   :  { %430 = vmatprep.mubr.bf16.mxu0 %v2560_v29 }
  0x4a   :  { %431 = vmatmul.mubr.bf16.gmra.mrb[20].mxu0 %v2562_v30 }
  0x4b   :  { %438 = vmatprep.mubr.bf16.mxu0 %v2563_v31 }
  0x52   :  { %439 = vmatmul.mubr.bf16.gmra.mrb[24].mxu0 %v2565_v32 }
  0x53   :  { %446 = vmatprep.mubr.bf16.mxu0 %v2566_v33  ;;  %v2604_v33 = vld [vmem:[%s3718_s5 + $0x18] sm:$0xff]  }
  0x5a   :  { %447 = vmatmul.mubr.bf16.gmra.mrb[28].mxu0 %v2568_v34 }
  0x5b   :  { %454 = vmatprep.mubr.bf16.mxu0 %v2569_v35 }
  0x62   :  { %455 = vmatmul.mubr.bf16.gmra.mrb[32].mxu0 %v2571_v36 }
  0x63   :  { %462 = vmatprep.mubr.bf16.mxu0 %v2572_v37 }
  0x6a   :  { %463 = vmatmul.mubr.bf16.gmra.mrb[36].mxu0 %v2574_v38  ;;  %v2605_v38 = vld [vmem:[%s3718_s5 + $0x20] sm:$0xff]  }
  0x6b   :  { %470 = vmatprep.mubr.bf16.mxu0 %v2575_v39 }
  0x72   :  { %471 = vmatmul.mubr.bf16.gmra.mrb[40].mxu0 %v2577_v40 }
  0x73   :  { %478 = vmatprep.mubr.bf16.mxu0 %v2578_v41 }
  0x7a   :  { %479 = vmatmul.mubr.bf16.gmra.mrb[44].mxu0 %v2580_v43 }
  0x7b   :  { %486 = vmatprep.mubr.bf16.mxu0 %v2581_v44 }
  0x82   :  { %487 = vmatmul.mubr.bf16.gmra.mrb[48].mxu0 %v2583_v47 }
  0x83   :  { %494 = vmatprep.mubr.bf16.mxu0 %v2584_v48 }
  0x8a   :  { %495 = vmatmul.mubr.bf16.gmra.mrb[52].mxu0 %v2586_v51  ;;  %v2607_v51 = vld [vmem:[%s3718_s5 + $0x30] sm:$0xff]  }
  0x8b   :  { %502 = vmatprep.mubr.bf16.mxu0 %v2587_v52 }
  0x92   :  { %503 = vmatmul.mubr.bf16.gmra.mrb[56].mxu0 %v2589_v53 }
  0x93   :  { %510 = vmatprep.mubr.bf16.mxu0 %v2590_v54 }
  0x9a   :  { %511 = vmatmul.mubr.bf16.gmra.mrb[60].mxu0 %v2592_v55 }
  0xf5   :  { %v2289_v56 = vpop.f32.mrb[0].mxu0 }
  0xf6   :  { %v2290_v57 = vpop.f32.mrb[1].mxu0 }
  0xf7   :  { %v2291_v59 = vadd.f32 %v2290_v57, %v2289_v56  ;;  %v2292_v60 = vpop.f32.mrb[2].mxu0 }
  0xf8   :  { %v2293_v61 = vpop.f32.mrb[3].mxu0 }
  0xf9   :  { %v2294_v62 = vadd.f32 %v2293_v61, %v2292_v60  ;;  %v2897_v63 = vadd.f32 %v2291_v59, %v2894_v58 }
  0xfb   :  { %v2903_v1 = vadd.f32 %v2294_v62, %v2894_v58  ;;  %v733_v2 = vmax.f32 %v2897_v63, 0.0 }
  0xfd   :  { %v2295_v3 = vpop.f32.mrb[4].mxu0  ;;  %v734_v4 = vmax.f32 %v2903_v1, 0.0 }
  0xfe   :  { %v2296_v5 = vpop.f32.mrb[5].mxu0 }
  0xff   :  { %v2297_v6 = vadd.f32 %v2296_v5, %v2295_v3  ;;  %v2298_v7 = vpop.f32.mrb[6].mxu0  ;;  %v765_v8 = vpack.c.bf16 %v734_v4, %v733_v2 }
 0x100   :  { %v2299_v9 = vpop.f32.mrb[7].mxu0 }
 0x101   :  { %v2912_v10 = vadd.f32 %v2297_v6, %v2894_v58  ;;  %v2300_v11 = vadd.f32 %v2299_v9, %v2298_v7  ;;  %2449 = vmatprep.mubr.bf16.mxu1 %v765_v8 }
 0x103   :  { %v2915_v12 = vadd.f32 %v2300_v11, %v2894_v58  ;;  %v735_v13 = vmax.f32 %v2912_v10, 0.0 }
 0x105   :  { %v736_v14 = vmax.f32 %v2915_v12, 0.0  ;;  %v2301_v15 = vpop.f32.mrb[8].mxu0 }
 0x106   :  { %v2302_v16 = vpop.f32.mrb[9].mxu0 }
 0x107   :  { %v2303_v17 = vadd.f32 %v2302_v16, %v2301_v15  ;;  %v2304_v18 = vpop.f32.mrb[10].mxu0  ;;  %v766_v19 = vpack.c.bf16 %v736_v14, %v735_v13 }
 0x108   :  { %v2305_v21 = vpop.f32.mrb[11].mxu0 }
 0x109   :  { %v2927_v22 = vadd.f32 %v2303_v17, %v2894_v58  ;;  %v2306_v23 = vadd.f32 %v2305_v21, %v2304_v18  ;;  %2450 = vmatmul.mubr.bf16.vlgmr.msra.gmra.mrb[0].mxu1 %v766_v19 }
 0x10a   :  { %2482 = vmatpush3.bf16.msra.mxu1 %v2601_v0 }
 0x10b   :  { %v2930_v24 = vadd.f32 %v2306_v23, %v2894_v58  ;;  %2483 = vmatprep.subr.bf16.mxu1 %v2602_v20  ;;  %v737_v26 = vmax.f32 %v2927_v22, 0.0 }
 0x10d   :  { %v738_v27 = vmax.f32 %v2930_v24, 0.0  ;;  %v2307_v28 = vpop.f32.mrb[12].mxu0 }
 0x10e   :  { %v2308_v29 = vpop.f32.mrb[13].mxu0  ;;  %2484 = vmatpush3.bf16.msra.mxu1 %v2602_v20 }
 0x10f   :  { %v2309_v30 = vadd.f32 %v2308_v29, %v2307_v28  ;;  %v2310_v31 = vpop.f32.mrb[14].mxu0  ;;  %v767_v32 = vpack.c.bf16 %v738_v27, %v737_v26  ;;  %2485 = vmatprep.subr.bf16.mxu1 %v2603_v25 }
 0x110   :  { %v2311_v34 = vpop.f32.mrb[15].mxu0 }
 0x111   :  { %v2945_v35 = vadd.f32 %v2309_v30, %v2894_v58  ;;  %v2312_v36 = vadd.f32 %v2311_v34, %v2310_v31  ;;  %2453 = vmatprep.mubr.bf16.mxu1 %v767_v32 }
 0x112   :  { %2486 = vmatpush3.bf16.msra.mxu1 %v2603_v25 }
 0x113   :  { %v2948_v37 = vadd.f32 %v2312_v36, %v2894_v58  ;;  %2487 = vmatprep.subr.bf16.mxu1 %v2604_v33  ;;  %v739_v39 = vmax.f32 %v2945_v35, 0.0 }
 0x115   :  { %v740_v40 = vmax.f32 %v2948_v37, 0.0  ;;  %v2313_v41 = vpop.f32.mrb[16].mxu0 }
 0x116   :  { %v2314_v42 = vpop.f32.mrb[17].mxu0  ;;  %2488 = vmatpush3.bf16.msra.mxu1 %v2604_v33 }
 0x117   :  { %v2315_v43 = vadd.f32 %v2314_v42, %v2313_v41  ;;  %v2316_v44 = vpop.f32.mrb[18].mxu0  ;;  %v768_v45 = vpack.c.bf16 %v740_v40, %v739_v39  ;;  %2489 = vmatprep.subr.bf16.mxu1 %v2605_v38 }
 0x118   :  { %v2317_v47 = vpop.f32.mrb[19].mxu0 }
 0x119   :  { %v2963_v48 = vadd.f32 %v2315_v43, %v2894_v58  ;;  %v2318_v49 = vadd.f32 %v2317_v47, %v2316_v44  ;;  %2454 = vmatmul.mubr.bf16.gmra.mrb[4].mxu1 %v768_v45 }
 0x11a   :  { %2490 = vmatpush3.bf16.msra.mxu1 %v2605_v38 }
 0x11b   :  { %v2966_v50 = vadd.f32 %v2318_v49, %v2894_v58  ;;  %2491 = vmatprep.subr.bf16.mxu1 %v2606_v46  ;;  %v741_v52 = vmax.f32 %v2963_v48, 0.0 }
 0x11d   :  { %v742_v53 = vmax.f32 %v2966_v50, 0.0  ;;  %v2319_v54 = vpop.f32.mrb[20].mxu0 }
 0x11e   :  { %v2320_v55 = vpop.f32.mrb[21].mxu0  ;;  %2492 = vmatpush3.bf16.msra.mxu1 %v2606_v46 }
 0x11f   :  { %v2321_v56 = vadd.f32 %v2320_v55, %v2319_v54  ;;  %v2322_v57 = vpop.f32.mrb[22].mxu0  ;;  %v769_v59 = vpack.c.bf16 %v742_v53, %v741_v52  ;;  %2493 = vmatprep.subr.bf16.mxu1 %v2607_v51 }
 0x120   :  { %v2323_v60 = vpop.f32.mrb[23].mxu0 }
 0x121   :  { %v2978_v61 = vadd.f32 %v2321_v56, %v2894_v58  ;;  %v2324_v62 = vadd.f32 %v2323_v60, %v2322_v57  ;;  %2457 = vmatprep.mubr.bf16.mxu1 %v769_v59 }
 0x122   :  { %2494 = vmatpush3.bf16.msra.mxu1 %v2607_v51 }
 0x123   :  { %v2981_v0 = vadd.f32 %v2324_v62, %v2894_v58  ;;  %v743_v3 = vmax.f32 %v2978_v61, 0.0 }
 0x125   :  { %v744_v5 = vmax.f32 %v2981_v0, 0.0  ;;  %v2325_v6 = vpop.f32.mrb[24].mxu0 }
 0x126   :  { %v2326_v7 = vpop.f32.mrb[25].mxu0 }
 0x127   :  { %v2327_v8 = vadd.f32 %v2326_v7, %v2325_v6  ;;  %v2328_v9 = vpop.f32.mrb[26].mxu0  ;;  %v770_v11 = vpack.c.bf16 %v744_v5, %v743_v3 }
 0x128   :  { %v2329_v15 = vpop.f32.mrb[27].mxu0 }
 0x129   :  { %v2990_v16 = vadd.f32 %v2327_v8, %v2894_v58  ;;  %v2330_v17 = vadd.f32 %v2329_v15, %v2328_v9  ;;  %2458 = vmatmul.mubr.bf16.gmra.mrb[8].mxu1 %v770_v11 }
 0x12b   :  { %v2993_v18 = vadd.f32 %v2330_v17, %v2894_v58  ;;  %v3741_v19 = vmax.f32 %v2990_v16, 0.0 }
 0x12d   :  { %v3740_v20 = vmax.f32 %v2993_v18, 0.0  ;;  %v2331_v21 = vpop.f32.mrb[28].mxu0 }
 0x12e   :  { %v2332_v23 = vpop.f32.mrb[29].mxu0 }
 0x12f   :  { %v2333_v25 = vadd.f32 %v2332_v23, %v2331_v21  ;;  %v2334_v28 = vpop.f32.mrb[30].mxu0  ;;  %v771_v29 = vpack.c.bf16 %v3740_v20, %v3741_v19 }
 0x130   :  { %v2335_v30 = vpop.f32.mrb[31].mxu0 }
 0x131   :  { %v3002_v31 = vadd.f32 %v2333_v25, %v2894_v58  ;;  %v2336_v32 = vadd.f32 %v2335_v30, %v2334_v28  ;;  %2461 = vmatprep.mubr.bf16.mxu1 %v771_v29 }
 0x133   :  { %v3005_v33 = vadd.f32 %v2336_v32, %v2894_v58  ;;  %v747_v34 = vmax.f32 %v3002_v31, 0.0 }
 0x135   :  { %v3742_v36 = vmax.f32 %v3005_v33, 0.0  ;;  %v2337_v38 = vpop.f32.mrb[32].mxu0 }
 0x136   :  { %v2338_v41 = vpop.f32.mrb[33].mxu0 }
 0x137   :  { %v2339_v42 = vadd.f32 %v2338_v41, %v2337_v38  ;;  %v2340_v43 = vpop.f32.mrb[34].mxu0  ;;  %v772_v44 = vpack.c.bf16 %v3742_v36, %v747_v34 }
 0x138   :  { %v2341_v45 = vpop.f32.mrb[35].mxu0 }
 0x139   :  { %v3014_v46 = vadd.f32 %v2339_v42, %v2894_v58  ;;  %v2342_v47 = vadd.f32 %v2341_v45, %v2340_v43  ;;  %2462 = vmatmul.mubr.bf16.gmra.mrb[12].mxu1 %v772_v44 }
 0x13b   :  { %v3017_v49 = vadd.f32 %v2342_v47, %v2894_v58  ;;  %v3737_v51 = vmax.f32 %v3014_v46, 0.0 }
 0x13d   :  { %v3734_v54 = vmax.f32 %v3017_v49, 0.0  ;;  %v2343_v55 = vpop.f32.mrb[36].mxu0 }
 0x13e   :  { %v2344_v56 = vpop.f32.mrb[37].mxu0 }
 0x13f   :  { %v2345_v57 = vadd.f32 %v2344_v56, %v2343_v55  ;;  %v2346_v59 = vpop.f32.mrb[38].mxu0  ;;  %v773_v60 = vpack.c.bf16 %v3734_v54, %v3737_v51 }
 0x140   :  { %v2347_v62 = vpop.f32.mrb[39].mxu0 }
 0x141   :  { %v3026_v6 = vadd.f32 %v2345_v57, %v2894_v58  ;;  %v2348_v7 = vadd.f32 %v2347_v62, %v2346_v59  ;;  %2465 = vmatprep.mubr.bf16.mxu1 %v773_v60 }
 0x143   :  { %v3029_v8 = vadd.f32 %v2348_v7, %v2894_v58  ;;  %v3739_v9 = vmax.f32 %v3026_v6, 0.0 }
 0x145   :  { %v3738_v11 = vmax.f32 %v3029_v8, 0.0  ;;  %v2349_v15 = vpop.f32.mrb[40].mxu0 }
 0x146   :  { %v2350_v17 = vpop.f32.mrb[41].mxu0 }
 0x147   :  { %v2351_v21 = vadd.f32 %v2350_v17, %v2349_v15  ;;  %v2352_v23 = vpop.f32.mrb[42].mxu0  ;;  %v774_v25 = vpack.c.bf16 %v3738_v11, %v3739_v9 }
 0x148   :  { %v2353_v28 = vpop.f32.mrb[43].mxu0 }
 0x149   :  { %v3038_v29 = vadd.f32 %v2351_v21, %v2894_v58  ;;  %v2354_v30 = vadd.f32 %v2353_v28, %v2352_v23  ;;  %2466 = vmatmul.mubr.bf16.gmra.mrb[16].mxu1 %v774_v25 }
 0x14b   :  { %v3041_v32 = vadd.f32 %v2354_v30, %v2894_v58  ;;  %v3727_v38 = vmax.f32 %v3038_v29, 0.0 }
 0x14d   :  { %v3726_v41 = vmax.f32 %v3041_v32, 0.0  ;;  %v2355_v42 = vpop.f32.mrb[44].mxu0 }
 0x14e   :  { %v2356_v43 = vpop.f32.mrb[45].mxu0 }
 0x14f   :  { %v2357_v44 = vadd.f32 %v2356_v43, %v2355_v42  ;;  %v2358_v45 = vpop.f32.mrb[46].mxu0  ;;  %v775_v47 = vpack.c.bf16 %v3726_v41, %v3727_v38 }
 0x150   :  { %v2359_v55 = vpop.f32.mrb[47].mxu0 }
 0x151   :  { %v3050_v56 = vadd.f32 %v2357_v44, %v2894_v58  ;;  %v2360_v57 = vadd.f32 %v2359_v55, %v2358_v45  ;;  %2469 = vmatprep.mubr.bf16.mxu1 %v775_v47 }
 0x153   :  { %v3053_v59 = vadd.f32 %v2360_v57, %v2894_v58  ;;  %v3729_v60 = vmax.f32 %v3050_v56, 0.0 }
 0x155   :  { %v3728_v62 = vmax.f32 %v3053_v59, 0.0  ;;  %v2361_v7 = vpop.f32.mrb[48].mxu0 }
 0x156   :  { %v2362_v15 = vpop.f32.mrb[49].mxu0 }
 0x157   :  { %v2363_v17 = vadd.f32 %v2362_v15, %v2361_v7  ;;  %v2364_v21 = vpop.f32.mrb[50].mxu0  ;;  %v776_v23 = vpack.c.bf16 %v3728_v62, %v3729_v60 }
 0x158   :  { %v2365_v25 = vpop.f32.mrb[51].mxu0 }
 0x159   :  { %v3062_v28 = vadd.f32 %v2363_v17, %v2894_v58  ;;  %v2366_v30 = vadd.f32 %v2365_v25, %v2364_v21  ;;  %2470 = vmatmul.mubr.bf16.gmra.mrb[20].mxu1 %v776_v23  ;;  %v2608_v23 = vld [vmem:[%s3718_s5 + $0x38] sm:$0xff]  }
 0x15a   :  { %2495 = vmatprep.subr.bf16.mxu1 %v2608_v23 }
 0x15b   :  { %v3065_v42 = vadd.f32 %v2366_v30, %v2894_v58  ;;  %v3725_v43 = vmax.f32 %v3062_v28, 0.0  ;;  %2496 = vmatpush3.bf16.msra.mxu1 %v2608_v23 }
 0x15d   :  { %v3724_v44 = vmax.f32 %v3065_v42, 0.0  ;;  %v2367_v45 = vpop.f32.mrb[52].mxu0 }
 0x15e   :  { %v2368_v47 = vpop.f32.mrb[53].mxu0 }
 0x15f   :  { %v2369_v55 = vadd.f32 %v2368_v47, %v2367_v45  ;;  %v2370_v57 = vpop.f32.mrb[54].mxu0  ;;  %v777_v7 = vpack.c.bf16 %v3724_v44, %v3725_v43 }
 0x160   :  { %v2371_v15 = vpop.f32.mrb[55].mxu0 }
 0x161   :  { %v3074_v17 = vadd.f32 %v2369_v55, %v2894_v58  ;;  %v2372_v21 = vadd.f32 %v2371_v15, %v2370_v57  ;;  %2473 = vmatprep.mubr.bf16.mxu1 %v777_v7 }
 0x163   :  { %v3080_v25 = vadd.f32 %v2372_v21, %v2894_v58  ;;  %v3731_v30 = vmax.f32 %v3074_v17, 0.0 }
 0x165   :  { %v3730_v45 = vmax.f32 %v3080_v25, 0.0  ;;  %v2373_v47 = vpop.f32.mrb[56].mxu0 }
 0x166   :  { %v2374_v44 = vpop.f32.mrb[57].mxu0 }
 0x167   :  { %v2375_v43 = vadd.f32 %v2374_v44, %v2373_v47  ;;  %v2376_v55 = vpop.f32.mrb[58].mxu0  ;;  %v778_v57 = vpack.c.bf16 %v3730_v45, %v3731_v30 }
 0x168   :  { %v2377_v7 = vpop.f32.mrb[59].mxu0 }
 0x169   :  { %v3089_v15 = vadd.f32 %v2375_v43, %v2894_v58  ;;  %v2378_v21 = vadd.f32 %v2377_v7, %v2376_v55  ;;  %2474 = vmatmul.mubr.bf16.gmra.mrb[24].mxu1 %v778_v57 }
 0x16b   :  { %v3092_v23 = vadd.f32 %v2378_v21, %v2894_v58  ;;  %v3733_v41 = vmax.f32 %v3089_v15, 0.0 }
 0x16d   :  { %v3732_v38 = vmax.f32 %v3092_v23, 0.0  ;;  %v2379_v44 = vpop.f32.mrb[60].mxu0 }
 0x16e   :  { %v2380_v47 = vpop.f32.mrb[61].mxu0 }
 0x16f   :  { %v2381_v62 = vadd.f32 %v2380_v47, %v2379_v44  ;;  %v2382_v60 = vpop.f32.mrb[62].mxu0  ;;  %v779_v45 = vpack.c.bf16 %v3732_v38, %v3733_v41 }
 0x170   :  { %v2383_v43 = vpop.f32.mrb[63].mxu0 }
 0x171   :  { %v3101_v55 = vadd.f32 %v2381_v62, %v2894_v58  ;;  %v2384_v57 = vadd.f32 %v2383_v43, %v2382_v60  ;;  %2477 = vmatprep.mubr.bf16.mxu1 %v779_v45  ;;  %v3115_v62 = vld [vmem:[%s3719_s4] ss:$0 sm:$0xff] }
 0x173   :  { %v3104_v7 = vadd.f32 %v2384_v57, %v2894_v58  ;;  %v3736_v21 = vmax.f32 %v3101_v55, 0.0 }
 0x175   :  { %v3735_v30 = vmax.f32 %v3104_v7, 0.0 }
 0x177   :  { %v780_v44 = vpack.c.bf16 %v3735_v30, %v3736_v21 }
 0x179   :  { %2478 = vmatmul.mubr.bf16.gmra.mrb[28].mxu1 %v780_v44 }
 0x1dc   :  { %v2451_v60 = vpop.f32.mrb[0].mxu1 }
 0x1dd   :  { %v894_v45 = vadd.f32 %v2451_v60, %v3115_v62  ;;  %v885_v58 = vpop.f32.mrb[1].mxu1 }
 0x1de   :  { %v886_v47 = vadd.f32 %v3115_v62, %v885_v58  ;;  %v2452_v43 = vpop.f32.mrb[2].mxu1 }
 0x1df   :  { %v897_v57 = vadd.f32 %v2452_v43, %v3115_v62  ;;  %v888_v38 = vpop.f32.mrb[3].mxu1  ;;  %v1014_v54 = vmax.f32 %v894_v45, 0.0 }
 0x1e0   :  { %v889_v41 = vadd.f32 %v3115_v62, %v888_v38  ;;  %v1012_v44 = vmax.f32 %v886_v47, 0.0 }
 0x1e1   :  { %v1015_v30 = vmax.f32 %v897_v57, 0.0 }
 0x1e2   :  { %v1013_v21 = vmax.f32 %v889_v41, 0.0 }
 0x1e3   :  { %v1045_v51 = vpack.c.bf16 %v1015_v30, %v1014_v54 }
 0x1e4   :  { %v1044_v11 = vpack.c.bf16 %v1013_v21, %v1012_v44 }
 0x1e6   :  { %2497 = vmatprep.mubr.bf16.mxu1 %v1044_v11 }
 0x1e7   :  { %2498 = vmatmul.mubr.bf16.vlgmr.msra.gmra.mrb[32].mxu1 %v1045_v51 }
 0x1ec   :  { %v2455_v9 = vpop.f32.mrb[4].mxu1 }
 0x1ed   :  { %v910_v60 = vadd.f32 %v2455_v9, %v3115_v62  ;;  %v901_v20 = vpop.f32.mrb[5].mxu1 }
 0x1ee   :  { %v902_v58 = vadd.f32 %v3115_v62, %v901_v20  ;;  %v2456_v19 = vpop.f32.mrb[6].mxu1 }
 0x1ef   :  { %v913_v43 = vadd.f32 %v2456_v19, %v3115_v62  ;;  %v904_v36 = vpop.f32.mrb[7].mxu1  ;;  %v1018_v45 = vmax.f32 %v910_v60, 0.0 }
 0x1f0   :  { %v905_v38 = vadd.f32 %v3115_v62, %v904_v36  ;;  %v1016_v47 = vmax.f32 %v902_v58, 0.0 }
 0x1f1   :  { %v1019_v57 = vmax.f32 %v913_v43, 0.0 }
 0x1f2   :  { %v1017_v41 = vmax.f32 %v905_v38, 0.0 }
 0x1f3   :  { %v1047_v54 = vpack.c.bf16 %v1019_v57, %v1018_v45 }
 0x1f4   :  { %v1046_v30 = vpack.c.bf16 %v1017_v41, %v1016_v47 }
 0x1f6   :  { %2501 = vmatprep.mubr.bf16.mxu1 %v1046_v30 }
 0x1f7   :  { %2502 = vmatmul.mubr.bf16.gmra.mrb[36].mxu1 %v1047_v54 }
 0x1fc   :  { %v2459_v51 = vpop.f32.mrb[8].mxu1 }
 0x1fd   :  { %v926_v9 = vadd.f32 %v2459_v51, %v3115_v62  ;;  %v917_v11 = vpop.f32.mrb[9].mxu1 }
 0x1fe   :  { %v918_v20 = vadd.f32 %v3115_v62, %v917_v11  ;;  %v2460_v21 = vpop.f32.mrb[10].mxu1 }
 0x1ff   :  { %v929_v19 = vadd.f32 %v2460_v21, %v3115_v62  ;;  %v920_v44 = vpop.f32.mrb[11].mxu1  ;;  %v1022_v60 = vmax.f32 %v926_v9, 0.0 }
 0x200   :  { %v921_v36 = vadd.f32 %v3115_v62, %v920_v44  ;;  %v1020_v58 = vmax.f32 %v918_v20, 0.0 }
 0x201   :  { %v1023_v43 = vmax.f32 %v929_v19, 0.0 }
 0x202   :  { %v1021_v38 = vmax.f32 %v921_v36, 0.0 }
 0x203   :  { %v1049_v45 = vpack.c.bf16 %v1023_v43, %v1022_v60 }
 0x204   :  { %v1048_v57 = vpack.c.bf16 %v1021_v38, %v1020_v58 }
 0x206   :  { %2505 = vmatprep.mubr.bf16.mxu1 %v1048_v57 }
 0x207   :  { %2506 = vmatmul.mubr.bf16.gmra.mrb[40].mxu1 %v1049_v45 }
 0x20c   :  { %v2463_v47 = vpop.f32.mrb[12].mxu1 }
 0x20d   :  { %v942_v41 = vadd.f32 %v2463_v47, %v3115_v62  ;;  %v933_v54 = vpop.f32.mrb[13].mxu1 }
 0x20e   :  { %v934_v30 = vadd.f32 %v3115_v62, %v933_v54  ;;  %v2464_v51 = vpop.f32.mrb[14].mxu1 }
 0x20f   :  { %v945_v11 = vadd.f32 %v2464_v51, %v3115_v62  ;;  %v936_v21 = vpop.f32.mrb[15].mxu1  ;;  %v1026_v9 = vmax.f32 %v942_v41, 0.0 }
 0x210   :  { %v937_v44 = vadd.f32 %v3115_v62, %v936_v21  ;;  %v1024_v20 = vmax.f32 %v934_v30, 0.0 }
 0x211   :  { %v1027_v19 = vmax.f32 %v945_v11, 0.0 }
 0x212   :  { %v1025_v36 = vmax.f32 %v937_v44, 0.0 }
 0x213   :  { %v1051_v60 = vpack.c.bf16 %v1027_v19, %v1026_v9 }
 0x214   :  { %v1050_v43 = vpack.c.bf16 %v1025_v36, %v1024_v20 }
 0x216   :  { %2509 = vmatprep.mubr.bf16.mxu1 %v1050_v43 }
 0x217   :  { %2510 = vmatmul.mubr.bf16.gmra.mrb[44].mxu1 %v1051_v60 }
 0x21c   :  { %v2467_v58 = vpop.f32.mrb[16].mxu1 }
 0x21d   :  { %v958_v38 = vadd.f32 %v2467_v58, %v3115_v62  ;;  %v949_v45 = vpop.f32.mrb[17].mxu1 }
 0x21e   :  { %v950_v57 = vadd.f32 %v3115_v62, %v949_v45  ;;  %v2468_v47 = vpop.f32.mrb[18].mxu1 }
 0x21f   :  { %v961_v54 = vadd.f32 %v2468_v47, %v3115_v62  ;;  %v952_v51 = vpop.f32.mrb[19].mxu1  ;;  %v1030_v41 = vmax.f32 %v958_v38, 0.0 }
 0x220   :  { %v953_v21 = vadd.f32 %v3115_v62, %v952_v51  ;;  %v1028_v30 = vmax.f32 %v950_v57, 0.0 }
 0x221   :  { %v1031_v11 = vmax.f32 %v961_v54, 0.0 }
 0x222   :  { %v1029_v44 = vmax.f32 %v953_v21, 0.0 }
 0x223   :  { %v1053_v9 = vpack.c.bf16 %v1031_v11, %v1030_v41 }
 0x224   :  { %v1052_v19 = vpack.c.bf16 %v1029_v44, %v1028_v30 }
 0x226   :  { %2513 = vmatprep.mubr.bf16.mxu1 %v1052_v19 }
 0x227   :  { %2514 = vmatmul.mubr.bf16.gmra.mrb[48].mxu1 %v1053_v9 }
 0x22c   :  { %v2471_v20 = vpop.f32.mrb[20].mxu1 }
 0x22d   :  { %v974_v36 = vadd.f32 %v2471_v20, %v3115_v62  ;;  %v965_v60 = vpop.f32.mrb[21].mxu1 }
 0x22e   :  { %v966_v43 = vadd.f32 %v3115_v62, %v965_v60  ;;  %v2472_v58 = vpop.f32.mrb[22].mxu1 }
 0x22f   :  { %v977_v45 = vadd.f32 %v2472_v58, %v3115_v62  ;;  %v968_v47 = vpop.f32.mrb[23].mxu1  ;;  %v1034_v38 = vmax.f32 %v974_v36, 0.0 }
 0x230   :  { %v969_v51 = vadd.f32 %v3115_v62, %v968_v47  ;;  %v1032_v57 = vmax.f32 %v966_v43, 0.0 }
 0x231   :  { %v1035_v54 = vmax.f32 %v977_v45, 0.0 }
 0x232   :  { %v1033_v21 = vmax.f32 %v969_v51, 0.0 }
 0x233   :  { %v1055_v41 = vpack.c.bf16 %v1035_v54, %v1034_v38 }
 0x234   :  { %v1054_v11 = vpack.c.bf16 %v1033_v21, %v1032_v57 }
 0x236   :  { %2517 = vmatprep.mubr.bf16.mxu1 %v1054_v11 }
 0x237   :  { %2518 = vmatmul.mubr.bf16.gmra.mrb[52].mxu1 %v1055_v41 }
 0x23c   :  { %v2475_v30 = vpop.f32.mrb[24].mxu1 }
 0x23d   :  { %v990_v44 = vadd.f32 %v2475_v30, %v3115_v62  ;;  %v981_v9 = vpop.f32.mrb[25].mxu1 }
 0x23e   :  { %v982_v19 = vadd.f32 %v3115_v62, %v981_v9  ;;  %v2476_v20 = vpop.f32.mrb[26].mxu1 }
 0x23f   :  { %v993_v60 = vadd.f32 %v2476_v20, %v3115_v62  ;;  %v984_v58 = vpop.f32.mrb[27].mxu1  ;;  %v1038_v36 = vmax.f32 %v990_v44, 0.0 }
 0x240   :  { %v985_v47 = vadd.f32 %v3115_v62, %v984_v58  ;;  %v1036_v43 = vmax.f32 %v982_v19, 0.0 }
 0x241   :  { %v1039_v45 = vmax.f32 %v993_v60, 0.0 }
 0x242   :  { %v1037_v51 = vmax.f32 %v985_v47, 0.0 }
 0x243   :  { %v1057_v38 = vpack.c.bf16 %v1039_v45, %v1038_v36 }
 0x244   :  { %v1056_v54 = vpack.c.bf16 %v1037_v51, %v1036_v43  ;;  %v3152_v43 = vld [vmem:[%s3720_s6] ss:$0 sm:$0xff] }
 0x246   :  { %2521 = vmatprep.mubr.bf16.mxu1 %v1056_v54 }
 0x247   :  { %2522 = vmatmul.mubr.bf16.gmra.mrb[56].mxu1 %v1057_v38 }
 0x24c   :  { %v2479_v57 = vpop.f32.mrb[28].mxu1 }
 0x24d   :  { %v1006_v21 = vadd.f32 %v2479_v57, %v3115_v62  ;;  %v997_v41 = vpop.f32.mrb[29].mxu1 }
 0x24e   :  { %v998_v11 = vadd.f32 %v3115_v62, %v997_v41  ;;  %v2480_v30 = vpop.f32.mrb[30].mxu1 }
 0x24f   :  { %v1009_v9 = vadd.f32 %v2480_v30, %v3115_v62  ;;  %v1000_v20 = vpop.f32.mrb[31].mxu1  ;;  %v1042_v44 = vmax.f32 %v1006_v21, 0.0 }
 0x250   :  { %v1001_v58 = vadd.f32 %v3115_v62, %v1000_v20  ;;  %v1040_v19 = vmax.f32 %v998_v11, 0.0 }
 0x251   :  { %v1043_v60 = vmax.f32 %v1009_v9, 0.0 }
 0x252   :  { %v1041_v47 = vmax.f32 %v1001_v58, 0.0 }
 0x253   :  { %v1059_v36 = vpack.c.bf16 %v1043_v60, %v1042_v44 }
 0x254   :  { %v1058_v45 = vpack.c.bf16 %v1041_v47, %v1040_v19 }
 0x256   :  { %2525 = vmatprep.mubr.bf16.mxu1 %v1058_v45 }
 0x257   :  { %2526 = vmatmul.mubr.bf16.gmra.mrb[60].mxu1 %v1059_v36 }
 0x2ba   :  { %v2499_v51 = vpop.f32.mrb[32].mxu1 }
 0x2bb   :  { %v1173_v38 = vadd.f32 %v2499_v51, %v3152_v43  ;;  %v1164_v54 = vpop.f32.mrb[33].mxu1 }
 0x2bc   :  { %v1165_v57 = vadd.f32 %v3152_v43, %v1164_v54  ;;  %v2500_v62 = vpop.f32.mrb[34].mxu1 }
 0x2bd   :  { %v1293_v21 = vadd.f32 %v1173_v38, %v735_v13  ;;  %v1176_v41 = vadd.f32 %v2500_v62, %v3152_v43  ;;  %v1167_v11 = vpop.f32.mrb[35].mxu1 }
 0x2be   :  { %v1291_v30 = vadd.f32 %v1165_v57, %v733_v2  ;;  %v1168_v58 = vadd.f32 %v3152_v43, %v1167_v11 }
 0x2bf   :  { %v3161_v9 = vmax.f32 %v1293_v21, 0.0  ;;  %v1294_v20 = vadd.f32 %v1176_v41, %v736_v14 }
 0x2c0   :  { %v3166_v44 = vmax.f32 %v1291_v30, 0.0  ;;  %v1292_v13 = vadd.f32 %v1168_v58, %v734_v4 }
 0x2c1   :  { %1359 = vadd.xlane.f32.xlu1 %v3161_v9  ;;  %v3170_v10 = vmax.f32 %v1294_v20, 0.0  ;;  %v1453_v63 = vmul.f32 %v3161_v9, %v3161_v9 }
 0x2c2   :  { %1355 = vadd.xlane.f32.xlu0 %v3166_v44  ;;  %v3177_v2 = vmax.f32 %v1292_v13, 0.0  ;;  %v1451_v36 = vmul.f32 %v3166_v44, %v3166_v44 }
 0x2c3   :  { %v1454_v12 = vmul.f32 %v3170_v10, %v3170_v10 }
 0x2c4   :  { %v1452_v1 = vmul.f32 %v3177_v2, %v3177_v2 }
 0x2c5   :  { %1361 = vadd.xlane.f32.xlu1 %v3170_v10 }
 0x2c6   :  { %1487 = vadd.xlane.f32.xlu0 %v1453_v63 }
 0x2c9   :  { %1489 = vadd.xlane.f32.xlu1 %v1454_v12 }
 0x2ca   :  { %v2503_v14 = vpop.f32.mrb[36].mxu1  ;;  %1357 = vadd.xlane.f32.xlu0 %v3177_v2 }
 0x2cb   :  { %v1189_v60 = vadd.f32 %v2503_v14, %v3152_v43  ;;  %v1180_v19 = vpop.f32.mrb[37].mxu1 }
 0x2cc   :  { %v1181_v4 = vadd.f32 %v3152_v43, %v1180_v19  ;;  %v2504_v47 = vpop.f32.mrb[38].mxu1 }
 0x2cd   :  { %v1297_v45 = vadd.f32 %v1189_v60, %v739_v39  ;;  %v1192_v51 = vadd.f32 %v2504_v47, %v3152_v43  ;;  %v1183_v38 = vpop.f32.mrb[39].mxu1  ;;  %1485 = vadd.xlane.f32.xlu1 %v1452_v1 }
 0x2ce   :  { %v1184_v54 = vadd.f32 %v3152_v43, %v1183_v38  ;;  %1483 = vadd.xlane.f32.xlu0 %v1451_v36  ;;  %v1295_v21 = vadd.f32 %v1181_v4, %v737_v26 }
 0x2cf   :  { %v3192_v57 = vmax.f32 %v1297_v45, 0.0  ;;  %v1298_v62 = vadd.f32 %v1192_v51, %v740_v40 }
 0x2d0   :  { %v1296_v35 = vadd.f32 %v1184_v54, %v738_v27  ;;  %v3204_v39 = vmax.f32 %v1295_v21, 0.0 }
 0x2d1   :  { %v3198_v41 = vmax.f32 %v1298_v62, 0.0  ;;  %v1457_v22 = vmul.f32 %v3192_v57, %v3192_v57 }
 0x2d2   :  { %1367 = vadd.xlane.f32.xlu0 %v3192_v57  ;;  %v3206_v11 = vmax.f32 %v1296_v35, 0.0  ;;  %v1455_v20 = vmul.f32 %v3204_v39, %v3204_v39 }
 0x2d3   :  { %1369 = vadd.xlane.f32.xlu1 %v3198_v41  ;;  %v1458_v26 = vmul.f32 %v3198_v41, %v3198_v41 }
 0x2d4   :  { %v1456_v12 = vmul.f32 %v3206_v11, %v3206_v11 }
 0x2d6   :  { %1363 = vadd.xlane.f32.xlu0 %v3204_v39 }
 0x2d7   :  { %1365 = vadd.xlane.f32.xlu1 %v3206_v11 }
 0x2da   :  { %v2507_v24 = vpop.f32.mrb[40].mxu1  ;;  %1495 = vadd.xlane.f32.xlu0 %v1457_v22  ;;  %v3743_v22 = vmax.f32 %v3005_v33, 0.0 }
 0x2db   :  { %v1205_v27 = vadd.f32 %v2507_v24, %v3152_v43  ;;  %v1196_v37 = vpop.f32.mrb[41].mxu1  ;;  %1497 = vadd.xlane.f32.xlu1 %v1458_v26  ;;  %v3744_v24 = vmax.f32 %v2990_v16, 0.0 }
 0x2dc   :  { %v1197_v40 = vadd.f32 %v3152_v43, %v1196_v37  ;;  %v2508_v30 = vpop.f32.mrb[42].mxu1 }
 0x2dd   :  { %v1301_v58 = vadd.f32 %v1205_v27, %v743_v3  ;;  %v1208_v13 = vadd.f32 %v2508_v30, %v3152_v43  ;;  %v1199_v63 = vpop.f32.mrb[43].mxu1 }
 0x2de   :  { %v1200_v14 = vadd.f32 %v3152_v43, %v1199_v63  ;;  %1491 = vadd.xlane.f32.xlu0 %v1455_v20  ;;  %v1299_v1 = vadd.f32 %v1197_v40, %v741_v52 }
 0x2df   :  { %v3224_v60 = vmax.f32 %v1301_v58, 0.0  ;;  %v1302_v19 = vadd.f32 %v1208_v13, %v744_v5  ;;  %1493 = vadd.xlane.f32.xlu1 %v1456_v12 }
 0x2e0   :  { %v1300_v3 = vadd.f32 %v1200_v14, %v742_v53  ;;  %v3236_v4 = vmax.f32 %v1299_v1, 0.0  ;;  %v3746_v14 = vmax.f32 %v3026_v6, 0.0 }
 0x2e1   :  { %v3230_v61 = vmax.f32 %v1302_v19, 0.0  ;;  %v1461_v48 = vmul.f32 %v3224_v60, %v3224_v60 }
 0x2e2   :  { %1375 = vadd.xlane.f32.xlu0 %v3224_v60  ;;  %v3238_v47 = vmax.f32 %v1300_v3, 0.0  ;;  %v1459_v45 = vmul.f32 %v3236_v4, %v3236_v4 }
 0x2e3   :  { %1377 = vadd.xlane.f32.xlu1 %v3230_v61  ;;  %v1462_v52 = vmul.f32 %v3230_v61, %v3230_v61 }
 0x2e4   :  { %v1460_v62 = vmul.f32 %v3238_v47, %v3238_v47 }
 0x2e6   :  { %1371 = vadd.xlane.f32.xlu0 %v3236_v4 }
 0x2e7   :  { %1373 = vadd.xlane.f32.xlu1 %v3238_v47 }
 0x2ea   :  { %v2511_v50 = vpop.f32.mrb[44].mxu1  ;;  %1503 = vadd.xlane.f32.xlu0 %v1461_v48 }
 0x2eb   :  { %v1221_v53 = vadd.f32 %v2511_v50, %v3152_v43  ;;  %v1212_v0 = vpop.f32.mrb[45].mxu1  ;;  %1505 = vadd.xlane.f32.xlu1 %v1462_v52 }
 0x2ec   :  { %v1213_v5 = vadd.f32 %v3152_v43, %v1212_v0  ;;  %v2512_v36 = vpop.f32.mrb[46].mxu1 }
 0x2ed   :  { %v1305_v51 = vadd.f32 %v1221_v53, %v747_v34  ;;  %v1224_v38 = vadd.f32 %v2512_v36, %v3152_v43  ;;  %v1215_v54 = vpop.f32.mrb[47].mxu1  ;;  %v3745_v34 = vmax.f32 %v2993_v18, 0.0  ;;  %v3747_v53 = vmax.f32 %v3029_v8, 0.0 }
 0x2ee   :  { %v1216_v21 = vadd.f32 %v3152_v43, %v1215_v54  ;;  %1499 = vadd.xlane.f32.xlu0 %v1459_v45  ;;  %v1303_v27 = vadd.f32 %v1213_v5, %v3744_v24  ;;  %v3748_v5 = vmax.f32 %v3014_v46, 0.0  ;;  %v3749_v45 = vmax.f32 %v3017_v49, 0.0 }
 0x2ef   :  { %v3256_v35 = vmax.f32 %v1305_v51, 0.0  ;;  %v1306_v26 = vadd.f32 %v1224_v38, %v3743_v22  ;;  %1501 = vadd.xlane.f32.xlu1 %v1460_v62 }
 0x2f0   :  { %v1304_v37 = vadd.f32 %v1216_v21, %v3745_v34  ;;  %v3268_v40 = vmax.f32 %v1303_v27, 0.0  ;;  %v3750_v27 = vmax.f32 %v3050_v56, 0.0 }
 0x2f1   :  { %v3262_v31 = vmax.f32 %v1306_v26, 0.0  ;;  %v1465_v16 = vmul.f32 %v3256_v35, %v3256_v35 }
 0x2f2   :  { %1383 = vadd.xlane.f32.xlu0 %v3256_v35  ;;  %v3270_v30 = vmax.f32 %v1304_v37, 0.0  ;;  %v1463_v12 = vmul.f32 %v3268_v40, %v3268_v40 }
 0x2f3   :  { %1385 = vadd.xlane.f32.xlu1 %v3262_v31  ;;  %v1466_v33 = vmul.f32 %v3262_v31, %v3262_v31 }
 0x2f4   :  { %v1464_v48 = vmul.f32 %v3270_v30, %v3270_v30 }
 0x2f6   :  { %1379 = vadd.xlane.f32.xlu0 %v3268_v40 }
 0x2f7   :  { %1381 = vadd.xlane.f32.xlu1 %v3270_v30 }
 0x2fa   :  { %v2515_v18 = vpop.f32.mrb[48].mxu1  ;;  %1511 = vadd.xlane.f32.xlu0 %v1465_v16 }
 0x2fb   :  { %v1237_v20 = vadd.f32 %v2515_v18, %v3152_v43  ;;  %v1228_v58 = vpop.f32.mrb[49].mxu1  ;;  %1513 = vadd.xlane.f32.xlu1 %v1466_v33 }
 0x2fc   :  { %v1229_v13 = vadd.f32 %v3152_v43, %v1228_v58  ;;  %v2516_v63 = vpop.f32.mrb[50].mxu1  ;;  %v3751_v58 = vmax.f32 %v3053_v59, 0.0 }
 0x2fd   :  { %v1309_v19 = vadd.f32 %v1237_v20, %v3746_v14  ;;  %v1240_v1 = vadd.f32 %v2516_v63, %v3152_v43  ;;  %v1231_v3 = vpop.f32.mrb[51].mxu1  ;;  %v3752_v63 = vmax.f32 %v3038_v29, 0.0  ;;  %v3753_v14 = vmax.f32 %v3041_v32, 0.0 }
 0x2fe   :  { %v1232_v52 = vadd.f32 %v3152_v43, %v1231_v3  ;;  %1507 = vadd.xlane.f32.xlu0 %v1463_v12  ;;  %v1307_v36 = vadd.f32 %v1229_v13, %v3748_v5 }
 0x2ff   :  { %v3288_v50 = vmax.f32 %v1309_v19, 0.0  ;;  %v1310_v0 = vadd.f32 %v1240_v1, %v3747_v53  ;;  %1509 = vadd.xlane.f32.xlu1 %v1464_v48 }
 0x300   :  { %v1308_v51 = vadd.f32 %v1232_v52, %v3749_v45  ;;  %v3300_v38 = vmax.f32 %v1307_v36, 0.0  ;;  %v3754_v36 = vmax.f32 %v3074_v17, 0.0 }
 0x301   :  { %v3294_v6 = vmax.f32 %v1310_v0, 0.0  ;;  %v1469_v46 = vmul.f32 %v3288_v50, %v3288_v50 }
 0x302   :  { %1391 = vadd.xlane.f32.xlu0 %v3288_v50  ;;  %v3302_v54 = vmax.f32 %v1308_v51, 0.0  ;;  %v1467_v24 = vmul.f32 %v3300_v38, %v3300_v38 }
 0x303   :  { %1393 = vadd.xlane.f32.xlu1 %v3294_v6  ;;  %v1470_v8 = vmul.f32 %v3294_v6, %v3294_v6 }
 0x304   :  { %v1468_v33 = vmul.f32 %v3302_v54, %v3302_v54 }
 0x306   :  { %1387 = vadd.xlane.f32.xlu0 %v3300_v38 }
 0x307   :  { %1389 = vadd.xlane.f32.xlu1 %v3302_v54 }
 0x30a   :  { %v2519_v49 = vpop.f32.mrb[52].mxu1  ;;  %1519 = vadd.xlane.f32.xlu0 %v1469_v46 }
 0x30b   :  { %v1253_v62 = vadd.f32 %v2519_v49, %v3152_v43  ;;  %v1244_v21 = vpop.f32.mrb[53].mxu1  ;;  %1521 = vadd.xlane.f32.xlu1 %v1470_v8 }
 0x30c   :  { %v1245_v22 = vadd.f32 %v3152_v43, %v1244_v21  ;;  %v2520_v26 = vpop.f32.mrb[54].mxu1  ;;  %v3755_v21 = vmax.f32 %v3080_v25, 0.0 }
 0x30d   :  { %v1313_v34 = vadd.f32 %v1253_v62, %v3750_v27  ;;  %v1256_v37 = vadd.f32 %v2520_v26, %v3152_v43  ;;  %v1247_v16 = vpop.f32.mrb[55].mxu1  ;;  %v3756_v26 = vmax.f32 %v3062_v28, 0.0  ;;  %v3757_v27 = vmax.f32 %v3065_v42, 0.0 }
 0x30e   :  { %v1248_v18 = vadd.f32 %v3152_v43, %v1247_v16  ;;  %1515 = vadd.xlane.f32.xlu0 %v1467_v24  ;;  %v1311_v12 = vadd.f32 %v1245_v22, %v3752_v63 }
 0x30f   :  { %v3320_v20 = vmax.f32 %v1313_v34, 0.0  ;;  %v1314_v13 = vadd.f32 %v1256_v37, %v3751_v58  ;;  %1517 = vadd.xlane.f32.xlu1 %v1468_v33 }
 0x310   :  { %v1312_v19 = vadd.f32 %v1248_v18, %v3753_v14  ;;  %v3332_v1 = vmax.f32 %v1311_v12, 0.0  ;;  %v3758_v12 = vmax.f32 %v3101_v55, 0.0 }
 0x311   :  { %v3326_v56 = vmax.f32 %v1314_v13, 0.0  ;;  %v1473_v29 = vmul.f32 %v3320_v20, %v3320_v20 }
 0x312   :  { %1399 = vadd.xlane.f32.xlu0 %v3320_v20  ;;  %v3334_v3 = vmax.f32 %v1312_v19, 0.0  ;;  %v1471_v5 = vmul.f32 %v3332_v1, %v3332_v1 }
 0x313   :  { %1401 = vadd.xlane.f32.xlu1 %v3326_v56  ;;  %v1474_v59 = vmul.f32 %v3326_v56, %v3326_v56 }
 0x314   :  { %v1472_v8 = vmul.f32 %v3334_v3, %v3334_v3 }
 0x316   :  { %1395 = vadd.xlane.f32.xlu0 %v3332_v1 }
 0x317   :  { %1397 = vadd.xlane.f32.xlu1 %v3334_v3 }
 0x31a   :  { %v2523_v32 = vpop.f32.mrb[56].mxu1  ;;  %1527 = vadd.xlane.f32.xlu0 %v1473_v29 }
 0x31b   :  { %v1269_v48 = vadd.f32 %v2523_v32, %v3152_v43  ;;  %v1260_v52 = vpop.f32.mrb[57].mxu1  ;;  %1529 = vadd.xlane.f32.xlu1 %v1474_v59 }
 0x31c   :  { %v1261_v53 = vadd.f32 %v3152_v43, %v1260_v52  ;;  %v2524_v0 = vpop.f32.mrb[58].mxu1  ;;  %v3759_v52 = vmax.f32 %v3104_v7, 0.0 }
 0x31d   :  { %v1317_v45 = vadd.f32 %v1269_v48, %v3754_v36  ;;  %v1272_v51 = vadd.f32 %v2524_v0, %v3152_v43  ;;  %v1263_v46 = vpop.f32.mrb[59].mxu1  ;;  %v3760_v0 = vmax.f32 %v3089_v15, 0.0  ;;  %v3761_v36 = vmax.f32 %v3092_v23, 0.0 }
 0x31e   :  { %v1264_v49 = vadd.f32 %v3152_v43, %v1263_v46  ;;  %1523 = vadd.xlane.f32.xlu0 %v1471_v5  ;;  %v1315_v24 = vadd.f32 %v1261_v53, %v3756_v26 }
 0x31f   :  { %v3352_v62 = vmax.f32 %v1317_v45, 0.0  ;;  %v1318_v22 = vadd.f32 %v1272_v51, %v3755_v21  ;;  %1525 = vadd.xlane.f32.xlu1 %v1472_v8 }
 0x320   :  { %v1316_v34 = vadd.f32 %v1264_v49, %v3757_v27  ;;  %v3364_v37 = vmax.f32 %v1315_v24, 0.0 }
 0x321   :  { %v3358_v17 = vmax.f32 %v1318_v22, 0.0  ;;  %v1477_v28 = vmul.f32 %v3352_v62, %v3352_v62 }
 0x322   :  { %1407 = vadd.xlane.f32.xlu0 %v3352_v62  ;;  %v3366_v16 = vmax.f32 %v1316_v34, 0.0  ;;  %v1475_v63 = vmul.f32 %v3364_v37, %v3364_v37 }
 0x323   :  { %1409 = vadd.xlane.f32.xlu1 %v3358_v17  ;;  %v1478_v25 = vmul.f32 %v3358_v17, %v3358_v17 }
 0x324   :  { %v1476_v59 = vmul.f32 %v3366_v16, %v3366_v16 }
 0x326   :  { %1403 = vadd.xlane.f32.xlu0 %v3364_v37 }
 0x327   :  { %1405 = vadd.xlane.f32.xlu1 %v3366_v16 }
 0x32a   :  { %v2527_v42 = vpop.f32.mrb[60].mxu1  ;;  %1535 = vadd.xlane.f32.xlu0 %v1477_v28 }
 0x32b   :  { %v1285_v33 = vadd.f32 %v2527_v42, %v3152_v43  ;;  %v1276_v18 = vpop.f32.mrb[61].mxu1  ;;  %1537 = vadd.xlane.f32.xlu1 %v1478_v25 }
 0x32c   :  { %v1277_v58 = vadd.f32 %v3152_v43, %v1276_v18  ;;  %v2528_v13 = vpop.f32.mrb[62].mxu1 }
 0x32d   :  { %v1321_v14 = vadd.f32 %v1285_v33, %v3758_v12  ;;  %v1288_v19 = vadd.f32 %v2528_v13, %v3152_v43  ;;  %v1279_v29 = vpop.f32.mrb[63].mxu1 }
 0x32e   :  { %v1280_v32 = vadd.f32 %v3152_v43, %v1279_v29  ;;  %1531 = vadd.xlane.f32.xlu0 %v1475_v63  ;;  %v1319_v5 = vadd.f32 %v1277_v58, %v3760_v0 }
 0x32f   :  { %v3384_v48 = vmax.f32 %v1321_v14, 0.0  ;;  %v1322_v53 = vadd.f32 %v1288_v19, %v3759_v52  ;;  %1533 = vadd.xlane.f32.xlu1 %v1476_v59 }
 0x330   :  { %v1320_v45 = vadd.f32 %v1280_v32, %v3761_v36  ;;  %v3396_v43 = vmax.f32 %v1319_v5, 0.0 }
 0x331   :  { %v3390_v55 = vmax.f32 %v1322_v53, 0.0  ;;  %v1481_v23 = vmul.f32 %v3384_v48, %v3384_v48 }
 0x332   :  { %1415 = vadd.xlane.f32.xlu0 %v3384_v48  ;;  %v3398_v51 = vmax.f32 %v1320_v45, 0.0  ;;  %v1479_v15 = vmul.f32 %v3396_v43, %v3396_v43 }
 0x333   :  { %1417 = vadd.xlane.f32.xlu1 %v3390_v55  ;;  %v1482_v46 = vmul.f32 %v3390_v55, %v3390_v55 }
 0x334   :  { %v1480_v7 = vmul.f32 %v3398_v51, %v3398_v51 }
 0x336   :  { %1411 = vadd.xlane.f32.xlu0 %v3396_v43 }
 0x337   :  { %1413 = vadd.xlane.f32.xlu1 %v3398_v51 }
 0x33a   :  { %1539 = vadd.xlane.f32.xlu0 %v1479_v15 }
 0x33b   :  { %1541 = vadd.xlane.f32.xlu1 %v1480_v7 }
 0x33e   :  { %1543 = vadd.xlane.f32.xlu0 %v1481_v23 }
 0x33f   :  { %1545 = vadd.xlane.f32.xlu1 %v1482_v46 }
 0x34e   :  { %v1360_v8 = vpop.xlane.xlu1 %1359 }
 0x34f   :  { %v1356_v49 = vpop.xlane.xlu0 %1355  ;;  %v1421_v21 = vmul.f32 0.015625, %v1360_v8 }
 0x350   :  { %v3410_v58 = vmul.f32 0.015625, %v1356_v49 }
 0x351   :  { %v1581_v27 = vmul.f32 %v1421_v21, %v1421_v21 }
 0x352   :  { %v1362_v22 = vpop.xlane.xlu1 %1361  ;;  %v1579_v53 = vmul.f32 %v3410_v58, %v3410_v58 }
 0x353   :  { %v1422_v26 = vmul.f32 0.015625, %v1362_v22  ;;  %v1488_v24 = vpop.xlane.xlu0 %1487 }
 0x354   :  { %v1549_v34 = vmul.f32 0.015625, %v1488_v24 }
 0x355   :  { %v1582_v42 = vmul.f32 %v1422_v26, %v1422_v26 }
 0x356   :  { %v1613_v28 = vsub.f32 %v1549_v34, %v1581_v27  ;;  %v1490_v25 = vpop.xlane.xlu1 %1489  ;;  %v1677_v34 = vsub.f32 %v3161_v9, %v1421_v21 }
 0x357   :  { %v1550_v33 = vmul.f32 0.015625, %v1490_v25  ;;  %v1358_v18 = vpop.xlane.xlu0 %1357 }
 0x358   :  { %v1645_v13 = vmax.f32 %v1613_v28, 0.0  ;;  %v3412_v63 = vmul.f32 0.015625, %v1358_v18 }
 0x359   :  { %v1614_v12 = vsub.f32 %v1550_v33, %v1582_v42  ;;  %v3426_v42 = vld [vmem:[%s3721_s7] ss:$0 sm:$0xff] }
 0x35a   :  { %v1709_v14 = vadd.f32 1e-05, %v1645_v13  ;;  %v1580_v19 = vmul.f32 %v3412_v63, %v3412_v63  ;;  %v1486_v29 = vpop.xlane.xlu1 %1485  ;;  %v1678_v13 = vsub.f32 %v3170_v10, %v1422_v26  ;;  %v3441_v10 = vld [vmem:[%s3722_s8] ss:$0 sm:$0xff] }
 0x35b   :  { %v1646_v59 = vmax.f32 %v1614_v12, 0.0  ;;  %v1548_v32 = vmul.f32 0.015625, %v1486_v29  ;;  %v1484_v52 = vpop.xlane.xlu0 %1483 }
 0x35c   :  { %2609 = vrsqrt.f32 %v1709_v14  ;;  %v1547_v0 = vmul.f32 0.015625, %v1484_v52 }
 0x35d   :  { %v1710_v5 = vadd.f32 1e-05, %v1646_v59  ;;  %v1612_v36 = vsub.f32 %v1548_v32, %v1580_v19 }
 0x35e   :  { %v1611_v45 = vsub.f32 %v1547_v0, %v1579_v53  ;;  %v1675_v0 = vsub.f32 %v3166_v44, %v3410_v58 }
 0x35f   :  { %2611 = vrsqrt.f32 %v1710_v5  ;;  %v1644_v15 = vmax.f32 %v1612_v36, 0.0  ;;  %v1368_v7 = vpop.xlane.xlu0 %1367  ;;  %v1676_v5 = vsub.f32 %v3177_v2, %v3412_v63 }
 0x360   :  { %v1643_v23 = vmax.f32 %v1611_v45, 0.0  ;;  %v1370_v46 = vpop.xlane.xlu1 %1369  ;;  %v3418_v24 = vmul.f32 0.015625, %v1368_v7 }
 0x361   :  { %v1708_v8 = vadd.f32 1e-05, %v1644_v15  ;;  %v3421_v28 = vmul.f32 0.015625, %v1370_v46 }
 0x362   :  { %v1707_v49 = vadd.f32 1e-05, %v1643_v23  ;;  %v1585_v12 = vmul.f32 %v3418_v24, %v3418_v24 }
 0x363   :  { %2613 = vrsqrt.f32 %v1708_v8  ;;  %v1364_v22 = vpop.xlane.xlu0 %1363  ;;  %v1586_v59 = vmul.f32 %v3421_v28, %v3421_v28 }
 0x364   :  { %2615 = vrsqrt.f32 %v1707_v49  ;;  %v1366_v27 = vpop.xlane.xlu1 %1365  ;;  %v3431_v14 = vmul.f32 0.015625, %v1364_v22 }
 0x365   :  { %v3436_v32 = vmul.f32 0.015625, %v1366_v27 }
 0x366   :  { %v2610_v25 = vpop.eup %2609  ;;  %v1583_v7 = vmul.f32 %v3431_v14, %v3431_v14 }
 0x367   :  { %v1773_v33 = vmul.f32 %v2610_v25, %v1677_v34  ;;  %v1496_v18 = vpop.xlane.xlu0 %1495  ;;  %v1584_v27 = vmul.f32 %v3436_v32, %v3436_v32 }
 0x368   :  { %v1553_v19 = vmul.f32 0.015625, %v1496_v18  ;;  %v1498_v29 = vpop.xlane.xlu1 %1497 }
 0x369   :  { %v2612_v9 = vpop.eup %2611  ;;  %v1811_v21 = vmul.f32 %v3426_v42, %v1773_v33  ;;  %v1554_v52 = vmul.f32 0.015625, %v1498_v29 }
 0x36a   :  { %v1774_v26 = vmul.f32 %v2612_v9, %v1678_v13  ;;  %v1617_v53 = vsub.f32 %v1553_v19, %v1585_v12 }
 0x36b   :  { %v1618_v36 = vsub.f32 %v1554_v52, %v1586_v59  ;;  %v1492_v45 = vpop.xlane.xlu0 %1491  ;;  %v1849_v22 = vadd.f32 %v3441_v10, %v1811_v21 }
 0x36c   :  { %v1812_v15 = vmul.f32 %v3426_v42, %v1774_v26  ;;  %v1649_v23 = vmax.f32 %v1617_v53, 0.0  ;;  %v1551_v46 = vmul.f32 0.015625, %v1492_v45  ;;  %v1494_v8 = vpop.xlane.xlu1 %1493 }
 0x36d   :  { %v2614_v49 = vpop.eup %2613  ;;  %v1650_v44 = vmax.f32 %v1618_v36, 0.0  ;;  %v1552_v58 = vmul.f32 0.015625, %v1494_v8 }
 0x36e   :  { %v2616_v34 = vpop.eup %2615  ;;  %v1850_v2 = vadd.f32 %v3441_v10, %v1812_v15  ;;  %v1772_v63 = vmul.f32 %v2614_v49, %v1676_v5  ;;  %v1713_v25 = vadd.f32 1e-05, %v1649_v23  ;;  %v1615_v33 = vsub.f32 %v1551_v46, %v1583_v7 }
 0x36f   :  { %v1771_v18 = vmul.f32 %v2616_v34, %v1675_v0  ;;  %v1714_v13 = vadd.f32 1e-05, %v1650_v44  ;;  %v1616_v12 = vsub.f32 %v1552_v58, %v1584_v27  ;;  %v1376_v19 = vpop.xlane.xlu0 %1375  ;;  %v1681_v58 = vsub.f32 %v3192_v57, %v3418_v24 }
 0x370   :  { %v2186_v29 = vpack.c.bf16 %v1850_v2, %v1849_v22  ;;  %v1810_v9 = vmul.f32 %v3426_v42, %v1772_v63  ;;  %2617 = vrsqrt.f32 %v1713_v25  ;;  %v1647_v21 = vmax.f32 %v1615_v33, 0.0  ;;  %v1378_v59 = vpop.xlane.xlu1 %1377 }
 0x371   :  { %v1809_v52 = vmul.f32 %v3426_v42, %v1771_v18  ;;  %2619 = vrsqrt.f32 %v1714_v13  ;;  %v1648_v26 = vmax.f32 %v1616_v12, 0.0  ;;  %v3461_v15 = vmul.f32 0.015625, %v1376_v19 }
 0x372   :  { %2258 = vst [vmem:[%s3723_s9 + $0x8] sm:$0xff] %v2186_v29   ;;  %v1848_v53 = vadd.f32 %v3441_v10, %v1810_v9  ;;  %v1711_v0 = vadd.f32 1e-05, %v1647_v21  ;;  %v3463_v46 = vmul.f32 0.015625, %v1378_v59  ;;  %v1682_v33 = vsub.f32 %v3198_v41, %v3421_v28 }
 0x373   :  { %v1847_v5 = vadd.f32 %v3441_v10, %v1809_v52  ;;  %v1712_v36 = vadd.f32 1e-05, %v1648_v26  ;;  %v1372_v45 = vpop.xlane.xlu0 %1371  ;;  %v1589_v49 = vmul.f32 %v3461_v15, %v3461_v15  ;;  %v1679_v12 = vsub.f32 %v3204_v39, %v3431_v14 }
 0x374   :  { %2621 = vrsqrt.f32 %v1711_v0  ;;  %v1374_v7 = vpop.xlane.xlu1 %1373  ;;  %v3470_v22 = vmul.f32 0.015625, %v1372_v45  ;;  %v1590_v34 = vmul.f32 %v3463_v46, %v3463_v46  ;;  %v1680_v39 = vsub.f32 %v3206_v11, %v3436_v32 }
 0x375   :  { %v2181_v23 = vpack.c.bf16 %v1848_v53, %v1847_v5  ;;  %2623 = vrsqrt.f32 %v1712_v36  ;;  %v3476_v2 = vmul.f32 0.015625, %v1374_v7 }
 0x376   :  { %v1587_v57 = vmul.f32 %v3470_v22, %v3470_v22 }
 0x377   :  { %2182 = vst [vmem:[%s3723_s9] sm:$0xff] %v2181_v23   ;;  %v1504_v8 = vpop.xlane.xlu0 %1503  ;;  %v1588_v41 = vmul.f32 %v3476_v2, %v3476_v2 }
 0x378   :  { %v1557_v27 = vmul.f32 0.015625, %v1504_v8  ;;  %v1506_v44 = vpop.xlane.xlu1 %1505 }
 0x379   :  { %v1558_v63 = vmul.f32 0.015625, %v1506_v44 }
 0x37a   :  { %v2618_v25 = vpop.eup %2617  ;;  %v1621_v18 = vsub.f32 %v1557_v27, %v1589_v49 }
 0x37b   :  { %v2620_v13 = vpop.eup %2619  ;;  %v1777_v19 = vmul.f32 %v2618_v25, %v1681_v58  ;;  %v1622_v29 = vsub.f32 %v1558_v63, %v1590_v34  ;;  %v1500_v9 = vpop.xlane.xlu0 %1499 }
 0x37c   :  { %v1778_v21 = vmul.f32 %v2620_v13, %v1682_v33  ;;  %v1653_v24 = vmax.f32 %v1621_v18, 0.0  ;;  %v1555_v59 = vmul.f32 0.015625, %v1500_v9  ;;  %v1502_v52 = vpop.xlane.xlu1 %1501 }
 0x37d   :  { %v1815_v26 = vmul.f32 %v3426_v42, %v1777_v19  ;;  %v1654_v28 = vmax.f32 %v1622_v29, 0.0  ;;  %v1556_v53 = vmul.f32 0.015625, %v1502_v52 }
 0x37e   :  { %v2622_v0 = vpop.eup %2621  ;;  %v1816_v14 = vmul.f32 %v3426_v42, %v1778_v21  ;;  %v1717_v5 = vadd.f32 1e-05, %v1653_v24  ;;  %v1619_v36 = vsub.f32 %v1555_v59, %v1587_v57 }
 0x37f   :  { %v2624_v45 = vpop.eup %2623  ;;  %v1853_v7 = vadd.f32 %v3441_v10, %v1815_v26  ;;  %v1775_v23 = vmul.f32 %v2622_v0, %v1679_v12  ;;  %v1718_v8 = vadd.f32 1e-05, %v1654_v28  ;;  %v1620_v49 = vsub.f32 %v1556_v53, %v1588_v41  ;;  %v1384_v27 = vpop.xlane.xlu0 %1383 }
 0x380   :  { %v1854_v44 = vadd.f32 %v3441_v10, %v1816_v14  ;;  %v1776_v58 = vmul.f32 %v2624_v45, %v1680_v39  ;;  %2625 = vrsqrt.f32 %v1717_v5  ;;  %v1651_v34 = vmax.f32 %v1619_v36, 0.0  ;;  %v1386_v63 = vpop.xlane.xlu1 %1385 }
 0x381   :  { %v1813_v25 = vmul.f32 %v3426_v42, %v1775_v23  ;;  %2627 = vrsqrt.f32 %v1718_v8  ;;  %v1652_v11 = vmax.f32 %v1620_v49, 0.0  ;;  %v3499_v9 = vmul.f32 0.015625, %v1384_v27 }
 0x382   :  { %v2196_v32 = vpack.c.bf16 %v1854_v44, %v1853_v7  ;;  %v1814_v33 = vmul.f32 %v3426_v42, %v1776_v58  ;;  %v1715_v18 = vadd.f32 1e-05, %v1651_v34  ;;  %v3501_v57 = vmul.f32 0.015625, %v1386_v63 }
 0x383   :  { %v1851_v13 = vadd.f32 %v3441_v10, %v1813_v25  ;;  %v1716_v12 = vadd.f32 1e-05, %v1652_v11  ;;  %v1380_v19 = vpop.xlane.xlu0 %1379  ;;  %v1593_v52 = vmul.f32 %v3499_v9, %v3499_v9  ;;  %v1685_v53 = vsub.f32 %v3224_v60, %v3461_v15 }
 0x384   :  { %2260 = vst [vmem:[%s3723_s9 + $0x18] sm:$0xff] %v2196_v32   ;;  %v1852_v29 = vadd.f32 %v3441_v10, %v1814_v33  ;;  %2629 = vrsqrt.f32 %v1715_v18  ;;  %v1382_v21 = vpop.xlane.xlu1 %1381  ;;  %v3508_v26 = vmul.f32 0.015625, %v1380_v19  ;;  %v1594_v0 = vmul.f32 %v3501_v57, %v3501_v57 }
 0x385   :  { %2631 = vrsqrt.f32 %v1716_v12  ;;  %v3514_v39 = vmul.f32 0.015625, %v1382_v21  ;;  %v1686_v36 = vsub.f32 %v3230_v61, %v3463_v46  ;;  %v1683_v23 = vsub.f32 %v3236_v4, %v3470_v22 }
 0x386   :  { %v2191_v24 = vpack.c.bf16 %v1852_v29, %v1851_v13  ;;  %v1591_v60 = vmul.f32 %v3508_v26, %v3508_v26  ;;  %v1684_v4 = vsub.f32 %v3238_v47, %v3476_v2 }
 0x387   :  { %v1512_v59 = vpop.xlane.xlu0 %1511  ;;  %v1592_v61 = vmul.f32 %v3514_v39, %v3514_v39 }
 0x388   :  { %2259 = vst [vmem:[%s3723_s9 + $0x10] sm:$0xff] %v2191_v24   ;;  %v1561_v41 = vmul.f32 0.015625, %v1512_v59  ;;  %v1514_v28 = vpop.xlane.xlu1 %1513 }
 0x389   :  { %v1562_v14 = vmul.f32 0.015625, %v1514_v28 }
 0x38a   :  { %v2626_v5 = vpop.eup %2625  ;;  %v1625_v45 = vsub.f32 %v1561_v41, %v1593_v52 }
 0x38b   :  { %v2628_v7 = vpop.eup %2627  ;;  %v1781_v8 = vmul.f32 %v2626_v5, %v1685_v53  ;;  %v1626_v49 = vsub.f32 %v1562_v14, %v1594_v0  ;;  %v1508_v27 = vpop.xlane.xlu0 %1507 }
 0x38c   :  { %v1782_v44 = vmul.f32 %v2628_v7, %v1686_v36  ;;  %v1657_v15 = vmax.f32 %v1625_v45, 0.0  ;;  %v1559_v58 = vmul.f32 0.015625, %v1508_v27  ;;  %v1510_v34 = vpop.xlane.xlu1 %1509 }
 0x38d   :  { %v1819_v63 = vmul.f32 %v3426_v42, %v1781_v8  ;;  %v1658_v46 = vmax.f32 %v1626_v49, 0.0  ;;  %v1560_v25 = vmul.f32 0.015625, %v1510_v34  ;;  %v1689_v34 = vsub.f32 %v3256_v35, %v3499_v9 }
 0x38e   :  { %v2630_v11 = vpop.eup %2629  ;;  %v1820_v22 = vmul.f32 %v3426_v42, %v1782_v44  ;;  %v1721_v32 = vadd.f32 1e-05, %v1657_v15  ;;  %v1623_v33 = vsub.f32 %v1559_v58, %v1591_v60 }
 0x38f   :  { %v2632_v18 = vpop.eup %2631  ;;  %v1857_v13 = vadd.f32 %v3441_v10, %v1819_v63  ;;  %v1779_v12 = vmul.f32 %v2630_v11, %v1683_v23  ;;  %v1722_v19 = vadd.f32 1e-05, %v1658_v46  ;;  %v1624_v29 = vsub.f32 %v1560_v25, %v1592_v61  ;;  %v1392_v21 = vpop.xlane.xlu0 %1391 }
 0x390   :  { %v1858_v24 = vadd.f32 %v3441_v10, %v1820_v22  ;;  %v1780_v59 = vmul.f32 %v2632_v18, %v1684_v4  ;;  %2633 = vrsqrt.f32 %v1721_v32  ;;  %v1655_v52 = vmax.f32 %v1623_v33, 0.0  ;;  %v1394_v41 = vpop.xlane.xlu1 %1393 }
 0x391   :  { %v1817_v28 = vmul.f32 %v3426_v42, %v1779_v12  ;;  %2635 = vrsqrt.f32 %v1722_v19  ;;  %v1656_v47 = vmax.f32 %v1624_v29, 0.0  ;;  %v3537_v7 = vmul.f32 0.015625, %v1392_v21 }
 0x392   :  { %v2206_v2 = vpack.c.bf16 %v1858_v24, %v1857_v13  ;;  %v1818_v53 = vmul.f32 %v3426_v42, %v1780_v59  ;;  %v1719_v0 = vadd.f32 1e-05, %v1655_v52  ;;  %v3539_v8 = vmul.f32 0.015625, %v1394_v41 }
 0x393   :  { %v1855_v14 = vadd.f32 %v3441_v10, %v1817_v28  ;;  %v1720_v5 = vadd.f32 1e-05, %v1656_v47  ;;  %v1388_v36 = vpop.xlane.xlu0 %1387  ;;  %v1597_v44 = vmul.f32 %v3537_v7, %v3537_v7  ;;  %v1690_v11 = vsub.f32 %v3262_v31, %v3501_v57 }
 0x394   :  { %2262 = vst [vmem:[%s3723_s9 + $0x28] sm:$0xff] %v2206_v2   ;;  %v1856_v45 = vadd.f32 %v3441_v10, %v1818_v53  ;;  %2637 = vrsqrt.f32 %v1719_v0  ;;  %v1390_v23 = vpop.xlane.xlu1 %1389  ;;  %v3546_v60 = vmul.f32 0.015625, %v1388_v36  ;;  %v1598_v63 = vmul.f32 %v3539_v8, %v3539_v8 }
 0x395   :  { %2639 = vrsqrt.f32 %v1720_v5  ;;  %v3552_v61 = vmul.f32 0.015625, %v1390_v23  ;;  %v1687_v32 = vsub.f32 %v3268_v40, %v3508_v26  ;;  %v1688_v40 = vsub.f32 %v3270_v30, %v3514_v39 }
 0x396   :  { %v2201_v49 = vpack.c.bf16 %v1856_v45, %v1855_v14  ;;  %v1595_v35 = vmul.f32 %v3546_v60, %v3546_v60 }
 0x397   :  { %v1520_v27 = vpop.xlane.xlu0 %1519  ;;  %v1596_v31 = vmul.f32 %v3552_v61, %v3552_v61 }
 0x398   :  { %2261 = vst [vmem:[%s3723_s9 + $0x20] sm:$0xff] %v2201_v49   ;;  %v1565_v15 = vmul.f32 0.015625, %v1520_v27  ;;  %v1522_v58 = vpop.xlane.xlu1 %1521 }
 0x399   :  { %v1566_v46 = vmul.f32 0.015625, %v1522_v58 }
 0x39a   :  { %v2634_v25 = vpop.eup %2633  ;;  %v1629_v4 = vsub.f32 %v1565_v15, %v1597_v44 }
 0x39b   :  { %v2636_v22 = vpop.eup %2635  ;;  %v1785_v33 = vmul.f32 %v2634_v25, %v1689_v34  ;;  %v1630_v18 = vsub.f32 %v1566_v46, %v1598_v63  ;;  %v1516_v13 = vpop.xlane.xlu0 %1515 }
 0x39c   :  { %v1786_v12 = vmul.f32 %v2636_v22, %v1690_v11  ;;  %v1661_v9 = vmax.f32 %v1629_v4, 0.0  ;;  %v1563_v19 = vmul.f32 0.015625, %v1516_v13  ;;  %v1518_v29 = vpop.xlane.xlu1 %1517 }
 0x39d   :  { %v1823_v21 = vmul.f32 %v3426_v42, %v1785_v33  ;;  %v1662_v57 = vmax.f32 %v1630_v18, 0.0  ;;  %v1564_v24 = vmul.f32 0.015625, %v1518_v29 }
 0x39e   :  { %v2638_v59 = vpop.eup %2637  ;;  %v1824_v26 = vmul.f32 %v3426_v42, %v1786_v12  ;;  %v1725_v52 = vadd.f32 1e-05, %v1661_v9  ;;  %v1627_v41 = vsub.f32 %v1563_v19, %v1595_v35  ;;  %v1693_v12 = vsub.f32 %v3288_v50, %v3537_v7 }
 0x39f   :  { %v2640_v28 = vpop.eup %2639  ;;  %v1861_v47 = vadd.f32 %v3441_v10, %v1823_v21  ;;  %v1783_v2 = vmul.f32 %v2638_v59, %v1687_v32  ;;  %v1726_v53 = vadd.f32 1e-05, %v1662_v57  ;;  %v1628_v0 = vsub.f32 %v1564_v24, %v1596_v31  ;;  %v1400_v14 = vpop.xlane.xlu0 %1399 }
 0x3a0   :  { %v1862_v5 = vadd.f32 %v3441_v10, %v1824_v26  ;;  %v1784_v36 = vmul.f32 %v2640_v28, %v1688_v40  ;;  %2641 = vrsqrt.f32 %v1725_v52  ;;  %v1659_v45 = vmax.f32 %v1627_v41, 0.0  ;;  %v1402_v23 = vpop.xlane.xlu1 %1401 }
 0x3a1   :  { %v1821_v49 = vmul.f32 %v3426_v42, %v1783_v2  ;;  %2643 = vrsqrt.f32 %v1726_v53  ;;  %v1660_v30 = vmax.f32 %v1628_v0, 0.0  ;;  %v3575_v46 = vmul.f32 0.015625, %v1400_v14 }
 0x3a2   :  { %v2216_v39 = vpack.c.bf16 %v1862_v5, %v1861_v47  ;;  %v1822_v27 = vmul.f32 %v3426_v42, %v1784_v36  ;;  %v1723_v44 = vadd.f32 1e-05, %v1659_v45  ;;  %v3577_v11 = vmul.f32 0.015625, %v1402_v23 }
 0x3a3   :  { %v1859_v15 = vadd.f32 %v3441_v10, %v1821_v49  ;;  %v1724_v58 = vadd.f32 1e-05, %v1660_v30  ;;  %v1396_v34 = vpop.xlane.xlu0 %1395  ;;  %v1601_v32 = vmul.f32 %v3575_v46, %v3575_v46  ;;  %v1694_v21 = vsub.f32 %v3294_v6, %v3539_v8 }
 0x3a4   :  { %2264 = vst [vmem:[%s3723_s9 + $0x38] sm:$0xff] %v2216_v39   ;;  %v1860_v63 = vadd.f32 %v3441_v10, %v1822_v27  ;;  %2645 = vrsqrt.f32 %v1723_v44  ;;  %v1398_v25 = vpop.xlane.xlu1 %1397  ;;  %v3584_v33 = vmul.f32 0.015625, %v1396_v34  ;;  %v1602_v35 = vmul.f32 %v3577_v11, %v3577_v11 }
 0x3a5   :  { %2647 = vrsqrt.f32 %v1724_v58  ;;  %v3590_v9 = vmul.f32 0.015625, %v1398_v25  ;;  %v1691_v24 = vsub.f32 %v3300_v38, %v3546_v60  ;;  %v1692_v38 = vsub.f32 %v3302_v54, %v3552_v61 }
 0x3a6   :  { %v2211_v4 = vpack.c.bf16 %v1860_v63, %v1859_v15  ;;  %v1599_v50 = vmul.f32 %v3584_v33, %v3584_v33 }
 0x3a7   :  { %v1528_v22 = vpop.xlane.xlu0 %1527  ;;  %v1600_v6 = vmul.f32 %v3590_v9, %v3590_v9 }
 0x3a8   :  { %2263 = vst [vmem:[%s3723_s9 + $0x30] sm:$0xff] %v2211_v4   ;;  %v1569_v18 = vmul.f32 0.015625, %v1528_v22  ;;  %v1530_v13 = vpop.xlane.xlu1 %1529 }
 0x3a9   :  { %v1570_v19 = vmul.f32 0.015625, %v1530_v13 }
 0x3aa   :  { %v2642_v29 = vpop.eup %2641  ;;  %v1633_v31 = vsub.f32 %v1569_v18, %v1601_v32 }
 0x3ab   :  { %v2644_v57 = vpop.eup %2643  ;;  %v1789_v59 = vmul.f32 %v2642_v29, %v1693_v12  ;;  %v1634_v40 = vsub.f32 %v1570_v19, %v1602_v35  ;;  %v1524_v26 = vpop.xlane.xlu0 %1523 }
 0x3ac   :  { %v1790_v52 = vmul.f32 %v2644_v57, %v1694_v21  ;;  %v1665_v7 = vmax.f32 %v1633_v31, 0.0  ;;  %v1567_v41 = vmul.f32 0.015625, %v1524_v26  ;;  %v1526_v28 = vpop.xlane.xlu1 %1525 }
 0x3ad   :  { %v1827_v47 = vmul.f32 %v3426_v42, %v1789_v59  ;;  %v1666_v8 = vmax.f32 %v1634_v40, 0.0  ;;  %v1568_v2 = vmul.f32 0.015625, %v1526_v28  ;;  %v1695_v28 = vsub.f32 %v3332_v1, %v3584_v33 }
 0x3ae   :  { %v2646_v53 = vpop.eup %2645  ;;  %v1828_v60 = vmul.f32 %v3426_v42, %v1790_v52  ;;  %v1729_v0 = vadd.f32 1e-05, %v1665_v7  ;;  %v1631_v14 = vsub.f32 %v1567_v41, %v1599_v50  ;;  %v1698_v50 = vsub.f32 %v3326_v56, %v3577_v11 }
 0x3af   :  { %v2648_v5 = vpop.eup %2647  ;;  %v1865_v36 = vadd.f32 %v3441_v10, %v1827_v47  ;;  %v1787_v45 = vmul.f32 %v2646_v53, %v1691_v24  ;;  %v1730_v23 = vadd.f32 1e-05, %v1666_v8  ;;  %v1632_v49 = vsub.f32 %v1568_v2, %v1600_v6  ;;  %v1408_v30 = vpop.xlane.xlu0 %1407 }
 0x3b0   :  { %v1866_v39 = vadd.f32 %v3441_v10, %v1828_v60  ;;  %v1788_v27 = vmul.f32 %v2648_v5, %v1692_v38  ;;  %2649 = vrsqrt.f32 %v1729_v0  ;;  %v1663_v44 = vmax.f32 %v1631_v14, 0.0  ;;  %v1410_v15 = vpop.xlane.xlu1 %1409 }
 0x3b1   :  { %v1825_v58 = vmul.f32 %v3426_v42, %v1787_v45  ;;  %2651 = vrsqrt.f32 %v1730_v23  ;;  %v1664_v54 = vmax.f32 %v1632_v49, 0.0  ;;  %v3613_v18 = vmul.f32 0.015625, %v1408_v30 }
 0x3b2   :  { %v2226_v61 = vpack.c.bf16 %v1866_v39, %v1865_v36  ;;  %v1826_v34 = vmul.f32 %v3426_v42, %v1788_v27  ;;  %v1727_v63 = vadd.f32 1e-05, %v1663_v44  ;;  %v3615_v12 = vmul.f32 0.015625, %v1410_v15 }
 0x3b3   :  { %v1863_v25 = vadd.f32 %v3441_v10, %v1825_v58  ;;  %v1728_v4 = vadd.f32 1e-05, %v1664_v54  ;;  %v1404_v22 = vpop.xlane.xlu0 %1403  ;;  %v1605_v29 = vmul.f32 %v3613_v18, %v3613_v18  ;;  %v1697_v24 = vsub.f32 %v3320_v20, %v3575_v46 }
 0x3b4   :  { %2266 = vst [vmem:[%s3723_s9 + $0x48] sm:$0xff] %v2226_v61   ;;  %v1864_v32 = vadd.f32 %v3441_v10, %v1826_v34  ;;  %2653 = vrsqrt.f32 %v1727_v63  ;;  %v1406_v13 = vpop.xlane.xlu1 %1405  ;;  %v3622_v21 = vmul.f32 0.015625, %v1404_v22  ;;  %v1606_v59 = vmul.f32 %v3615_v12, %v3615_v12 }
 0x3b5   :  { %2655 = vrsqrt.f32 %v1728_v4  ;;  %v3628_v40 = vmul.f32 0.015625, %v1406_v13  ;;  %v1696_v1 = vsub.f32 %v3334_v3, %v3590_v9 }
 0x3b6   :  { %v2221_v35 = vpack.c.bf16 %v1864_v32, %v1863_v25  ;;  %v1603_v20 = vmul.f32 %v3622_v21, %v3622_v21 }
 0x3b7   :  { %v1536_v19 = vpop.xlane.xlu0 %1535  ;;  %v1604_v56 = vmul.f32 %v3628_v40, %v3628_v40 }
 0x3b8   :  { %2265 = vst [vmem:[%s3723_s9 + $0x40] sm:$0xff] %v2221_v35   ;;  %v1573_v31 = vmul.f32 0.015625, %v1536_v19  ;;  %v1538_v57 = vpop.xlane.xlu1 %1537 }
 0x3b9   :  { %v1574_v26 = vmul.f32 0.015625, %v1538_v57 }
 0x3ba   :  { %v2650_v52 = vpop.eup %2649  ;;  %v1637_v7 = vsub.f32 %v1573_v31, %v1605_v29 }
 0x3bb   :  { %v2652_v41 = vpop.eup %2651  ;;  %v1793_v47 = vmul.f32 %v2650_v52, %v1697_v24  ;;  %v1638_v6 = vsub.f32 %v1574_v26, %v1606_v59  ;;  %v1532_v8 = vpop.xlane.xlu0 %1531  ;;  %v1701_v52 = vsub.f32 %v3352_v62, %v3613_v18 }
 0x3bc   :  { %v1794_v2 = vmul.f32 %v2652_v41, %v1698_v50  ;;  %v1669_v46 = vmax.f32 %v1637_v7, 0.0  ;;  %v1571_v53 = vmul.f32 0.015625, %v1532_v8  ;;  %v1534_v38 = vpop.xlane.xlu1 %1533 }
 0x3bd   :  { %v1831_v60 = vmul.f32 %v3426_v42, %v1793_v47  ;;  %v1670_v11 = vmax.f32 %v1638_v6, 0.0  ;;  %v1572_v0 = vmul.f32 0.015625, %v1534_v38  ;;  %v1702_v47 = vsub.f32 %v3358_v17, %v3615_v12 }
 0x3be   :  { %v2654_v14 = vpop.eup %2653  ;;  %v1832_v33 = vmul.f32 %v3426_v42, %v1794_v2  ;;  %v1733_v5 = vadd.f32 1e-05, %v1669_v46  ;;  %v1635_v36 = vsub.f32 %v1571_v53, %v1603_v20  ;;  %v1699_v2 = vsub.f32 %v3364_v37, %v3622_v21 }
 0x3bf   :  { %v2656_v45 = vpop.eup %2655  ;;  %v1869_v23 = vadd.f32 %v3441_v10, %v1831_v60  ;;  %v1791_v49 = vmul.f32 %v2654_v14, %v1695_v28  ;;  %v1734_v30 = vadd.f32 1e-05, %v1670_v11  ;;  %v1636_v39 = vsub.f32 %v1572_v0, %v1604_v56  ;;  %v1416_v27 = vpop.xlane.xlu0 %1415 }
 0x3c0   :  { %v1870_v44 = vadd.f32 %v3441_v10, %v1832_v33  ;;  %v1792_v15 = vmul.f32 %v2656_v45, %v1696_v1  ;;  %2657 = vrsqrt.f32 %v1733_v5  ;;  %v1667_v58 = vmax.f32 %v1635_v36, 0.0  ;;  %v1418_v54 = vpop.xlane.xlu1 %1417 }
 0x3c1   :  { %v1829_v61 = vmul.f32 %v3426_v42, %v1791_v49  ;;  %2659 = vrsqrt.f32 %v1734_v30  ;;  %v1668_v3 = vmax.f32 %v1636_v39, 0.0  ;;  %v3658_v57 = vmul.f32 0.015625, %v1416_v27 }
 0x3c2   :  { %v2236_v9 = vpack.c.bf16 %v1870_v44, %v1869_v23  ;;  %v1830_v34 = vmul.f32 %v3426_v42, %v1792_v15  ;;  %v1731_v63 = vadd.f32 1e-05, %v1667_v58  ;;  %v3664_v50 = vmul.f32 0.015625, %v1418_v54 }
 0x3c3   :  { %v1867_v25 = vadd.f32 %v3441_v10, %v1829_v61  ;;  %v1732_v4 = vadd.f32 1e-05, %v1668_v3  ;;  %v1412_v22 = vpop.xlane.xlu0 %1411  ;;  %v1609_v62 = vmul.f32 %v3658_v57, %v3658_v57  ;;  %v1700_v37 = vsub.f32 %v3366_v16, %v3628_v40 }
 0x3c4   :  { %2268 = vst [vmem:[%s3723_s9 + $0x58] sm:$0xff] %v2236_v9   ;;  %v1868_v32 = vadd.f32 %v3441_v10, %v1830_v34  ;;  %2661 = vrsqrt.f32 %v1731_v63  ;;  %v1414_v13 = vpop.xlane.xlu1 %1413  ;;  %v3651_v35 = vmul.f32 0.015625, %v1412_v22  ;;  %v1610_v17 = vmul.f32 %v3664_v50, %v3664_v50 }
 0x3c5   :  { %2663 = vrsqrt.f32 %v1732_v4  ;;  %v3653_v19 = vmul.f32 0.015625, %v1414_v13  ;;  %v1705_v13 = vsub.f32 %v3384_v48, %v3658_v57 }
 0x3c6   :  { %v2231_v29 = vpack.c.bf16 %v1868_v32, %v1867_v25  ;;  %v1607_v24 = vmul.f32 %v3651_v35, %v3651_v35  ;;  %v1703_v34 = vsub.f32 %v3396_v43, %v3651_v35 }
 0x3c7   :  { %v1540_v31 = vpop.xlane.xlu0 %1539  ;;  %v1608_v7 = vmul.f32 %v3653_v19, %v3653_v19  ;;  %v1704_v25 = vsub.f32 %v3398_v51, %v3653_v19 }
 0x3c8   :  { %2267 = vst [vmem:[%s3723_s9 + $0x50] sm:$0xff] %v2231_v29   ;;  %v1575_v59 = vmul.f32 0.015625, %v1540_v31  ;;  %v1542_v26 = vpop.xlane.xlu1 %1541 }
 0x3c9   :  { %v1576_v41 = vmul.f32 0.015625, %v1542_v26 }
 0x3ca   :  { %v2658_v28 = vpop.eup %2657  ;;  %v1639_v6 = vsub.f32 %v1575_v59, %v1607_v24  ;;  %v1706_v24 = vsub.f32 %v3390_v55, %v3664_v50 }
 0x3cb   :  { %v2660_v8 = vpop.eup %2659  ;;  %v1797_v20 = vmul.f32 %v2658_v28, %v1701_v52  ;;  %v1640_v46 = vsub.f32 %v1576_v41, %v1608_v7  ;;  %v1544_v53 = vpop.xlane.xlu0 %1543 }
 0x3cc   :  { %v1798_v38 = vmul.f32 %v2660_v8, %v1702_v47  ;;  %v1671_v18 = vmax.f32 %v1639_v6, 0.0  ;;  %v1577_v60 = vmul.f32 0.015625, %v1544_v53  ;;  %v1546_v56 = vpop.xlane.xlu1 %1545 }
 0x3cd   :  { %v1835_v11 = vmul.f32 %v3426_v42, %v1797_v20  ;;  %v1672_v12 = vmax.f32 %v1640_v46, 0.0  ;;  %v1578_v0 = vmul.f32 0.015625, %v1546_v56 }
 0x3ce   :  { %v2662_v14 = vpop.eup %2661  ;;  %v1836_v21 = vmul.f32 %v3426_v42, %v1798_v38  ;;  %v1735_v1 = vadd.f32 1e-05, %v1671_v18  ;;  %v1641_v33 = vsub.f32 %v1577_v60, %v1609_v62 }
 0x3cf   :  { %v2664_v5 = vpop.eup %2663  ;;  %v1873_v36 = vadd.f32 %v3441_v10, %v1835_v11  ;;  %v1795_v45 = vmul.f32 %v2662_v14, %v1699_v2  ;;  %v1736_v23 = vadd.f32 1e-05, %v1672_v12  ;;  %v1642_v49 = vsub.f32 %v1578_v0, %v1610_v17 }
 0x3d0   :  { %v1874_v30 = vadd.f32 %v3441_v10, %v1836_v21  ;;  %v1796_v39 = vmul.f32 %v2664_v5, %v1700_v37  ;;  %2665 = vrsqrt.f32 %v1735_v1  ;;  %v1673_v27 = vmax.f32 %v1641_v33, 0.0 }
 0x3d1   :  { %v1833_v44 = vmul.f32 %v3426_v42, %v1795_v45  ;;  %2667 = vrsqrt.f32 %v1736_v23  ;;  %v1674_v15 = vmax.f32 %v1642_v49, 0.0 }
 0x3d2   :  { %v2246_v16 = vpack.c.bf16 %v1874_v30, %v1873_v36  ;;  %v1834_v40 = vmul.f32 %v3426_v42, %v1796_v39  ;;  %v1737_v58 = vadd.f32 1e-05, %v1673_v27 }
 0x3d3   :  { %v1871_v54 = vadd.f32 %v3441_v10, %v1833_v44  ;;  %v1738_v61 = vadd.f32 1e-05, %v1674_v15 }
 0x3d4   :  { %2270 = vst [vmem:[%s3723_s9 + $0x68] sm:$0xff] %v2246_v16   ;;  %v1872_v3 = vadd.f32 %v3441_v10, %v1834_v40  ;;  %2669 = vrsqrt.f32 %v1737_v58 }
 0x3d5   :  { %2671 = vrsqrt.f32 %v1738_v61 }
 0x3d6   :  { %v2241_v9 = vpack.c.bf16 %v1872_v3, %v1871_v54 }
 0x3d8   :  { %2269 = vst [vmem:[%s3723_s9 + $0x60] sm:$0xff] %v2241_v9  }
 0x3da   :  { %v2666_v63 = vpop.eup %2665 }
 0x3db   :  { %v2668_v4 = vpop.eup %2667  ;;  %v1799_v22 = vmul.f32 %v2666_v63, %v1703_v34 }
 0x3dc   :  { %v1800_v32 = vmul.f32 %v2668_v4, %v1704_v25 }
 0x3dd   :  { %v1837_v29 = vmul.f32 %v3426_v42, %v1799_v22 }
 0x3de   :  { %v2670_v31 = vpop.eup %2669  ;;  %v1838_v59 = vmul.f32 %v3426_v42, %v1800_v32 }
 0x3df   :  { %v2672_v26 = vpop.eup %2671  ;;  %v1875_v43 = vadd.f32 %v3441_v10, %v1837_v29  ;;  %v1801_v35 = vmul.f32 %v2670_v31, %v1705_v13 }
 0x3e0   :  { %v1876_v51 = vadd.f32 %v3441_v10, %v1838_v59  ;;  %v1802_v19 = vmul.f32 %v2672_v26, %v1706_v24 }
 0x3e1   :  { %v1839_v52 = vmul.f32 %v3426_v42, %v1801_v35 }
 0x3e2   :  { %v2251_v7 = vpack.c.bf16 %v1876_v51, %v1875_v43  ;;  %v1840_v48 = vmul.f32 %v3426_v42, %v1802_v19 }
 0x3e3   :  { %v1877_v57 = vadd.f32 %v3441_v10, %v1839_v52 }
 0x3e4   :  { %2271 = vst [vmem:[%s3723_s9 + $0x70] sm:$0xff] %v2251_v7   ;;  %v1878_v55 = vadd.f32 %v3441_v10, %v1840_v48 }
 0x3e6   :  { %v2256_v50 = vpack.c.bf16 %v1878_v55, %v1877_v57 }
 0x3e8   :  { %2272 = vst [vmem:[%s3723_s9 + $0x78] sm:$0xff] %v2256_v50  }

</bundles_post_ra>
